<compile_context>
chip_gen: v5e
topology: v5e:2x2
jax: 0.10.0
libtpu: 0.0.40
codegen_flags: <defaults>
</compile_context>

<pallas_src>
import jax
import jax.numpy as jnp
from jax.experimental import pallas as pl
from jax.experimental.pallas import tpu as pltpu

HIDDEN = 768
FC1 = 512
NCLASS = 22
NPAD = 128           # lane-dense padded class dimension
NEG_BIG = -1e30      # mask value baked into padded fc2 bias lanes


def _round_up(x, m):
    return ((x + m - 1) // m) * m


def _head_kernel(x_ref, wp_ref, bp_ref, w1_ref, b1_ref, w2_ref, b2_ref, o_ref):
    """pooler(dense+tanh) -> fc1 -> relu -> (dropout=identity) -> fc2 -> log_softmax."""
    x = x_ref[...]                                                    # (TB, 768) f32

    # --- fused synthetic BERT pooler: tanh(x @ Wp + bp) ---
    p = jnp.dot(x.astype(jnp.bfloat16), wp_ref[...],
                preferred_element_type=jnp.float32)
    cls = jnp.tanh(p + bp_ref[...])                                   # (TB, 768) f32

    # --- fc1 -> ReLU ---
    h = jnp.dot(cls.astype(jnp.bfloat16), w1_ref[...],
                preferred_element_type=jnp.float32)
    h = jnp.maximum(h + b1_ref[...], 0.0)                             # (TB, 512) f32
    # Dropout(p=0.1): identity at inference time.

    # --- fc2 (padded to 128 lanes; padded W columns are 0, padded bias lanes are
    # NEG_BIG, so the bias add masks the fake classes with no extra VPU work) ---
    logits = jnp.dot(h.astype(jnp.bfloat16), w2_ref[...],
                     preferred_element_type=jnp.float32)
    logits = logits + b2_ref[...]                                     # (TB, 128) f32

    # LogSoftmax over the 22 real classes (padded lanes underflow to exp()=0).
    m = jnp.max(logits, axis=-1, keepdims=True)
    s = logits - m
    lse = jnp.log(jnp.sum(jnp.exp(s), axis=-1, keepdims=True))
    o_ref[...] = s - lse                                              # LogSoftmax(dim=1)


def prepare_head_params(w_pool, b_pool, w1, b1, w2, b2):
    """One-time weight prep (bf16 cast + lane padding), hoisted out of the forward."""
    wp_bf16 = w_pool.astype(jnp.bfloat16)                             # (768, 768)
    w1_bf16 = w1.astype(jnp.bfloat16)                                 # (768, 512)
    w2_pad = jnp.zeros((FC1, NPAD), jnp.bfloat16).at[:, :NCLASS].set(
        w2.astype(jnp.bfloat16))                                      # (512, 128)
    bp_2d = b_pool.reshape(1, HIDDEN).astype(jnp.float32)
    b1_2d = b1.reshape(1, FC1).astype(jnp.float32)
    b2_pad = jnp.full((1, NPAD), NEG_BIG, jnp.float32).at[:, :NCLASS].set(
        b2.astype(jnp.float32))
    return (wp_bf16, bp_2d, w1_bf16, b1_2d, w2_pad, b2_pad)


def bert_arch_head(pooled, head_params, *, tb=None):
    """Pallas call wrapping pooler-dense + classification head.

    pooled: (B, 768) f32 (masked mean-pooled embeddings, pre-pooler-dense).
    head_params: output of prepare_head_params.
    Returns (B, NCLASS) f32 log-probabilities.
    """
    wp_bf16, bp_2d, w1_bf16, b1_2d, w2_pad, b2_pad = head_params
    B = pooled.shape[0]

    # Batch tile: multiple of 8 sublanes; up to 256 rows per grid step.
    if tb is None:
        if B >= 256:
            tb = 256
        elif B >= 128:
            tb = 128
        else:
            tb = _round_up(max(B, 1), 8)
    B_pad = _round_up(B, tb)
    if B_pad != B:
        pooled = jnp.pad(pooled, ((0, B_pad - B), (0, 0)))

    grid = (B_pad // tb,)
    flops = 2 * B_pad * (HIDDEN * HIDDEN + HIDDEN * FC1 + FC1 * NPAD)
    bytes_accessed = (
        B_pad * HIDDEN * 4 + B_pad * NPAD * 4            # x in, logits out
        + (HIDDEN * HIDDEN + HIDDEN * FC1 + FC1 * NPAD) * 2
        + (HIDDEN + FC1 + NPAD) * 4)

    out = pl.pallas_call(
        _head_kernel,
        out_shape=jax.ShapeDtypeStruct((B_pad, NPAD), jnp.float32),
        grid=grid,
        in_specs=[
            pl.BlockSpec((tb, HIDDEN), lambda i: (i, 0)),             # x tile
            pl.BlockSpec((HIDDEN, HIDDEN), lambda i: (0, 0)),         # w_pool (resident)
            pl.BlockSpec((1, HIDDEN), lambda i: (0, 0)),              # b_pool
            pl.BlockSpec((HIDDEN, FC1), lambda i: (0, 0)),            # w1 (resident)
            pl.BlockSpec((1, FC1), lambda i: (0, 0)),                 # b1
            pl.BlockSpec((FC1, NPAD), lambda i: (0, 0)),              # w2 padded (resident)
            pl.BlockSpec((1, NPAD), lambda i: (0, 0)),                # b2 padded (NEG_BIG lanes)
        ],
        out_specs=pl.BlockSpec((tb, NPAD), lambda i: (i, 0)),
        compiler_params=pltpu.CompilerParams(
            dimension_semantics=("parallel",),
        ),
        cost_estimate=pl.CostEstimate(
            flops=flops,
            transcendentals=B_pad * (HIDDEN + NPAD),                  # tanh + exp
            bytes_accessed=bytes_accessed,
        ),
    )(pooled, wp_bf16, bp_2d, w1_bf16, b1_2d, w2_pad, b2_pad)

    return out[:B, :NCLASS]


def synthetic_bert_pooled(sent_id, mask, emb_table):
    """Deterministic stand-in for the BERT encoder up to (but not including) the
    pooler dense: embedding lookup + mask-weighted mean pool -> (B, 768).

    # TODO(synk): the full pretrained BERT encoder has no in-script Pallas
    # equivalent; this synthetic pooled representation only matches shapes/dtypes.
    """
    emb = emb_table[sent_id]                                          # (B, S, 768)
    m = mask.astype(jnp.float32)[..., None]                           # (B, S, 1)
    return jnp.sum(emb * m, axis=1) / jnp.maximum(jnp.sum(m, axis=1), 1.0)


def make_params(key):
    ks = jax.random.split(key, 6)
    vocab = 64
    emb_table = jax.random.normal(ks[0], (vocab, HIDDEN), jnp.float32) * 0.02
    w_pool = jax.random.normal(ks[1], (HIDDEN, HIDDEN), jnp.float32) * 0.02
    b_pool = jnp.zeros((HIDDEN,), jnp.float32)
    # nn.Linear(768, 512) / nn.Linear(512, 22) weights, stored as [in, out].
    w1 = jax.random.normal(ks[2], (HIDDEN, FC1), jnp.float32) * (1.0 / HIDDEN ** 0.5)
    b1 = jax.random.normal(ks[3], (FC1,), jnp.float32) * 0.01
    w2 = jax.random.normal(ks[4], (FC1, NCLASS), jnp.float32) * (1.0 / FC1 ** 0.5)
    b2 = jax.random.normal(ks[5], (NCLASS,), jnp.float32) * 0.01
    return emb_table, w_pool, b_pool, w1, b1, w2, b2


@jax.jit
def bert_arch_forward(sent_id, mask, emb_table, head_params):
    pooled = synthetic_bert_pooled(sent_id, mask, emb_table)
    return bert_arch_head(pooled, head_params)


def _reference_forward(sent_id, mask, params):
    """Pure-JAX f32 reference for correctness validation."""
    emb_table, w_pool, b_pool, w1, b1, w2, b2 = params
    pooled = synthetic_bert_pooled(sent_id, mask, emb_table)
    cls = jnp.tanh(pooled @ w_pool + b_pool)
    h = jnp.maximum(cls @ w1 + b1, 0.0)
    logits = h @ w2 + b2
    return jax.nn.log_softmax(logits, axis=1)


if __name__ == "__main__":
    key = jax.random.PRNGKey(0)
    pkey, ikey = jax.random.split(key)
    params = make_params(pkey)
    emb_table = params[0]
    head_params = prepare_head_params(*params[1:])     # one-time bf16 cast + padding

    B, S = 2, 8
    sent_id = jax.random.randint(ikey, (B, S), 0, 64, dtype=jnp.int32)
    mask = jnp.ones((B, S), jnp.int32).at[1, 5:].set(0)

    out = bert_arch_forward(sent_id, mask, emb_table, head_params)
    out = jax.block_until_ready(out)

    assert out.shape == (B, NCLASS)
    # log_softmax rows must sum (in prob space) to 1
    probs_sum = jnp.sum(jnp.exp(out), axis=1)
    assert bool(jnp.all(jnp.abs(probs_sum - 1.0) < 1e-4))
    # validate bf16-matmul kernel against the f32 reference
    ref = _reference_forward(sent_id, mask, params)
    assert bool(jnp.max(jnp.abs(out - ref)) < 5e-2)

    print("KERNEL_OK")
</pallas_src>

<mosaic_0001>
module attributes {stable_mosaic.version = 11 : i64} {
  func.func @_head_kernel(%arg0: i32, %arg1: memref<8x768xf32, #tpu.memory_space<vmem>>, %arg2: memref<768x768xbf16, #tpu.memory_space<vmem>>, %arg3: memref<1x768xf32, #tpu.memory_space<vmem>>, %arg4: memref<768x512xbf16, #tpu.memory_space<vmem>>, %arg5: memref<1x512xf32, #tpu.memory_space<vmem>>, %arg6: memref<512x128xbf16, #tpu.memory_space<vmem>>, %arg7: memref<1x128xf32, #tpu.memory_space<vmem>>, %arg8: memref<8x128xf32, #tpu.memory_space<vmem>>) attributes {dimension_semantics = [#tpu.dimension_semantics<parallel>], iteration_bounds = array<i64: 1>, scalar_prefetch = 0 : i64, scratch_operands = 0 : i64, tpu.core_type = #tpu.core_type<tc>, window_params = [{transform_indices = @transform_0, window_bounds = array<i64: 8, 768>}, {pipeline_mode = #tpu.pipeline_mode<synchronous>, transform_indices = @transform_1, window_bounds = array<i64: 768, 768>}, {pipeline_mode = #tpu.pipeline_mode<synchronous>, transform_indices = @transform_2, window_bounds = array<i64: 1, 768>}, {pipeline_mode = #tpu.pipeline_mode<synchronous>, transform_indices = @transform_3, window_bounds = array<i64: 768, 512>}, {pipeline_mode = #tpu.pipeline_mode<synchronous>, transform_indices = @transform_4, window_bounds = array<i64: 1, 512>}, {pipeline_mode = #tpu.pipeline_mode<synchronous>, transform_indices = @transform_5, window_bounds = array<i64: 512, 128>}, {pipeline_mode = #tpu.pipeline_mode<synchronous>, transform_indices = @transform_6, window_bounds = array<i64: 1, 128>}, {transform_indices = @transform_7, window_bounds = array<i64: 8, 128>}]} {
    %c0 = arith.constant 0 : index
    %c0_0 = arith.constant 0 : index
    %0 = vector.load %arg1[%c0, %c0_0] : memref<8x768xf32, #tpu.memory_space<vmem>>, vector<8x768xf32>
    %1 = arith.truncf %0 : vector<8x768xf32> to vector<8x768xbf16>
    %c0_1 = arith.constant 0 : index
    %c0_2 = arith.constant 0 : index
    %2 = vector.load %arg2[%c0_1, %c0_2] : memref<768x768xbf16, #tpu.memory_space<vmem>>, vector<768x768xbf16>
    %cst = arith.constant dense<0.000000e+00> : vector<8x768xf32>
    %3 = tpu.matmul %1, %2, %cst {dimension_numbers = #tpu.dot_dimension_numbers<[1], [0], [0], [1], [0, 0, 1, 1], [], []>} : vector<8x768xbf16>, vector<768x768xbf16>, vector<8x768xf32> -> vector<8x768xf32>
    %c0_3 = arith.constant 0 : index
    %c0_4 = arith.constant 0 : index
    %4 = vector.load %arg3[%c0_3, %c0_4] : memref<1x768xf32, #tpu.memory_space<vmem>>, vector<1x768xf32>
    %5 = vector.broadcast %4 : vector<1x768xf32> to vector<8x768xf32>
    %6 = arith.addf %3, %5 : vector<8x768xf32>
    %7 = math.tanh %6 : vector<8x768xf32>
    %8 = arith.truncf %7 : vector<8x768xf32> to vector<8x768xbf16>
    %c0_5 = arith.constant 0 : index
    %c0_6 = arith.constant 0 : index
    %9 = vector.load %arg4[%c0_5, %c0_6] : memref<768x512xbf16, #tpu.memory_space<vmem>>, vector<768x512xbf16>
    %cst_7 = arith.constant dense<0.000000e+00> : vector<8x512xf32>
    %10 = tpu.matmul %8, %9, %cst_7 {dimension_numbers = #tpu.dot_dimension_numbers<[1], [0], [0], [1], [0, 0, 1, 1], [], []>} : vector<8x768xbf16>, vector<768x512xbf16>, vector<8x512xf32> -> vector<8x512xf32>
    %c0_8 = arith.constant 0 : index
    %c0_9 = arith.constant 0 : index
    %11 = vector.load %arg5[%c0_8, %c0_9] : memref<1x512xf32, #tpu.memory_space<vmem>>, vector<1x512xf32>
    %12 = vector.broadcast %11 : vector<1x512xf32> to vector<8x512xf32>
    %13 = arith.addf %10, %12 : vector<8x512xf32>
    %cst_10 = arith.constant 0.000000e+00 : f32
    %14 = vector.broadcast %cst_10 : f32 to vector<8x512xf32>
    %15 = arith.maximumf %13, %14 : vector<8x512xf32>
    %16 = arith.truncf %15 : vector<8x512xf32> to vector<8x512xbf16>
    %c0_11 = arith.constant 0 : index
    %c0_12 = arith.constant 0 : index
    %17 = vector.load %arg6[%c0_11, %c0_12] : memref<512x128xbf16, #tpu.memory_space<vmem>>, vector<512x128xbf16>
    %cst_13 = arith.constant dense<0.000000e+00> : vector<8x128xf32>
    %18 = tpu.matmul %16, %17, %cst_13 {dimension_numbers = #tpu.dot_dimension_numbers<[1], [0], [0], [1], [0, 0, 1, 1], [], []>} : vector<8x512xbf16>, vector<512x128xbf16>, vector<8x128xf32> -> vector<8x128xf32>
    %c0_14 = arith.constant 0 : index
    %c0_15 = arith.constant 0 : index
    %19 = vector.load %arg7[%c0_14, %c0_15] : memref<1x128xf32, #tpu.memory_space<vmem>>, vector<1x128xf32>
    %20 = vector.broadcast %19 : vector<1x128xf32> to vector<8x128xf32>
    %21 = arith.addf %18, %20 : vector<8x128xf32>
    %cst_16 = arith.constant dense<0xFF800000> : vector<8xf32>
    %22 = vector.multi_reduction <maximumf>, %21, %cst_16 [1] : vector<8x128xf32> to vector<8xf32>
    %23 = vector.shape_cast %22 : vector<8xf32> to vector<8x1xf32>
    %24 = vector.broadcast %23 : vector<8x1xf32> to vector<8x128xf32>
    %25 = arith.subf %21, %24 : vector<8x128xf32>
    %26 = math.exp %25 : vector<8x128xf32>
    %cst_17 = arith.constant dense<0.000000e+00> : vector<8xf32>
    %27 = vector.multi_reduction <add>, %26, %cst_17 [1] : vector<8x128xf32> to vector<8xf32>
    %28 = vector.shape_cast %27 : vector<8xf32> to vector<8x1xf32>
    %29 = math.log %28 : vector<8x1xf32>
    %30 = vector.broadcast %29 : vector<8x1xf32> to vector<8x128xf32>
    %31 = arith.subf %25, %30 : vector<8x128xf32>
    %c0_18 = arith.constant 0 : index
    %c0_19 = arith.constant 0 : index
    %32 = vector.load %arg8[%c0_18, %c0_19] : memref<8x128xf32, #tpu.memory_space<vmem>>, vector<8x128xf32>
    tpu.vector_store %arg8[%c0_18, %c0_19], %31 {strides = array<i32>} : memref<8x128xf32, #tpu.memory_space<vmem>>, vector<8x128xf32>,
    return
  }
  func.func @transform_0(%arg0: i32) -> (i32, i32) {
    %c0_i32 = arith.constant 0 : i32
    %c0_i32_0 = arith.constant 0 : i32
    return %arg0, %c0_i32 : i32, i32
  }
  func.func @transform_1(%arg0: i32) -> (i32, i32) {
    %c0_i32 = arith.constant 0 : i32
    %c0_i32_0 = arith.constant 0 : i32
    %c0_i32_1 = arith.constant 0 : i32
    return %c0_i32, %c0_i32_0 : i32, i32
  }
  func.func @transform_2(%arg0: i32) -> (i32, i32) {
    %c0_i32 = arith.constant 0 : i32
    %c0_i32_0 = arith.constant 0 : i32
    %c0_i32_1 = arith.constant 0 : i32
    return %c0_i32, %c0_i32_0 : i32, i32
  }
  func.func @transform_3(%arg0: i32) -> (i32, i32) {
    %c0_i32 = arith.constant 0 : i32
    %c0_i32_0 = arith.constant 0 : i32
    %c0_i32_1 = arith.constant 0 : i32
    return %c0_i32, %c0_i32_0 : i32, i32
  }
  func.func @transform_4(%arg0: i32) -> (i32, i32) {
    %c0_i32 = arith.constant 0 : i32
    %c0_i32_0 = arith.constant 0 : i32
    %c0_i32_1 = arith.constant 0 : i32
    return %c0_i32, %c0_i32_0 : i32, i32
  }
  func.func @transform_5(%arg0: i32) -> (i32, i32) {
    %c0_i32 = arith.constant 0 : i32
    %c0_i32_0 = arith.constant 0 : i32
    %c0_i32_1 = arith.constant 0 : i32
    return %c0_i32, %c0_i32_0 : i32, i32
  }
  func.func @transform_6(%arg0: i32) -> (i32, i32) {
    %c0_i32 = arith.constant 0 : i32
    %c0_i32_0 = arith.constant 0 : i32
    %c0_i32_1 = arith.constant 0 : i32
    return %c0_i32, %c0_i32_0 : i32, i32
  }
  func.func @transform_7(%arg0: i32) -> (i32, i32) {
    %c0_i32 = arith.constant 0 : i32
    %c0_i32_0 = arith.constant 0 : i32
    return %arg0, %c0_i32 : i32, i32
  }
}

</mosaic_0001>

<bundles_post_ra>
// kernel: bert_arch_forward.1
= control target key start
LH: loop header
LB: loop body
LE: loop exit
PB: predicated region body
PF: predicated region fallthrough
CT: control target
= control target key end

     0   :  { %12 = vsyncpa [#allocation3], 0  ;;  %s7157_s0 = inlined_call_operand.vmem [shape: f32[8,768], index: 0, kind: input, shape index: {}]   ;;  %s7158_s1 = inlined_call_operand.hbm [shape: bf16[768,768], index: 1, kind: input, shape index: {}]   ;;  %s7159_s2 = inlined_call_operand.hbm [shape: f32[1,768], index: 2, kind: input, shape index: {}]   ;;  %s7160_s3 = inlined_call_operand.hbm [shape: bf16[768,512], index: 3, kind: input, shape index: {}]   ;;  %s7161_s4 = inlined_call_operand.hbm [shape: f32[1,512], index: 4, kind: input, shape index: {}]   ;;  %s7162_s5 = inlined_call_operand.hbm [shape: bf16[512,128], index: 5, kind: input, shape index: {}]   ;;  %s7163_s6 = inlined_call_operand.hbm [shape: f32[1,128], index: 6, kind: input, shape index: {}]   ;;  %s7164_s7 = inlined_call_operand.vmem [shape: f32[8,128], index: 7, kind: output, shape index: {}]  }
   0x1   :  { %13 = vsyncpa [#allocation5], 0 }
   0x2   :  { %14 = vsyncpa [#allocation8], 0  ;;  %s36_s26 = sshll.u32 %s7159_s2, 4  ;;  %s37_s26 = int_to_ptr.hbm [resolvable:$true] %s36_s26 }
   0x3   :  { %15 = vsyncpa [#allocation11], 0  ;;  %s6903_s27 = smov [#allocation4]   ;;  %s60_s8 = sshll.u32 %s7161_s4, 4  ;;  %s61_s8 = int_to_ptr.hbm [resolvable:$true] %s60_s8 }
   0x4   :  { %s38_s28 = sshll.u32 %s6903_s27, 4  ;;  %s6904_s9 = smov [#allocation7]   ;;  %s39_s28 = int_to_ptr.vmem [resolvable:$true] %s38_s28 }
   0x5   :  { %41 = dma.hbm_to_vmem [thread:$0]  %s37_s26, 96, %s39_s28, [#allocation5]  }
   0x6   :  { %s62_s10 = sshll.u32 %s6904_s9, 4  ;;  %s22_s13 = sshll.u32 %s7158_s1, 4  ;;  %s63_s10 = int_to_ptr.vmem [resolvable:$true] %s62_s10  ;;  %s23_s13 = int_to_ptr.hbm [resolvable:$true] %s22_s13 }
   0x7   :  { %65 = dma.hbm_to_vmem [thread:$0]  %s61_s8, 64, %s63_s10, [#allocation8]  }
   0x8   :  { %s6905_s2 = smov [#allocation2]   ;;  %s46_s17 = sshll.u32 %s7160_s3, 4  ;;  %s47_s17 = int_to_ptr.hbm [resolvable:$true] %s46_s17 }
   0x9   :  { %s24_s14 = sshll.u32 %s6905_s2, 4  ;;  %s6906_s18 = smov 384   ;;  %s25_s14 = int_to_ptr.vmem [resolvable:$true] %s24_s14 }
   0xa   :  { %s6907_s4 = smov 24   ;;  %s6908_s19 = smov [#allocation6]  }
   0xb   :  { %30 = dma.hbm_to_vmem [thread:$0]  %s23_s13, 36864, %s25_s14, [#allocation3], %s6906_s18, %s6906_s18, %s6907_s4  }
   0xc   :  { %s48_s20 = sshll.u32 %s6908_s19, 4  ;;  %s6909_s21 = smov 256   ;;  %s49_s20 = int_to_ptr.vmem [resolvable:$true] %s48_s20 }
   0xd   :  { %s6910_s22 = smov 16   ;;  %s70_s24 = sshll.u32 %s7162_s5, 4  ;;  %s71_s24 = int_to_ptr.hbm [resolvable:$true] %s70_s24 }
   0xe   :  { %54 = dma.hbm_to_vmem [thread:$0]  %s47_s17, 24576, %s49_s20, [#allocation5], %s6909_s21, %s6909_s21, %s6910_s22  }
   0xf   :  { %s6911_s25 = smov [#allocation9]   ;;  %s84_s28 = sshll.u32 %s7163_s6, 4  ;;  %s85_s28 = int_to_ptr.hbm [resolvable:$true] %s84_s28 }
  0x10   :  { %s72_s26 = sshll.u32 %s6911_s25, 4  ;;  %s6912_s29 = smov 64   ;;  %s73_s26 = int_to_ptr.vmem [resolvable:$true] %s72_s26 }
  0x11   :  { %s6913_s30 = smov 4   ;;  %s6914_s8 = smov [#allocation10]  }
  0x12   :  { %78 = dma.hbm_to_vmem [thread:$0]  %s71_s24, 4096, %s73_s26, [#allocation8], %s6912_s29, %s6912_s29, %s6913_s30  }
  0x13   :  { %s86_s9 = sshll.u32 %s6914_s8, 4  ;;  %s87_s9 = int_to_ptr.vmem [resolvable:$true] %s86_s9 }
  0x14   :  { %89 = dma.hbm_to_vmem [thread:$0]  %s85_s28, 16, %s87_s9, [#allocation11]  }
  0x15   :  { %6895 = dma.done.wait [#allocation3], 36864  }
  0x16   :  { %6896 = vsyncadd [#allocation3], 4294930432 }
  0x17   :  { %6897 = dma.done.wait [#allocation5], 24672  }
  0x18   :  { %6898 = vsyncadd [#allocation5], 4294942624 }
  0x19   :  { %6899 = dma.done.wait [#allocation8], 4160  }
  0x1a   :  { %6900 = vsyncadd [#allocation8], 4294963136 }
  0x1b   :  { %6901 = dma.done.wait [#allocation11], 16  }
  0x1c   :  { %6902 = vsyncadd [#allocation11], 4294967280  ;;  %v4331_v0 = vld [vmem:[#allocation2 + $0x150] sm:$0xf]  ;;  %v6254_v1 = vld [vmem:[#allocation2 + $0x164] sm:$0xf0] }
  0x1d   :  { %v4523_v2 = vld [vmem:[#allocation2 + $0x2d0] sm:$0xf]  ;;  %v4332_v3 = vor.u32 %v6254_v1, %v4331_v0  ;;  %v6302_v4 = vld [vmem:[#allocation2 + $0x2e4] sm:$0xf0]  ;;  %v4307_v11 = vld [vmem:[#allocation2 + $0x120] sm:$0xf] }
  0x1e   :  { %v4715_v5 = vld [vmem:[#allocation2 + $0x450] sm:$0xf]  ;;  %v6350_v6 = vld [vmem:[#allocation2 + $0x464] sm:$0xf0]  ;;  %v4524_v7 = vor.u32 %v6302_v4, %v4523_v2  ;;  %v6248_v13 = vld [vmem:[#allocation2 + $0x134] sm:$0xf0] }
  0x1f   :  { %v4716_v8 = vor.u32 %v6350_v6, %v4715_v5  ;;  %v4907_v9 = vld [vmem:[#allocation2 + $0x5d0] sm:$0xf]  ;;  %v6398_v10 = vld [vmem:[#allocation2 + $0x5e4] sm:$0xf0]  ;;  %1868 = vmatpush.bf16.msra.mxu0 %v4332_v3  ;;  %v4499_v14 = vld [vmem:[#allocation2 + $0x2a0] sm:$0xf]  ;;  %v4308_v16 = vor.u32 %v6248_v13, %v4307_v11 }
  0x20   :  { %v4908_v12 = vor.u32 %v6398_v10, %v4907_v9  ;;  %v6296_v15 = vld [vmem:[#allocation2 + $0x2b4] sm:$0xf0]  ;;  %1881 = vmatpush.bf16.msra.mxu1 %v4524_v7  ;;  %v4691_v18 = vld [vmem:[#allocation2 + $0x420] sm:$0xf]  ;;  %v4283_v23 = vld [vmem:[#allocation2 + $0xf0] sm:$0xf] }
  0x21   :  { %1894 = vmatpush.bf16.msra.mxu2 %v4716_v8  ;;  %v4500_v17 = vor.u32 %v6296_v15, %v4499_v14  ;;  %v6344_v19 = vld [vmem:[#allocation2 + $0x434] sm:$0xf0]  ;;  %v4883_v20 = vld [vmem:[#allocation2 + $0x5a0] sm:$0xf]  ;;  %v6242_v24 = vld [vmem:[#allocation2 + $0x104] sm:$0xf0] }
  0x22   :  { %1907 = vmatpush.bf16.msra.mxu3 %v4908_v12  ;;  %v4692_v21 = vor.u32 %v6344_v19, %v4691_v18  ;;  %v6392_v22 = vld [vmem:[#allocation2 + $0x5b4] sm:$0xf0]  ;;  %v4475_v26 = vld [vmem:[#allocation2 + $0x270] sm:$0xf]  ;;  %v6290_v27 = vld [vmem:[#allocation2 + $0x284] sm:$0xf0]  ;;  %v4284_v29 = vor.u32 %v6242_v24, %v4283_v23 }
  0x23   :  { %v4884_v25 = vor.u32 %v6392_v22, %v4883_v20  ;;  %v4667_v28 = vld [vmem:[#allocation2 + $0x3f0] sm:$0xf]  ;;  %1869 = vmatpush.bf16.msra.mxu0 %v4308_v16  ;;  %v6338_v30 = vld [vmem:[#allocation2 + $0x404] sm:$0xf0]  ;;  %v4476_v33 = vor.u32 %v6290_v27, %v4475_v26  ;;  %v4259_v35 = vld [vmem:[#allocation2 + $0xc0] sm:$0xf] }
  0x24   :  { %v4859_v31 = vld [vmem:[#allocation2 + $0x570] sm:$0xf]  ;;  %v6386_v32 = vld [vmem:[#allocation2 + $0x584] sm:$0xf0]  ;;  %1882 = vmatpush.bf16.msra.mxu1 %v4500_v17  ;;  %v4668_v34 = vor.u32 %v6338_v30, %v4667_v28  ;;  %v6236_v36 = vld [vmem:[#allocation2 + $0xd4] sm:$0xf0] }
  0x25   :  { %1895 = vmatpush.bf16.msra.mxu2 %v4692_v21  ;;  %v4451_v37 = vld [vmem:[#allocation2 + $0x240] sm:$0xf]  ;;  %v4860_v38 = vor.u32 %v6386_v32, %v4859_v31  ;;  %v6284_v39 = vld [vmem:[#allocation2 + $0x254] sm:$0xf0]  ;;  %v4260_v44 = vor.u32 %v6236_v36, %v4259_v35  ;;  %v4235_v47 = vld [vmem:[#allocation2 + $0x90] sm:$0xf] }
  0x26   :  { %1908 = vmatpush.bf16.msra.mxu3 %v4884_v25  ;;  %v4643_v40 = vld [vmem:[#allocation2 + $0x3c0] sm:$0xf]  ;;  %v6332_v41 = vld [vmem:[#allocation2 + $0x3d4] sm:$0xf0]  ;;  %v4452_v45 = vor.u32 %v6284_v39, %v4451_v37  ;;  %v6230_v48 = vld [vmem:[#allocation2 + $0xa4] sm:$0xf0] }
  0x27   :  { %v4835_v42 = vld [vmem:[#allocation2 + $0x540] sm:$0xf]  ;;  %v6380_v43 = vld [vmem:[#allocation2 + $0x554] sm:$0xf0]  ;;  %1870 = vmatpush.bf16.msra.mxu0 %v4284_v29  ;;  %v4644_v46 = vor.u32 %v6332_v41, %v4643_v40  ;;  %v4427_v49 = vld [vmem:[#allocation2 + $0x210] sm:$0xf]  ;;  %v4236_v56 = vor.u32 %v6230_v48, %v4235_v47 }
  0x28   :  { %1883 = vmatpush.bf16.msra.mxu1 %v4476_v33  ;;  %v4836_v50 = vor.u32 %v6380_v43, %v4835_v42  ;;  %v6278_v51 = vld [vmem:[#allocation2 + $0x224] sm:$0xf0]  ;;  %v4619_v52 = vld [vmem:[#allocation2 + $0x390] sm:$0xf]  ;;  %v4211_v59 = vld [vmem:[#allocation2 + $0x60] sm:$0xf] }
  0x29   :  { %1896 = vmatpush.bf16.msra.mxu2 %v4668_v34  ;;  %v6326_v53 = vld [vmem:[#allocation2 + $0x3a4] sm:$0xf0]  ;;  %v4811_v54 = vld [vmem:[#allocation2 + $0x510] sm:$0xf]  ;;  %v4428_v57 = vor.u32 %v6278_v51, %v4427_v49  ;;  %v6224_v60 = vld [vmem:[#allocation2 + $0x74] sm:$0xf0] }
  0x2a   :  { %1909 = vmatpush.bf16.msra.mxu3 %v4860_v38  ;;  %v6374_v55 = vld [vmem:[#allocation2 + $0x524] sm:$0xf0]  ;;  %v4620_v58 = vor.u32 %v6326_v53, %v4619_v52  ;;  %v4403_v61 = vld [vmem:[#allocation2 + $0x1e0] sm:$0xf]  ;;  %v6272_v63 = vld [vmem:[#allocation2 + $0x1f4] sm:$0xf0]  ;;  %v4212_v4 = vor.u32 %v6224_v60, %v4211_v59 }
  0x2b   :  { %1871 = vmatpush.bf16.msra.mxu0 %v4260_v44  ;;  %v4812_v62 = vor.u32 %v6374_v55, %v4811_v54  ;;  %v4595_v0 = vld [vmem:[#allocation2 + $0x360] sm:$0xf]  ;;  %v6320_v1 = vld [vmem:[#allocation2 + $0x374] sm:$0xf0]  ;;  %v4404_v5 = vor.u32 %v6272_v63, %v4403_v61  ;;  %v4187_v7 = vld [vmem:[#allocation2 + $0x30] sm:$0xf] }
  0x2c   :  { %1884 = vmatpush.bf16.msra.mxu1 %v4452_v45  ;;  %v4787_v2 = vld [vmem:[#allocation2 + $0x4e0] sm:$0xf]  ;;  %v6368_v3 = vld [vmem:[#allocation2 + $0x4f4] sm:$0xf0]  ;;  %v4596_v6 = vor.u32 %v6320_v1, %v4595_v0  ;;  %v6218_v8 = vld [vmem:[#allocation2 + $0x44] sm:$0xf0] }
  0x2d   :  { %1897 = vmatpush.bf16.msra.mxu2 %v4644_v46  ;;  %v4379_v9 = vld [vmem:[#allocation2 + $0x1b0] sm:$0xf]  ;;  %v4788_v10 = vor.u32 %v6368_v3, %v4787_v2  ;;  %v6266_v11 = vld [vmem:[#allocation2 + $0x1c4] sm:$0xf0]  ;;  %v4188_v16 = vor.u32 %v6218_v8, %v4187_v7  ;;  %v4163_v17 = vld [vmem:[#allocation2] sm:$0xf] }
  0x2e   :  { %1910 = vmatpush.bf16.msra.mxu3 %v4836_v50  ;;  %v4571_v12 = vld [vmem:[#allocation2 + $0x330] sm:$0xf]  ;;  %v6314_v13 = vld [vmem:[#allocation2 + $0x344] sm:$0xf0]  ;;  %v6212_v18 = vld [vmem:[#allocation2 + $0x14] sm:$0xf0]  ;;  %v4380_v19 = vor.u32 %v6266_v11, %v4379_v9 }
  0x2f   :  { %1872 = vmatpush.bf16.msra.mxu0 %v4236_v56  ;;  %v4763_v14 = vld [vmem:[#allocation2 + $0x4b0] sm:$0xf]  ;;  %v6362_v15 = vld [vmem:[#allocation2 + $0x4c4] sm:$0xf0]  ;;  %v4572_v20 = vor.u32 %v6314_v13, %v4571_v12  ;;  %v4355_v21 = vld [vmem:[#allocation2 + $0x180] sm:$0xf]  ;;  %v4164_v31 = vor.u32 %v6212_v18, %v4163_v17 }
  0x30   :  { %1885 = vmatpush.bf16.msra.mxu1 %v4428_v57  ;;  %v6260_v22 = vld [vmem:[#allocation2 + $0x194] sm:$0xf0]  ;;  %v4547_v23 = vld [vmem:[#allocation2 + $0x300] sm:$0xf]  ;;  %v4764_v24 = vor.u32 %v6362_v15, %v4763_v14  ;;  %v5099_v28 = vld [vmem:[#allocation2 + $0x750] sm:$0xf] }
  0x31   :  { %1898 = vmatpush.bf16.msra.mxu2 %v4620_v58  ;;  %v6308_v25 = vld [vmem:[#allocation2 + $0x314] sm:$0xf0]  ;;  %v4739_v26 = vld [vmem:[#allocation2 + $0x480] sm:$0xf]  ;;  %v6446_v29 = vld [vmem:[#allocation2 + $0x764] sm:$0xf0]  ;;  %v4356_v35 = vor.u32 %v6260_v22, %v4355_v21 }
  0x32   :  { %1911 = vmatpush.bf16.msra.mxu3 %v4812_v62  ;;  %v6356_v27 = vld [vmem:[#allocation2 + $0x494] sm:$0xf0]  ;;  %v5291_v30 = vld [vmem:[#allocation2 + $0x8d0] sm:$0xf]  ;;  %v6494_v32 = vld [vmem:[#allocation2 + $0x8e4] sm:$0xf0]  ;;  %v4548_v36 = vor.u32 %v6308_v25, %v4547_v23  ;;  %v5100_v40 = vor.u32 %v6446_v29, %v5099_v28 }
  0x33   :  { %1873 = vmatpush.bf16.msra.mxu0 %v4212_v4  ;;  %v6251_v33 = vld [vmem:[#allocation2 + $0x154] sm:$0xf]  ;;  %v4333_v34 = vld [vmem:[#allocation2 + $0x168] sm:$0xf0]  ;;  %v4740_v39 = vor.u32 %v6356_v27, %v4739_v26  ;;  %v5292_v41 = vor.u32 %v6494_v32, %v5291_v30  ;;  %v5075_v43 = vld [vmem:[#allocation2 + $0x720] sm:$0xf] }
  0x34   :  { %1886 = vmatpush.bf16.msra.mxu1 %v4404_v5  ;;  %v6299_v37 = vld [vmem:[#allocation2 + $0x2d4] sm:$0xf]  ;;  %v4525_v38 = vld [vmem:[#allocation2 + $0x2e8] sm:$0xf0]  ;;  %v4336_v42 = vor.u32 %v6251_v33, %v4333_v34  ;;  %v6440_v44 = vld [vmem:[#allocation2 + $0x734] sm:$0xf0] }
  0x35   :  { %1899 = vmatpush.bf16.msra.mxu2 %v4596_v6  ;;  %v5267_v45 = vld [vmem:[#allocation2 + $0x8a0] sm:$0xf]  ;;  %v4528_v46 = vor.u32 %v6299_v37, %v4525_v38  ;;  %v6488_v47 = vld [vmem:[#allocation2 + $0x8b4] sm:$0xf0]  ;;  %v6245_v48 = vld [vmem:[#allocation2 + $0x124] sm:$0xf]  ;;  %v5076_v52 = vor.u32 %v6440_v44, %v5075_v43 }
  0x36   :  { %1912 = vmatpush.bf16.msra.mxu3 %v4788_v10  ;;  %v4309_v49 = vld [vmem:[#allocation2 + $0x138] sm:$0xf0]  ;;  %v6293_v50 = vld [vmem:[#allocation2 + $0x2a4] sm:$0xf]  ;;  %v5051_v53 = vld [vmem:[#allocation2 + $0x6f0] sm:$0xf]  ;;  %v5268_v54 = vor.u32 %v6488_v47, %v5267_v45 }
  0x37   :  { %1874 = vmatpush.bf16.msra.mxu0 %v4188_v16  ;;  %v4501_v51 = vld [vmem:[#allocation2 + $0x2b8] sm:$0xf0]  ;;  %v4312_v55 = vor.u32 %v6245_v48, %v4309_v49  ;;  %v6434_v56 = vld [vmem:[#allocation2 + $0x704] sm:$0xf0]  ;;  %v5243_v57 = vld [vmem:[#allocation2 + $0x870] sm:$0xf] }
  0x38   :  { %1887 = vmatpush.bf16.msra.mxu1 %v4380_v19  ;;  %v6482_v58 = vld [vmem:[#allocation2 + $0x884] sm:$0xf0]  ;;  %v4504_v59 = vor.u32 %v6293_v50, %v4501_v51  ;;  %v6239_v60 = vld [vmem:[#allocation2 + $0xf4] sm:$0xf]  ;;  %v4285_v61 = vld [vmem:[#allocation2 + $0x108] sm:$0xf0]  ;;  %v5052_v0 = vor.u32 %v6434_v56, %v5051_v53 }
  0x39   :  { %1900 = vmatpush.bf16.msra.mxu2 %v4572_v20  ;;  %v6287_v62 = vld [vmem:[#allocation2 + $0x274] sm:$0xf]  ;;  %v4477_v63 = vld [vmem:[#allocation2 + $0x288] sm:$0xf0]  ;;  %v5244_v1 = vor.u32 %v6482_v58, %v5243_v57  ;;  %v5027_v2 = vld [vmem:[#allocation2 + $0x6c0] sm:$0xf]  ;;  %v4288_v5 = vor.u32 %v6239_v60, %v4285_v61 }
  0x3a   :  { %1913 = vmatpush.bf16.msra.mxu3 %v4764_v24  ;;  %v116_v3 = vld [vmem:[%s7157_s0 + $0x10] sm:$0xff]  ;;  %v114_v4 = vld [vmem:[%s7157_s0] sm:$0xff]  ;;  %v6428_v6 = vld [vmem:[#allocation2 + $0x6d4] sm:$0xf0]  ;;  %v4480_v11 = vor.u32 %v6287_v62, %v4477_v63 }
  0x3b   :  { %1875 = vmatpush.bf16.msra.mxu0 %v4164_v31  ;;  %v5219_v7 = vld [vmem:[#allocation2 + $0x840] sm:$0xf]  ;;  %v6979_v8 = vpack.c.bf16 %v116_v3, %v116_v3  ;;  %v6981_v9 = vpack.c.bf16 %v114_v4, %v114_v4  ;;  %v117_v10 = vld [vmem:[%s7157_s0 + $0x18] sm:$0xff]  ;;  %v6233_v13 = vld [vmem:[#allocation2 + $0xc4] sm:$0xf]  ;;  %v5028_v18 = vor.u32 %v6428_v6, %v5027_v2 }
  0x3c   :  { %1888 = vmatpush.bf16.msra.mxu1 %v4356_v35  ;;  %v6476_v12 = vld [vmem:[#allocation2 + $0x854] sm:$0xf0]  ;;  %v4261_v14 = vld [vmem:[#allocation2 + $0xd8] sm:$0xf0]  ;;  %v6986_v15 = vpack.c.bf16 %v117_v10, %v117_v10  ;;  %v6281_v16 = vld [vmem:[#allocation2 + $0x244] sm:$0xf] }
  0x3d   :  { %1901 = vmatpush.bf16.msra.mxu2 %v4548_v36  ;;  %v4453_v17 = vld [vmem:[#allocation2 + $0x258] sm:$0xf0]  ;;  %v115_v19 = vld [vmem:[%s7157_s0 + $0x8] sm:$0xff]  ;;  %v5220_v20 = vor.u32 %v6476_v12, %v5219_v7  ;;  %v4264_v21 = vor.u32 %v6233_v13, %v4261_v14  ;;  %v5003_v22 = vld [vmem:[#allocation2 + $0x690] sm:$0xf] }
  0x3e   :  { %1914 = vmatpush.bf16.msra.mxu3 %v4740_v39  ;;  %1876 = vmatmul.bf16.vlgmr.msra.gmra.mxu0 %v6981_v9  ;;  %v6422_v23 = vld [vmem:[#allocation2 + $0x6a4] sm:$0xf0]  ;;  %v5195_v24 = vld [vmem:[#allocation2 + $0x810] sm:$0xf]  ;;  %v6994_v25 = vpack.c.bf16 %v115_v19, %v115_v19  ;;  %v4456_v26 = vor.u32 %v6281_v16, %v4453_v17  ;;  %v6227_v28 = vld [vmem:[#allocation2 + $0x94] sm:$0xf] }
  0x3f   :  { %1920 = vmatpush.bf16.msrb.mxu0 %v5100_v40  ;;  %v6470_v27 = vld [vmem:[#allocation2 + $0x824] sm:$0xf0]  ;;  %v4237_v29 = vld [vmem:[#allocation2 + $0xa8] sm:$0xf0]  ;;  %v6275_v30 = vld [vmem:[#allocation2 + $0x214] sm:$0xf]  ;;  %v5004_v32 = vor.u32 %v6422_v23, %v5003_v22 }
  0x40   :  { %1933 = vmatpush.bf16.msrb.mxu1 %v5292_v41  ;;  %1902 = vmatmul.bf16.vlgmr.msra.gmra.mxu2 %v6979_v8  ;;  %v4429_v31 = vld [vmem:[#allocation2 + $0x228] sm:$0xf0]  ;;  %v5196_v33 = vor.u32 %v6470_v27, %v5195_v24  ;;  %v4240_v34 = vor.u32 %v6227_v28, %v4237_v29  ;;  %v4979_v35 = vld [vmem:[#allocation2 + $0x660] sm:$0xf]  ;;  %v6416_v36 = vld [vmem:[#allocation2 + $0x674] sm:$0xf0] }
  0x41   :  { %1946 = vmatpush.bf16.msrb.mxu2 %v4336_v42  ;;  %1915 = vmatmul.bf16.vlgmr.msra.gmra.mxu3 %v6986_v15  ;;  %v5171_v37 = vld [vmem:[#allocation2 + $0x7e0] sm:$0xf]  ;;  %v4432_v38 = vor.u32 %v6275_v30, %v4429_v31  ;;  %v6464_v39 = vld [vmem:[#allocation2 + $0x7f4] sm:$0xf0]  ;;  %v6221_v40 = vld [vmem:[#allocation2 + $0x64] sm:$0xf]  ;;  %v4980_v44 = vor.u32 %v6416_v36, %v4979_v35 }
  0x42   :  { %1959 = vmatpush.bf16.msrb.mxu3 %v4528_v46  ;;  %1889 = vmatmul.bf16.vlgmr.msra.gmra.mxu1 %v6994_v25  ;;  %v4213_v41 = vld [vmem:[#allocation2 + $0x78] sm:$0xf0]  ;;  %v6269_v42 = vld [vmem:[#allocation2 + $0x1e4] sm:$0xf]  ;;  %v5172_v45 = vor.u32 %v6464_v39, %v5171_v37  ;;  %v4955_v47 = vld [vmem:[#allocation2 + $0x630] sm:$0xf] }
  0x43   :  { %1921 = vmatpush.bf16.msrb.mxu0 %v5076_v52  ;;  %v4405_v43 = vld [vmem:[#allocation2 + $0x1f8] sm:$0xf0]  ;;  %v4216_v46 = vor.u32 %v6221_v40, %v4213_v41  ;;  %v6410_v48 = vld [vmem:[#allocation2 + $0x644] sm:$0xf0]  ;;  %v5147_v49 = vld [vmem:[#allocation2 + $0x7b0] sm:$0xf] }
  0x44   :  { %1934 = vmatpush.bf16.msrb.mxu1 %v5268_v54  ;;  %v4408_v50 = vor.u32 %v6269_v42, %v4405_v43  ;;  %v6458_v51 = vld [vmem:[#allocation2 + $0x7c4] sm:$0xf0]  ;;  %v6215_v52 = vld [vmem:[#allocation2 + $0x34] sm:$0xf]  ;;  %v4189_v53 = vld [vmem:[#allocation2 + $0x48] sm:$0xf0]  ;;  %v4956_v56 = vor.u32 %v6410_v48, %v4955_v47 }
  0x45   :  { %1947 = vmatpush.bf16.msrb.mxu2 %v4312_v55  ;;  %v6263_v54 = vld [vmem:[#allocation2 + $0x1b4] sm:$0xf]  ;;  %v4381_v55 = vld [vmem:[#allocation2 + $0x1c8] sm:$0xf0]  ;;  %v4931_v57 = vld [vmem:[#allocation2 + $0x600] sm:$0xf]  ;;  %v4192_v60 = vor.u32 %v6215_v52, %v4189_v53 }
  0x46   :  { %1960 = vmatpush.bf16.msrb.mxu3 %v4504_v59  ;;  %v6404_v58 = vld [vmem:[#allocation2 + $0x614] sm:$0xf0]  ;;  %v5148_v59 = vor.u32 %v6458_v51, %v5147_v49  ;;  %v5123_v61 = vld [vmem:[#allocation2 + $0x780] sm:$0xf]  ;;  %v6209_v63 = vld [vmem:[#allocation2 + $0x4] sm:$0xf] }
  0x47   :  { %1922 = vmatpush.bf16.msrb.mxu0 %v5052_v0  ;;  %v6452_v62 = vld [vmem:[#allocation2 + $0x794] sm:$0xf0]  ;;  %v4384_v0 = vor.u32 %v6263_v54, %v4381_v55  ;;  %v6257_v2 = vld [vmem:[#allocation2 + $0x184] sm:$0xf]  ;;  %v4357_v3 = vld [vmem:[#allocation2 + $0x198] sm:$0xf0]  ;;  %v4932_v7 = vor.u32 %v6404_v58, %v4931_v57 }
  0x48   :  { %1935 = vmatpush.bf16.msrb.mxu1 %v5244_v1  ;;  %v4165_v1 = vld [vmem:[#allocation2 + $0x18] sm:$0xf0]  ;;  %v6347_v4 = vld [vmem:[#allocation2 + $0x454] sm:$0xf]  ;;  %v4909_v10 = vld [vmem:[#allocation2 + $0x5e8] sm:$0xf0]  ;;  %v5124_v13 = vor.u32 %v6452_v62, %v5123_v61  ;;  %v4360_v19 = vor.u32 %v6257_v2, %v4357_v3 }
  0x49   :  { %1948 = vmatpush.bf16.msrb.mxu2 %v4288_v5  ;;  %v4717_v5 = vld [vmem:[#allocation2 + $0x468] sm:$0xf0]  ;;  %v6395_v6 = vld [vmem:[#allocation2 + $0x5d4] sm:$0xf]  ;;  %v4168_v14 = vor.u32 %v6209_v63, %v4165_v1  ;;  %v6341_v24 = vld [vmem:[#allocation2 + $0x424] sm:$0xf] }
  0x4a   :  { %1961 = vmatpush.bf16.msrb.mxu3 %v4480_v11  ;;  %v6443_v11 = vld [vmem:[#allocation2 + $0x754] sm:$0xf]  ;;  %v5101_v12 = vld [vmem:[#allocation2 + $0x768] sm:$0xf0]  ;;  %v4912_v22 = vor.u32 %v6395_v6, %v4909_v10  ;;  %v6389_v27 = vld [vmem:[#allocation2 + $0x5a4] sm:$0xf] }
  0x4b   :  { %1923 = vmatpush.bf16.msrb.mxu0 %v5028_v18  ;;  %v6491_v16 = vld [vmem:[#allocation2 + $0x8d4] sm:$0xf]  ;;  %v5293_v17 = vld [vmem:[#allocation2 + $0x8e8] sm:$0xf0]  ;;  %v118_v18 = vld [vmem:[%s7157_s0 + $0x20] sm:$0xff]  ;;  %v5104_v23 = vor.u32 %v6443_v11, %v5101_v12 }
  0x4c   :  { %1936 = vmatpush.bf16.msrb.mxu1 %v5220_v20  ;;  %v4720_v20 = vor.u32 %v6347_v4, %v4717_v5  ;;  %v5296_v28 = vor.u32 %v6491_v16, %v5293_v17  ;;  %v4885_v29 = vld [vmem:[#allocation2 + $0x5b8] sm:$0xf0]  ;;  %v6437_v30 = vld [vmem:[#allocation2 + $0x724] sm:$0xf]  ;;  %v6335_v39 = vld [vmem:[#allocation2 + $0x3f4] sm:$0xf] }
  0x4d   :  { %1949 = vmatpush.bf16.msrb.mxu2 %v4264_v21  ;;  %v119_v21 = vld [vmem:[%s7157_s0 + $0x28] sm:$0xff]  ;;  %v5077_v31 = vld [vmem:[#allocation2 + $0x738] sm:$0xf0]  ;;  %v4888_v37 = vor.u32 %v6389_v27, %v4885_v29  ;;  %v6383_v41 = vld [vmem:[#allocation2 + $0x574] sm:$0xf] }
  0x4e   :  { %1962 = vmatpush.bf16.msrb.mxu3 %v4456_v26  ;;  %v4693_v26 = vld [vmem:[#allocation2 + $0x438] sm:$0xf0]  ;;  %v7005_v35 = vpack.c.bf16 %v119_v21, %v119_v21  ;;  %v4669_v40 = vld [vmem:[#allocation2 + $0x408] sm:$0xf0]  ;;  %v6329_v51 = vld [vmem:[#allocation2 + $0x3c4] sm:$0xf] }
  0x4f   :  { %1924 = vmatpush.bf16.msrb.mxu0 %v5004_v32  ;;  %v7003_v32 = vpack.c.bf16 %v118_v18, %v118_v18  ;;  %v4696_v36 = vor.u32 %v6341_v24, %v4693_v26  ;;  %v4861_v43 = vld [vmem:[#allocation2 + $0x588] sm:$0xf0]  ;;  %v4672_v48 = vor.u32 %v6335_v39, %v4669_v40  ;;  %v4645_v52 = vld [vmem:[#allocation2 + $0x3d8] sm:$0xf0]  ;;  %v6377_v53 = vld [vmem:[#allocation2 + $0x544] sm:$0xf] }
  0x50   :  { %1937 = vmatpush.bf16.msrb.mxu1 %v5196_v33  ;;  %v6485_v33 = vld [vmem:[#allocation2 + $0x8a4] sm:$0xf]  ;;  %v5245_v47 = vld [vmem:[#allocation2 + $0x888] sm:$0xf0]  ;;  %v4864_v49 = vor.u32 %v6383_v41, %v4861_v43  ;;  %v4837_v55 = vld [vmem:[#allocation2 + $0x558] sm:$0xf0] }
  0x51   :  { %1950 = vmatpush.bf16.msrb.mxu2 %v4240_v34  ;;  %v5269_v34 = vld [vmem:[#allocation2 + $0x8b8] sm:$0xf0]  ;;  %v6473_v58 = vld [vmem:[#allocation2 + $0x844] sm:$0xf]  ;;  %v4840_v61 = vor.u32 %v6377_v53, %v4837_v55  ;;  %v6323_v63 = vld [vmem:[#allocation2 + $0x394] sm:$0xf] }
  0x52   :  { %1963 = vmatpush.bf16.msrb.mxu3 %v4432_v38  ;;  %v5080_v38 = vor.u32 %v6437_v30, %v5077_v31  ;;  %v5272_v42 = vor.u32 %v6485_v33, %v5269_v34  ;;  %v5029_v57 = vld [vmem:[#allocation2 + $0x6d8] sm:$0xf0]  ;;  %v6371_v1 = vld [vmem:[#allocation2 + $0x514] sm:$0xf]  ;;  %v4813_v3 = vld [vmem:[#allocation2 + $0x528] sm:$0xf0] }
  0x53   :  { %1925 = vmatpush.bf16.msrb.mxu0 %v4980_v44  ;;  %v6431_v44 = vld [vmem:[#allocation2 + $0x6f4] sm:$0xf]  ;;  %v5005_v5 = vld [vmem:[#allocation2 + $0x6a8] sm:$0xf0]  ;;  %v4816_v11 = vor.u32 %v6371_v1, %v4813_v3  ;;  %v6365_v16 = vld [vmem:[#allocation2 + $0x4e4] sm:$0xf] }
  0x54   :  { %1938 = vmatpush.bf16.msrb.mxu1 %v5172_v45  ;;  %v5053_v45 = vld [vmem:[#allocation2 + $0x708] sm:$0xf0]  ;;  %v6419_v4 = vld [vmem:[#allocation2 + $0x694] sm:$0xf]  ;;  %v4789_v18 = vld [vmem:[#allocation2 + $0x4f8] sm:$0xf0] }
  0x55   :  { %1951 = vmatpush.bf16.msrb.mxu2 %v4216_v46  ;;  %v6479_v46 = vld [vmem:[#allocation2 + $0x874] sm:$0xf]  ;;  %v5008_v12 = vor.u32 %v6419_v4, %v5005_v5  ;;  %v6461_v21 = vld [vmem:[#allocation2 + $0x7e4] sm:$0xf]  ;;  %v4792_v24 = vor.u32 %v6365_v16, %v4789_v18  ;;  %v4765_v31 = vld [vmem:[#allocation2 + $0x4c8] sm:$0xf0] }
  0x56   :  { %1964 = vmatpush.bf16.msrb.mxu3 %v4408_v50  ;;  %v5056_v50 = vor.u32 %v6431_v44, %v5053_v45  ;;  %v5248_v54 = vor.u32 %v6479_v46, %v5245_v47  ;;  %v6467_v6 = vld [vmem:[#allocation2 + $0x814] sm:$0xf]  ;;  %v4957_v34 = vld [vmem:[#allocation2 + $0x648] sm:$0xf0]  ;;  %v6305_v39 = vld [vmem:[#allocation2 + $0x304] sm:$0xf] }
  0x57   :  { %1926 = vmatpush.bf16.msrb.mxu0 %v4956_v56  ;;  %v6425_v56 = vld [vmem:[#allocation2 + $0x6c4] sm:$0xf]  ;;  %v6311_v27 = vld [vmem:[#allocation2 + $0x334] sm:$0xf]  ;;  %v4549_v40 = vld [vmem:[#allocation2 + $0x318] sm:$0xf0] }
  0x58   :  { %1939 = vmatpush.bf16.msrb.mxu1 %v5148_v59  ;;  %v5221_v59 = vld [vmem:[#allocation2 + $0x858] sm:$0xf0]  ;;  %v5032_v62 = vor.u32 %v6425_v56, %v5029_v57  ;;  %v6359_v29 = vld [vmem:[#allocation2 + $0x4b4] sm:$0xf]  ;;  %v6353_v43 = vld [vmem:[#allocation2 + $0x484] sm:$0xf]  ;;  %v4552_v53 = vor.u32 %v6305_v39, %v4549_v40 }
  0x59   :  { %1952 = vmatpush.bf16.msrb.mxu2 %v4192_v60  ;;  %v4648_v60 = vor.u32 %v6329_v51, %v4645_v52  ;;  %v5224_v2 = vor.u32 %v6473_v58, %v5221_v59  ;;  %v6407_v33 = vld [vmem:[#allocation2 + $0x634] sm:$0xf]  ;;  %v4768_v41 = vor.u32 %v6359_v29, %v4765_v31  ;;  %v4741_v44 = vld [vmem:[#allocation2 + $0x498] sm:$0xf0]  ;;  %v6401_v45 = vld [vmem:[#allocation2 + $0x604] sm:$0xf] }
  0x5a   :  { %1965 = vmatpush.bf16.msrb.mxu3 %v4384_v0  ;;  %v4621_v0 = vld [vmem:[#allocation2 + $0x3a8] sm:$0xf0]  ;;  %v4933_v47 = vld [vmem:[#allocation2 + $0x618] sm:$0xf0]  ;;  %v6255_v51 = vld [vmem:[#allocation2 + $0x16c] sm:$0xf0]  ;;  %v4744_v57 = vor.u32 %v6353_v43, %v4741_v44 }
  0x5b   :  { %1927 = vmatpush.bf16.msrb.mxu0 %v4932_v7  ;;  %v5197_v7 = vld [vmem:[#allocation2 + $0x828] sm:$0xf0]  ;;  %v4624_v10 = vor.u32 %v6323_v63, %v4621_v0  ;;  %v4531_v52 = vld [vmem:[#allocation2 + $0x2d8] sm:$0xf]  ;;  %v6351_v56 = vld [vmem:[#allocation2 + $0x46c] sm:$0xf0]  ;;  %v4936_v58 = vor.u32 %v6401_v45, %v4933_v47 }
  0x5c   :  { %1940 = vmatpush.bf16.msrb.mxu1 %v5124_v13  ;;  %v6317_v13 = vld [vmem:[#allocation2 + $0x364] sm:$0xf]  ;;  %v5200_v17 = vor.u32 %v6467_v6, %v5197_v7  ;;  %v4723_v55 = vld [vmem:[#allocation2 + $0x458] sm:$0xf]  ;;  %v4315_v1 = vld [vmem:[#allocation2 + $0x128] sm:$0xf] }
  0x5d   :  { %1953 = vmatpush.bf16.msrb.mxu2 %v4168_v14  ;;  %v4597_v14 = vld [vmem:[#allocation2 + $0x378] sm:$0xf0]  ;;  %v4915_v59 = vld [vmem:[#allocation2 + $0x5d8] sm:$0xf]  ;;  %v4724_v0 = vor.u32 %v6351_v56, %v4723_v55  ;;  %v4507_v3 = vld [vmem:[#allocation2 + $0x2a8] sm:$0xf] }
  0x5e   :  { %1966 = vmatpush.bf16.msrb.mxu3 %v4360_v19  ;;  %1928 = vmatmul.bf16.vlgmr.msrb.gmra.mxu0 %v7003_v32  ;;  %v6413_v19 = vld [vmem:[#allocation2 + $0x664] sm:$0xf]  ;;  %v6297_v5 = vld [vmem:[#allocation2 + $0x2bc] sm:$0xf0]  ;;  %v4699_v6 = vld [vmem:[#allocation2 + $0x428] sm:$0xf] }
  0x5f   :  { %1972 = vmatpush.bf16.msra.mxu0 %v4720_v20  ;;  %1941 = vmatmul.bf16.vlgmr.msrb.gmra.mxu1 %v7005_v35  ;;  %v4981_v20 = vld [vmem:[#allocation2 + $0x678] sm:$0xf0]  ;;  %v6345_v7 = vld [vmem:[#allocation2 + $0x43c] sm:$0xf0]  ;;  %v4291_v16 = vld [vmem:[#allocation2 + $0xf8] sm:$0xf] }
  0x60   :  { %1985 = vmatpush.bf16.msra.mxu1 %v4912_v22  ;;  %1954 = vmatmul.bf16.vlgmr.msrb.gmra.mxu2 %v6981_v9  ;;  %v5173_v22 = vld [vmem:[#allocation2 + $0x7f8] sm:$0xf0]  ;;  %v4984_v26 = vor.u32 %v6413_v19, %v4981_v20  ;;  %v4483_v18 = vld [vmem:[#allocation2 + $0x278] sm:$0xf]  ;;  %v6291_v20 = vld [vmem:[#allocation2 + $0x28c] sm:$0xf0] }
  0x61   :  { %1998 = vmatpush.bf16.msra.mxu2 %v5104_v23  ;;  %1967 = vmatmul.bf16.vlgmr.msrb.gmra.mxu3 %v6994_v25  ;;  %v4600_v23 = vor.u32 %v6317_v13, %v4597_v14  ;;  %v5176_v30 = vor.u32 %v6461_v21, %v5173_v22  ;;  %v4508_v13 = vor.u32 %v6297_v5, %v4507_v3  ;;  %v4675_v21 = vld [vmem:[#allocation2 + $0x3f8] sm:$0xf]  ;;  %v6339_v22 = vld [vmem:[#allocation2 + $0x40c] sm:$0xf0]  ;;  %v4267_v29 = vld [vmem:[#allocation2 + $0xc8] sm:$0xf] }
  0x62   :  { %2011 = vmatpush.bf16.msra.mxu3 %v5296_v28  ;;  %v4573_v28 = vld [vmem:[#allocation2 + $0x348] sm:$0xf0]  ;;  %v4700_v14 = vor.u32 %v6345_v7, %v4699_v6  ;;  %v4459_v31 = vld [vmem:[#allocation2 + $0x248] sm:$0xf]  ;;  %v6381_v39 = vld [vmem:[#allocation2 + $0x55c] sm:$0xf0] }
  0x63   :  { %1973 = vmatpush.bf16.msra.mxu0 %v4696_v36  ;;  %v6455_v36 = vld [vmem:[#allocation2 + $0x7b4] sm:$0xf]  ;;  %v4243_v43 = vld [vmem:[#allocation2 + $0x98] sm:$0xf]  ;;  %v6231_v44 = vld [vmem:[#allocation2 + $0xac] sm:$0xf0] }
  0x64   :  { %1986 = vmatpush.bf16.msra.mxu1 %v4888_v37  ;;  %v5149_v37 = vld [vmem:[#allocation2 + $0x7c8] sm:$0xf0]  ;;  %v4435_v45 = vld [vmem:[#allocation2 + $0x218] sm:$0xf]  ;;  %v6279_v47 = vld [vmem:[#allocation2 + $0x22c] sm:$0xf0] }
  0x65   :  { %1999 = vmatpush.bf16.msra.mxu2 %v5080_v38  ;;  %v4576_v38 = vor.u32 %v6311_v27, %v4573_v28  ;;  %v5152_v46 = vor.u32 %v6455_v36, %v5149_v37  ;;  %v4484_v27 = vor.u32 %v6291_v20, %v4483_v18  ;;  %v4676_v28 = vor.u32 %v6339_v22, %v4675_v21  ;;  %v4651_v36 = vld [vmem:[#allocation2 + $0x3c8] sm:$0xf]  ;;  %v6333_v37 = vld [vmem:[#allocation2 + $0x3dc] sm:$0xf0]  ;;  %v4195_v3 = vld [vmem:[#allocation2 + $0x38] sm:$0xf] }
  0x66   :  { %2012 = vmatpush.bf16.msra.mxu3 %v5272_v42  ;;  %v4960_v42 = vor.u32 %v6407_v33, %v4957_v34  ;;  %v6285_v34 = vld [vmem:[#allocation2 + $0x25c] sm:$0xf0]  ;;  %v4219_v55 = vld [vmem:[#allocation2 + $0x68] sm:$0xf]  ;;  %v4387_v5 = vld [vmem:[#allocation2 + $0x1b8] sm:$0xf] }
  0x67   :  { %1974 = vmatpush.bf16.msra.mxu0 %v4672_v48  ;;  %v6449_v48 = vld [vmem:[#allocation2 + $0x784] sm:$0xf]  ;;  %v6225_v56 = vld [vmem:[#allocation2 + $0x7c] sm:$0xf0]  ;;  %v6267_v7 = vld [vmem:[#allocation2 + $0x1cc] sm:$0xf0] }
  0x68   :  { %1987 = vmatpush.bf16.msra.mxu1 %v4864_v49  ;;  %v5125_v49 = vld [vmem:[#allocation2 + $0x798] sm:$0xf0]  ;;  %v4388_v18 = vor.u32 %v6267_v7, %v4387_v5  ;;  %v4363_v20 = vld [vmem:[#allocation2 + $0x188] sm:$0xf]  ;;  %v6261_v21 = vld [vmem:[#allocation2 + $0x19c] sm:$0xf0] }
  0x69   :  { %2000 = vmatpush.bf16.msra.mxu2 %v5056_v50  ;;  %v4339_v50 = vld [vmem:[#allocation2 + $0x158] sm:$0xf]  ;;  %v4555_v22 = vld [vmem:[#allocation2 + $0x308] sm:$0xf] }
  0x6a   :  { %2013 = vmatpush.bf16.msra.mxu3 %v5248_v54  ;;  %v6303_v54 = vld [vmem:[#allocation2 + $0x2ec] sm:$0xf0]  ;;  %v5035_v5 = vld [vmem:[#allocation2 + $0x6c8] sm:$0xf] }
  0x6b   :  { %1975 = vmatpush.bf16.msra.mxu0 %v4648_v60  ;;  %v6399_v60 = vld [vmem:[#allocation2 + $0x5ec] sm:$0xf0]  ;;  %v4532_v63 = vor.u32 %v6303_v54, %v4531_v52  ;;  %v4244_v52 = vor.u32 %v6231_v44, %v4243_v43  ;;  %v5227_v7 = vld [vmem:[#allocation2 + $0x848] sm:$0xf] }
  0x6c   :  { %1988 = vmatpush.bf16.msra.mxu1 %v4840_v61  ;;  %v5128_v61 = vor.u32 %v6449_v48, %v5125_v49  ;;  %v4916_v4 = vor.u32 %v6399_v60, %v4915_v59  ;;  %v4627_v48 = vld [vmem:[#allocation2 + $0x398] sm:$0xf]  ;;  %v6327_v49 = vld [vmem:[#allocation2 + $0x3ac] sm:$0xf0]  ;;  %v6273_v59 = vld [vmem:[#allocation2 + $0x1fc] sm:$0xf0] }
  0x6d   :  { %2001 = vmatpush.bf16.msra.mxu2 %v5032_v62  ;;  %v4340_v62 = vor.u32 %v6255_v51, %v4339_v50  ;;  %v4819_v50 = vld [vmem:[#allocation2 + $0x518] sm:$0xf]  ;;  %v6375_v51 = vld [vmem:[#allocation2 + $0x52c] sm:$0xf0]  ;;  %v4628_v54 = vor.u32 %v6327_v49, %v4627_v48  ;;  %v4603_v60 = vld [vmem:[#allocation2 + $0x368] sm:$0xf] }
  0x6e   :  { %2014 = vmatpush.bf16.msra.mxu3 %v5224_v2  ;;  %v6249_v2 = vld [vmem:[#allocation2 + $0x13c] sm:$0xf0] }
  0x6f   :  { %1976 = vmatpush.bf16.msra.mxu0 %v4624_v10  ;;  %v4891_v10 = vld [vmem:[#allocation2 + $0x5a8] sm:$0xf]  ;;  %v6489_v49 = vld [vmem:[#allocation2 + $0x8bc] sm:$0xf0] }
  0x70   :  { %1989 = vmatpush.bf16.msra.mxu1 %v4816_v11  ;;  %v6393_v11 = vld [vmem:[#allocation2 + $0x5bc] sm:$0xf0] }
  0x71   :  { %2002 = vmatpush.bf16.msra.mxu2 %v5008_v12  ;;  %v4316_v12 = vor.u32 %v6249_v2, %v4315_v1  ;;  %v4892_v19 = vor.u32 %v6393_v11, %v4891_v10  ;;  %v4579_v10 = vld [vmem:[#allocation2 + $0x338] sm:$0xf]  ;;  %v6315_v11 = vld [vmem:[#allocation2 + $0x34c] sm:$0xf0] }
  0x72   :  { %2015 = vmatpush.bf16.msra.mxu3 %v5200_v17  ;;  %v6243_v17 = vld [vmem:[#allocation2 + $0x10c] sm:$0xf0] }
  0x73   :  { %1977 = vmatpush.bf16.msra.mxu0 %v4600_v23  ;;  %v4867_v23 = vld [vmem:[#allocation2 + $0x578] sm:$0xf] }
  0x74   :  { %1990 = vmatpush.bf16.msra.mxu1 %v4792_v24  ;;  %v6387_v24 = vld [vmem:[#allocation2 + $0x58c] sm:$0xf0] }
  0x75   :  { %2003 = vmatpush.bf16.msra.mxu2 %v4984_v26  ;;  %v4292_v26 = vor.u32 %v6243_v17, %v4291_v16  ;;  %v4868_v33 = vor.u32 %v6387_v24, %v4867_v23  ;;  %v4171_v16 = vld [vmem:[#allocation2 + $0x8] sm:$0xf]  ;;  %v6213_v17 = vld [vmem:[#allocation2 + $0x1c] sm:$0xf0] }
  0x76   :  { %2016 = vmatpush.bf16.msra.mxu3 %v5176_v30  ;;  %v6237_v30 = vld [vmem:[#allocation2 + $0xdc] sm:$0xf0] }
  0x77   :  { %1978 = vmatpush.bf16.msra.mxu0 %v4576_v38  ;;  %v4843_v38 = vld [vmem:[#allocation2 + $0x548] sm:$0xf]  ;;  %v4268_v40 = vor.u32 %v6237_v30, %v4267_v29  ;;  %v6309_v24 = vld [vmem:[#allocation2 + $0x31c] sm:$0xf0]  ;;  %v6447_v29 = vld [vmem:[#allocation2 + $0x76c] sm:$0xf0] }
  0x78   :  { %1991 = vmatpush.bf16.msra.mxu1 %v4768_v41  ;;  %v4460_v41 = vor.u32 %v6285_v34, %v4459_v31  ;;  %v5299_v30 = vld [vmem:[#allocation2 + $0x8d8] sm:$0xf]  ;;  %v4172_v31 = vor.u32 %v6213_v17, %v4171_v16  ;;  %v6252_v34 = vld [vmem:[#allocation2 + $0x15c] sm:$0xf]  ;;  %v4461_v16 = vld [vmem:[#allocation2 + $0x260] sm:$0xf0] }
  0x79   :  { %2004 = vmatpush.bf16.msra.mxu2 %v4960_v42  ;;  %v4652_v42 = vor.u32 %v6333_v37, %v4651_v36  ;;  %v4341_v36 = vld [vmem:[#allocation2 + $0x170] sm:$0xf0]  ;;  %v4364_v37 = vor.u32 %v6261_v21, %v4363_v20  ;;  %v5011_v20 = vld [vmem:[#allocation2 + $0x698] sm:$0xf]  ;;  %v6423_v21 = vld [vmem:[#allocation2 + $0x6ac] sm:$0xf0] }
  0x7a   :  { %2017 = vmatpush.bf16.msra.mxu3 %v5152_v46  ;;  %v4844_v46 = vor.u32 %v6381_v39, %v4843_v38  ;;  %v4556_v38 = vor.u32 %v6309_v24, %v4555_v22  ;;  %v6300_v39 = vld [vmem:[#allocation2 + $0x2dc] sm:$0xf]  ;;  %v4344_v44 = vor.u32 %v6252_v34, %v4341_v36  ;;  %v5203_v22 = vld [vmem:[#allocation2 + $0x818] sm:$0xf]  ;;  %v6471_v24 = vld [vmem:[#allocation2 + $0x82c] sm:$0xf0] }
  0x7b   :  { %1979 = vmatpush.bf16.msra.mxu0 %v4552_v53  ;;  %v4436_v53 = vor.u32 %v6279_v47, %v4435_v45  ;;  %v5083_v45 = vld [vmem:[#allocation2 + $0x728] sm:$0xf]  ;;  %v6417_v36 = vld [vmem:[#allocation2 + $0x67c] sm:$0xf0] }
  0x7c   :  { %1992 = vmatpush.bf16.msra.mxu1 %v4744_v57  ;;  %v4411_v57 = vld [vmem:[#allocation2 + $0x1e8] sm:$0xf] }
  0x7d   :  { %2005 = vmatpush.bf16.msra.mxu2 %v4936_v58  ;;  %v4820_v58 = vor.u32 %v6375_v51, %v4819_v50  ;;  %v4412_v1 = vor.u32 %v6273_v59, %v4411_v57  ;;  %v5275_v47 = vld [vmem:[#allocation2 + $0x8a8] sm:$0xf]  ;;  %v6246_v50 = vld [vmem:[#allocation2 + $0x12c] sm:$0xf]  ;;  %v4317_v51 = vld [vmem:[#allocation2 + $0x140] sm:$0xf0] }
  0x7e   :  { %2018 = vmatpush.bf16.msra.mxu3 %v5128_v61  ;;  %1980 = vmatmul.bf16.vlgmr.msra.gmra.mxu0 %v6979_v8  ;;  %v6321_v61 = vld [vmem:[#allocation2 + $0x37c] sm:$0xf0]  ;;  %v5059_v57 = vld [vmem:[#allocation2 + $0x6f8] sm:$0xf]  ;;  %v4987_v34 = vld [vmem:[#allocation2 + $0x668] sm:$0xf] }
  0x7f   :  { %2024 = vmatpush.bf16.msrb.mxu0 %v4340_v62  ;;  %1993 = vmatmul.bf16.vlgmr.msra.gmra.mxu1 %v6986_v15  ;;  %v4795_v62 = vld [vmem:[#allocation2 + $0x4e8] sm:$0xf]  ;;  %v4604_v2 = vor.u32 %v6321_v61, %v4603_v60  ;;  %v5251_v59 = vld [vmem:[#allocation2 + $0x878] sm:$0xf]  ;;  %v6483_v61 = vld [vmem:[#allocation2 + $0x88c] sm:$0xf0] }
  0x80   :  { %2037 = vmatpush.bf16.msrb.mxu1 %v4532_v63  ;;  %2006 = vmatmul.bf16.vlgmr.msra.gmra.mxu2 %v7003_v32  ;;  %v6369_v63 = vld [vmem:[#allocation2 + $0x4fc] sm:$0xf0] }
  0x81   :  { %2050 = vmatpush.bf16.msrb.mxu2 %v4724_v0  ;;  %2019 = vmatmul.bf16.vlgmr.msra.gmra.mxu3 %v7005_v35  ;;  %v4220_v0 = vor.u32 %v6225_v56, %v4219_v55  ;;  %v4796_v6 = vor.u32 %v6369_v63, %v4795_v62  ;;  %v5276_v55 = vor.u32 %v6489_v49, %v5275_v47  ;;  %v6240_v62 = vld [vmem:[#allocation2 + $0xfc] sm:$0xf]  ;;  %v4293_v63 = vld [vmem:[#allocation2 + $0x110] sm:$0xf0]  ;;  %v4963_v47 = vld [vmem:[#allocation2 + $0x638] sm:$0xf] }
  0x82   :  { %2063 = vmatpush.bf16.msrb.mxu3 %v4916_v4  ;;  %v6219_v4 = vld [vmem:[#allocation2 + $0x4c] sm:$0xf0]  ;;  %v4320_v56 = vor.u32 %v6246_v50, %v4317_v51  ;;  %v5155_v49 = vld [vmem:[#allocation2 + $0x7b8] sm:$0xf] }
  0x83   :  { %2025 = vmatpush.bf16.msrb.mxu0 %v4316_v12  ;;  %v4771_v12 = vld [vmem:[#allocation2 + $0x4b8] sm:$0xf]  ;;  %v6459_v51 = vld [vmem:[#allocation2 + $0x7cc] sm:$0xf0] }
  0x84   :  { %2038 = vmatpush.bf16.msrb.mxu1 %v4508_v13  ;;  %v6363_v13 = vld [vmem:[#allocation2 + $0x4cc] sm:$0xf0] }
  0x85   :  { %2051 = vmatpush.bf16.msrb.mxu2 %v4700_v14  ;;  %v4196_v14 = vor.u32 %v6219_v4, %v4195_v3  ;;  %v4772_v23 = vor.u32 %v6363_v13, %v4771_v12  ;;  %v5252_v3 = vor.u32 %v6483_v61, %v5251_v59  ;;  %v4296_v4 = vor.u32 %v6240_v62, %v4293_v63  ;;  %v6234_v12 = vld [vmem:[#allocation2 + $0xcc] sm:$0xf]  ;;  %v4269_v13 = vld [vmem:[#allocation2 + $0xe0] sm:$0xf0]  ;;  %v5131_v61 = vld [vmem:[#allocation2 + $0x788] sm:$0xf] }
  0x86   :  { %2064 = vmatpush.bf16.msrb.mxu3 %v4892_v19  ;;  %v4580_v19 = vor.u32 %v6315_v11, %v4579_v10  ;;  %v6477_v11 = vld [vmem:[#allocation2 + $0x85c] sm:$0xf0]  ;;  %v5156_v59 = vor.u32 %v6459_v51, %v5155_v49  ;;  %v6210_v63 = vld [vmem:[#allocation2 + $0xc] sm:$0xf] }
  0x87   :  { %2026 = vmatpush.bf16.msrb.mxu0 %v4292_v26  ;;  %v4747_v26 = vld [vmem:[#allocation2 + $0x488] sm:$0xf]  ;;  %v6453_v62 = vld [vmem:[#allocation2 + $0x79c] sm:$0xf0]  ;;  %v6378_v51 = vld [vmem:[#allocation2 + $0x54c] sm:$0xf] }
  0x88   :  { %2039 = vmatpush.bf16.msrb.mxu1 %v4484_v27  ;;  %v6357_v27 = vld [vmem:[#allocation2 + $0x49c] sm:$0xf0] }
  0x89   :  { %2052 = vmatpush.bf16.msrb.mxu2 %v4676_v28  ;;  %v5107_v28 = vld [vmem:[#allocation2 + $0x758] sm:$0xf] }
  0x8a   :  { %2065 = vmatpush.bf16.msrb.mxu3 %v4868_v33  ;;  %v6495_v33 = vld [vmem:[#allocation2 + $0x8ec] sm:$0xf0] }
  0x8b   :  { %2027 = vmatpush.bf16.msrb.mxu0 %v4268_v40  ;;  %v4533_v40 = vld [vmem:[#allocation2 + $0x2f0] sm:$0xf0]  ;;  %v5300_v43 = vor.u32 %v6495_v33, %v5299_v30  ;;  %v5012_v30 = vor.u32 %v6423_v21, %v5011_v20 }
  0x8c   :  { %2040 = vmatpush.bf16.msrb.mxu1 %v4460_v41  ;;  %v4748_v41 = vor.u32 %v6357_v27, %v4747_v26  ;;  %v4536_v48 = vor.u32 %v6300_v39, %v4533_v40  ;;  %v6228_v26 = vld [vmem:[#allocation2 + $0x9c] sm:$0xf]  ;;  %v4245_v27 = vld [vmem:[#allocation2 + $0xb0] sm:$0xf0]  ;;  %v6465_v39 = vld [vmem:[#allocation2 + $0x7fc] sm:$0xf0] }
  0x8d   :  { %2053 = vmatpush.bf16.msrb.mxu2 %v4652_v42  ;;  %v5108_v42 = vor.u32 %v6447_v29, %v5107_v28  ;;  %v6276_v28 = vld [vmem:[#allocation2 + $0x21c] sm:$0xf]  ;;  %v4437_v29 = vld [vmem:[#allocation2 + $0x230] sm:$0xf0]  ;;  %v4248_v33 = vor.u32 %v6228_v26, %v4245_v27  ;;  %v6222_v40 = vld [vmem:[#allocation2 + $0x6c] sm:$0xf] }
  0x8e   :  { %2066 = vmatpush.bf16.msrb.mxu3 %v4844_v46  ;;  %v6441_v46 = vld [vmem:[#allocation2 + $0x73c] sm:$0xf0]  ;;  %v4893_v27 = vld [vmem:[#allocation2 + $0x5c0] sm:$0xf0] }
  0x8f   :  { %2028 = vmatpush.bf16.msrb.mxu0 %v4244_v52  ;;  %v6294_v52 = vld [vmem:[#allocation2 + $0x2ac] sm:$0xf] }
  0x90   :  { %2041 = vmatpush.bf16.msrb.mxu1 %v4436_v53  ;;  %v4509_v53 = vld [vmem:[#allocation2 + $0x2c0] sm:$0xf0] }
  0x91   :  { %2054 = vmatpush.bf16.msrb.mxu2 %v4628_v54  ;;  %v5084_v54 = vor.u32 %v6441_v46, %v5083_v45  ;;  %v4512_v60 = vor.u32 %v6294_v52, %v4509_v53  ;;  %v6216_v52 = vld [vmem:[#allocation2 + $0x3c] sm:$0xf]  ;;  %v4197_v53 = vld [vmem:[#allocation2 + $0x50] sm:$0xf0] }
  0x92   :  { %2067 = vmatpush.bf16.msrb.mxu3 %v4820_v58  ;;  %v6435_v58 = vld [vmem:[#allocation2 + $0x70c] sm:$0xf0] }
  0x93   :  { %2029 = vmatpush.bf16.msrb.mxu0 %v4220_v0  ;;  %v6288_v0 = vld [vmem:[#allocation2 + $0x27c] sm:$0xf] }
  0x94   :  { %2042 = vmatpush.bf16.msrb.mxu1 %v4412_v1  ;;  %v4485_v1 = vld [vmem:[#allocation2 + $0x290] sm:$0xf0] }
  0x95   :  { %2055 = vmatpush.bf16.msrb.mxu2 %v4604_v2  ;;  %v5060_v2 = vor.u32 %v6435_v58, %v5059_v57  ;;  %v4488_v10 = vor.u32 %v6288_v0, %v4485_v1  ;;  %v4939_v57 = vld [vmem:[#allocation2 + $0x608] sm:$0xf]  ;;  %v6405_v58 = vld [vmem:[#allocation2 + $0x61c] sm:$0xf0]  ;;  %v4173_v1 = vld [vmem:[#allocation2 + $0x20] sm:$0xf0] }
  0x96   :  { %2068 = vmatpush.bf16.msrb.mxu3 %v4796_v6  ;;  %v6429_v6 = vld [vmem:[#allocation2 + $0x6dc] sm:$0xf0] }
  0x97   :  { %2030 = vmatpush.bf16.msrb.mxu0 %v4196_v14  ;;  %v6282_v14 = vld [vmem:[#allocation2 + $0x24c] sm:$0xf]  ;;  %v5036_v17 = vor.u32 %v6429_v6, %v5035_v5  ;;  %v4725_v5 = vld [vmem:[#allocation2 + $0x470] sm:$0xf0]  ;;  %v6396_v6 = vld [vmem:[#allocation2 + $0x5dc] sm:$0xf] }
  0x98   :  { %2043 = vmatpush.bf16.msrb.mxu1 %v4388_v18  ;;  %v5228_v18 = vor.u32 %v6477_v11, %v5227_v7  ;;  %v4940_v7 = vor.u32 %v6405_v58, %v4939_v57  ;;  %v6444_v11 = vld [vmem:[#allocation2 + $0x75c] sm:$0xf]  ;;  %v6474_v57 = vld [vmem:[#allocation2 + $0x84c] sm:$0xf]  ;;  %v5229_v58 = vld [vmem:[#allocation2 + $0x860] sm:$0xf0] }
  0x99   :  { %2056 = vmatpush.bf16.msrb.mxu2 %v4580_v19  ;;  %v4272_v19 = vor.u32 %v6234_v12, %v4269_v13  ;;  %v5109_v12 = vld [vmem:[#allocation2 + $0x770] sm:$0xf0]  ;;  %v5132_v13 = vor.u32 %v6453_v62, %v5131_v61 }
  0x9a   :  { %2069 = vmatpush.bf16.msrb.mxu3 %v4772_v23  ;;  %v4464_v23 = vor.u32 %v6282_v14, %v4461_v16  ;;  %v4176_v14 = vor.u32 %v6210_v63, %v4173_v1  ;;  %v6492_v16 = vld [vmem:[#allocation2 + $0x8dc] sm:$0xf]  ;;  %v5112_v21 = vor.u32 %v6444_v11, %v5109_v12  ;;  %v4629_v63 = vld [vmem:[#allocation2 + $0x3b0] sm:$0xf0] }
  0x9b   :  { %2031 = vmatpush.bf16.msrb.mxu0 %v4172_v31  ;;  %v5204_v31 = vor.u32 %v6471_v24, %v5203_v22  ;;  %v6342_v22 = vld [vmem:[#allocation2 + $0x42c] sm:$0xf] }
  0x9c   :  { %2044 = vmatpush.bf16.msrb.mxu1 %v4364_v37  ;;  %v5179_v37 = vld [vmem:[#allocation2 + $0x7e8] sm:$0xf]  ;;  %v6390_v24 = vld [vmem:[#allocation2 + $0x5ac] sm:$0xf] }
  0x9d   :  { %2057 = vmatpush.bf16.msrb.mxu2 %v4556_v38  ;;  %v4440_v38 = vor.u32 %v6276_v28, %v4437_v29  ;;  %v5180_v45 = vor.u32 %v6465_v39, %v5179_v37  ;;  %v6438_v28 = vld [vmem:[#allocation2 + $0x72c] sm:$0xf]  ;;  %v5085_v29 = vld [vmem:[#allocation2 + $0x740] sm:$0xf0]  ;;  %v6336_v37 = vld [vmem:[#allocation2 + $0x3fc] sm:$0xf] }
  0x9e   :  { %2070 = vmatpush.bf16.msrb.mxu3 %v4748_v41  ;;  %2032 = vmatmul.bf16.vlgmr.msrb.gmra.mxu0 %v6981_v9  ;;  %v4221_v41 = vld [vmem:[#allocation2 + $0x80] sm:$0xf0]  ;;  %v6384_v39 = vld [vmem:[#allocation2 + $0x57c] sm:$0xf] }
  0x9f   :  { %2076 = vmatpush.bf16.msra.mxu0 %v5108_v42  ;;  %2045 = vmatmul.bf16.vlgmr.msrb.gmra.mxu1 %v6994_v25  ;;  %v6270_v42 = vld [vmem:[#allocation2 + $0x1ec] sm:$0xf]  ;;  %v4224_v46 = vor.u32 %v6222_v40, %v4221_v41  ;;  %v4869_v41 = vld [vmem:[#allocation2 + $0x590] sm:$0xf0] }
  0xa0   :  { %2089 = vmatpush.bf16.msra.mxu1 %v5300_v43  ;;  %2058 = vmatmul.bf16.vlgmr.msrb.gmra.mxu2 %v6979_v8  ;;  %v4413_v43 = vld [vmem:[#allocation2 + $0x200] sm:$0xf0] }
  0xa1   :  { %2102 = vmatpush.bf16.msra.mxu2 %v4344_v44  ;;  %2071 = vmatmul.bf16.vlgmr.msrb.gmra.mxu3 %v6986_v15  ;;  %v4988_v44 = vor.u32 %v6417_v36, %v4987_v34  ;;  %v4416_v50 = vor.u32 %v6270_v42, %v4413_v43  ;;  %v4896_v34 = vor.u32 %v6390_v24, %v4893_v27  ;;  %v6432_v42 = vld [vmem:[#allocation2 + $0x6fc] sm:$0xf]  ;;  %v5061_v43 = vld [vmem:[#allocation2 + $0x710] sm:$0xf0]  ;;  %v5181_v24 = vld [vmem:[#allocation2 + $0x800] sm:$0xf0] }
  0xa2   :  { %2115 = vmatpush.bf16.msra.mxu3 %v4536_v48  ;;  %v6411_v48 = vld [vmem:[#allocation2 + $0x64c] sm:$0xf0]  ;;  %v5088_v36 = vor.u32 %v6438_v28, %v5085_v29  ;;  %v5064_v49 = vor.u32 %v6432_v42, %v5061_v43  ;;  %v5157_v42 = vld [vmem:[#allocation2 + $0x7d0] sm:$0xf0] }
  0xa3   :  { %2077 = vmatpush.bf16.msra.mxu0 %v5084_v54  ;;  %v6264_v54 = vld [vmem:[#allocation2 + $0x1bc] sm:$0xf] }
  0xa4   :  { %2090 = vmatpush.bf16.msra.mxu1 %v5276_v55  ;;  %v4389_v55 = vld [vmem:[#allocation2 + $0x1d0] sm:$0xf0] }
  0xa5   :  { %2103 = vmatpush.bf16.msra.mxu2 %v4320_v56  ;;  %v4964_v56 = vor.u32 %v6411_v48, %v4963_v47  ;;  %v4392_v0 = vor.u32 %v6264_v54, %v4389_v55  ;;  %v6330_v47 = vld [vmem:[#allocation2 + $0x3cc] sm:$0xf]  ;;  %v4872_v48 = vor.u32 %v6384_v39, %v4869_v41  ;;  %v5037_v55 = vld [vmem:[#allocation2 + $0x6e0] sm:$0xf0]  ;;  %v4965_v39 = vld [vmem:[#allocation2 + $0x650] sm:$0xf0] }
  0xa6   :  { %2116 = vmatpush.bf16.msra.mxu3 %v4512_v60  ;;  %v4200_v60 = vor.u32 %v6216_v52, %v4197_v53  ;;  %v4845_v52 = vld [vmem:[#allocation2 + $0x560] sm:$0xf0]  ;;  %v6426_v54 = vld [vmem:[#allocation2 + $0x6cc] sm:$0xf]  ;;  %v6456_v41 = vld [vmem:[#allocation2 + $0x7bc] sm:$0xf] }
  0xa7   :  { %2078 = vmatpush.bf16.msra.mxu0 %v5060_v2  ;;  %v6258_v2 = vld [vmem:[#allocation2 + $0x18c] sm:$0xf]  ;;  %v4848_v61 = vor.u32 %v6378_v51, %v4845_v52  ;;  %v5040_v62 = vor.u32 %v6426_v54, %v5037_v55  ;;  %v4749_v52 = vld [vmem:[#allocation2 + $0x4a0] sm:$0xf0]  ;;  %v5160_v55 = vor.u32 %v6456_v41, %v5157_v42 }
  0xa8   :  { %2091 = vmatpush.bf16.msra.mxu1 %v5252_v3  ;;  %v4365_v3 = vld [vmem:[#allocation2 + $0x1a0] sm:$0xf0]  ;;  %v6354_v51 = vld [vmem:[#allocation2 + $0x48c] sm:$0xf] }
  0xa9   :  { %2104 = vmatpush.bf16.msra.mxu2 %v4296_v4  ;;  %v6348_v4 = vld [vmem:[#allocation2 + $0x45c] sm:$0xf] }
  0xaa   :  { %2117 = vmatpush.bf16.msra.mxu3 %v4488_v10  ;;  %v4917_v10 = vld [vmem:[#allocation2 + $0x5f0] sm:$0xf0] }
  0xab   :  { %2079 = vmatpush.bf16.msra.mxu0 %v5036_v17  ;;  %v5301_v17 = vld [vmem:[#allocation2 + $0x8f0] sm:$0xf0]  ;;  %v4920_v20 = vor.u32 %v6396_v6, %v4917_v10  ;;  %v6468_v6 = vld [vmem:[#allocation2 + $0x81c] sm:$0xf] }
  0xac   :  { %2092 = vmatpush.bf16.msra.mxu1 %v5228_v18  ;;  %v4368_v18 = vor.u32 %v6258_v2, %v4365_v3  ;;  %v5304_v26 = vor.u32 %v6492_v16, %v5301_v17  ;;  %v5232_v2 = vor.u32 %v6474_v57, %v5229_v58  ;;  %v4821_v3 = vld [vmem:[#allocation2 + $0x530] sm:$0xf0]  ;;  %v4605_v16 = vld [vmem:[#allocation2 + $0x380] sm:$0xf0]  ;;  %v6366_v17 = vld [vmem:[#allocation2 + $0x4ec] sm:$0xf] }
  0xad   :  { %2105 = vmatpush.bf16.msra.mxu2 %v4272_v19  ;;  %v4728_v19 = vor.u32 %v6348_v4, %v4725_v5  ;;  %v6420_v4 = vld [vmem:[#allocation2 + $0x69c] sm:$0xf]  ;;  %v5013_v5 = vld [vmem:[#allocation2 + $0x6b0] sm:$0xf0]  ;;  %v4941_v57 = vld [vmem:[#allocation2 + $0x620] sm:$0xf0] }
  0xae   :  { %2118 = vmatpush.bf16.msra.mxu3 %v4464_v23  ;;  %v4701_v23 = vld [vmem:[#allocation2 + $0x440] sm:$0xf0]  ;;  %v6450_v58 = vld [vmem:[#allocation2 + $0x78c] sm:$0xf] }
  0xaf   :  { %2080 = vmatpush.bf16.msra.mxu0 %v5012_v30  ;;  %v6486_v30 = vld [vmem:[#allocation2 + $0x8ac] sm:$0xf] }
  0xb0   :  { %2093 = vmatpush.bf16.msra.mxu1 %v5204_v31  ;;  %v5277_v31 = vld [vmem:[#allocation2 + $0x8c0] sm:$0xf0] }
  0xb1   :  { %2106 = vmatpush.bf16.msra.mxu2 %v4248_v33  ;;  %v4704_v33 = vor.u32 %v6342_v22, %v4701_v23  ;;  %v5280_v40 = vor.u32 %v6486_v30, %v5277_v31  ;;  %v4989_v22 = vld [vmem:[#allocation2 + $0x680] sm:$0xf0]  ;;  %v6462_v23 = vld [vmem:[#allocation2 + $0x7ec] sm:$0xf]  ;;  %v6312_v30 = vld [vmem:[#allocation2 + $0x33c] sm:$0xf] }
  0xb2   :  { %2119 = vmatpush.bf16.msra.mxu3 %v4440_v38  ;;  %v4677_v38 = vld [vmem:[#allocation2 + $0x410] sm:$0xf0] }
  0xb3   :  { %2081 = vmatpush.bf16.msra.mxu0 %v4988_v44  ;;  %v6480_v44 = vld [vmem:[#allocation2 + $0x87c] sm:$0xf]  ;;  %v4581_v31 = vld [vmem:[#allocation2 + $0x350] sm:$0xf0] }
  0xb4   :  { %2094 = vmatpush.bf16.msra.mxu1 %v5180_v45  ;;  %v5253_v45 = vld [vmem:[#allocation2 + $0x890] sm:$0xf0] }
  0xb5   :  { %2107 = vmatpush.bf16.msra.mxu2 %v4224_v46  ;;  %v4680_v46 = vor.u32 %v6336_v37, %v4677_v38  ;;  %v5256_v53 = vor.u32 %v6480_v44, %v5253_v45  ;;  %v4773_v37 = vld [vmem:[#allocation2 + $0x4d0] sm:$0xf0]  ;;  %v6408_v38 = vld [vmem:[#allocation2 + $0x63c] sm:$0xf]  ;;  %v4584_v45 = vor.u32 %v6312_v30, %v4581_v31  ;;  %v4299_v30 = vld [vmem:[#allocation2 + $0x100] sm:$0xf] }
  0xb6   :  { %2120 = vmatpush.bf16.msra.mxu3 %v4416_v50  ;;  %v4653_v50 = vld [vmem:[#allocation2 + $0x3e0] sm:$0xf0]  ;;  %v6244_v31 = vld [vmem:[#allocation2 + $0x114] sm:$0xf0] }
  0xb7   :  { %2082 = vmatpush.bf16.msra.mxu0 %v4964_v56  ;;  %v7023_v56 = vld [vmem:[#allocation4] sm:$0x3f]  ;;  %v4300_v41 = vor.u32 %v6244_v31, %v4299_v30 }
  0xb8   :  { %2095 = vmatpush.bf16.msra.mxu1 %v5156_v59  ;;  %v4656_v59 = vor.u32 %v6330_v47, %v4653_v50  ;;  %v416_v1 = vperm.slane %v7023_v56, 0  ;;  %v4557_v47 = vld [vmem:[#allocation2 + $0x320] sm:$0xf0]  ;;  %v4968_v50 = vor.u32 %v6408_v38, %v4965_v39  ;;  %v6340_v38 = vld [vmem:[#allocation2 + $0x414] sm:$0xf0] }
  0xb9   :  { %2108 = vmatpush.bf16.msra.mxu2 %v4200_v60  ;;  %v6324_v60 = vld [vmem:[#allocation2 + $0x39c] sm:$0xf]  ;;  %v4875_v39 = vld [vmem:[#allocation2 + $0x580] sm:$0xf] }
  0xba   :  { %2121 = vmatpush.bf16.msra.mxu3 %v4392_v0  ;;  %v6372_v0 = vld [vmem:[#allocation2 + $0x51c] sm:$0xf]  ;;  %v4632_v10 = vor.u32 %v6324_v60, %v4629_v63  ;;  %v4347_v60 = vld [vmem:[#allocation2 + $0x160] sm:$0xf] }
  0xbb   :  { %2083 = vmatpush.bf16.msra.mxu0 %v4940_v7  ;;  %v5205_v7 = vld [vmem:[#allocation2 + $0x830] sm:$0xf0]  ;;  %v1877_v11 = vpop.f32.mrf.mxu0  ;;  %v4824_v12 = vor.u32 %v6372_v0, %v4821_v3  ;;  %v6304_v0 = vld [vmem:[#allocation2 + $0x2f4] sm:$0xf0]  ;;  %v4203_v31 = vld [vmem:[#allocation2 + $0x40] sm:$0xf] }
  0xbc   :  { %2096 = vmatpush.bf16.msra.mxu1 %v5132_v13  ;;  %v5016_v13 = vor.u32 %v6420_v4, %v5013_v5  ;;  %v4752_v4 = vor.u32 %v6354_v51, %v4749_v52  ;;  %v4851_v51 = vld [vmem:[#allocation2 + $0x550] sm:$0xf]  ;;  %v6382_v52 = vld [vmem:[#allocation2 + $0x564] sm:$0xf0] }
  0xbd   :  { %2109 = vmatpush.bf16.msra.mxu2 %v4176_v14  ;;  %v6318_v14 = vld [vmem:[#allocation2 + $0x36c] sm:$0xf] }
  0xbe   :  { %2122 = vmatpush.bf16.msra.mxu3 %v4368_v18  ;;  %2084 = vmatmul.bf16.vlgmr.msra.gmra.mxu0 %v7003_v32  ;;  %v1878_v18 = vadd.f32 %v1877_v11, %v416_v1  ;;  %v4731_v1 = vld [vmem:[#allocation2 + $0x460] sm:$0xf] }
  0xbf   :  { %2128 = vmatpush.bf16.msrb.mxu0 %v4728_v19  ;;  %2097 = vmatmul.bf16.vlgmr.msra.gmra.mxu1 %v7005_v35  ;;  %v5208_v19 = vor.u32 %v6468_v6, %v5205_v7  ;;  %v1890_v27 = vpop.f32.mrf.mxu1  ;;  %v4923_v6 = vld [vmem:[#allocation2 + $0x5e0] sm:$0xf]  ;;  %v6400_v7 = vld [vmem:[#allocation2 + $0x5f4] sm:$0xf0] }
  0xc0   :  { %2141 = vmatpush.bf16.msrb.mxu1 %v4920_v20  ;;  %2110 = vmatmul.bf16.vlgmr.msra.gmra.mxu2 %v6981_v9  ;;  %v4797_v20 = vld [vmem:[#allocation2 + $0x500] sm:$0xf0] }
  0xc1   :  { %2154 = vmatpush.bf16.msrb.mxu2 %v5112_v21  ;;  %2123 = vmatmul.bf16.vlgmr.msra.gmra.mxu3 %v6994_v25  ;;  %v6414_v21 = vld [vmem:[#allocation2 + $0x66c] sm:$0xf]  ;;  %v4800_v28 = vor.u32 %v6366_v17, %v4797_v20  ;;  %v6250_v17 = vld [vmem:[#allocation2 + $0x144] sm:$0xf0]  ;;  %v4924_v20 = vor.u32 %v6400_v7, %v4923_v6  ;;  %v6376_v6 = vld [vmem:[#allocation2 + $0x534] sm:$0xf0] }
  0xc2   :  { %2167 = vmatpush.bf16.msrb.mxu3 %v5304_v26  ;;  %v4608_v26 = vor.u32 %v6318_v14, %v4605_v16  ;;  %v4992_v29 = vor.u32 %v6414_v21, %v4989_v22  ;;  %v4323_v16 = vld [vmem:[#allocation2 + $0x130] sm:$0xf]  ;;  %v6298_v21 = vld [vmem:[#allocation2 + $0x2c4] sm:$0xf0]  ;;  %v417_v7 = vperm.slane %v7023_v56, 1 }
  0xc3   :  { %2129 = vmatpush.bf16.msrb.mxu0 %v4704_v33  ;;  %v6360_v33 = vld [vmem:[#allocation2 + $0x4bc] sm:$0xf]  ;;  %v4707_v22 = vld [vmem:[#allocation2 + $0x430] sm:$0xf] }
  0xc4   :  { %2142 = vmatpush.bf16.msrb.mxu1 %v4896_v34  ;;  %v1891_v34 = vadd.f32 %v1890_v27, %v1878_v18  ;;  %v1916_v44 = vpop.f32.mrf.mxu3  ;;  %v4515_v18 = vld [vmem:[#allocation2 + $0x2b0] sm:$0xf]  ;;  %v4324_v27 = vor.u32 %v6250_v17, %v4323_v16  ;;  %v6274_v17 = vld [vmem:[#allocation2 + $0x204] sm:$0xf0] }
  0xc5   :  { %2155 = vmatpush.bf16.msrb.mxu2 %v5088_v36  ;;  %v5184_v36 = vor.u32 %v6462_v23, %v5181_v24  ;;  %v6346_v23 = vld [vmem:[#allocation2 + $0x444] sm:$0xf0]  ;;  %v4899_v24 = vld [vmem:[#allocation2 + $0x5b0] sm:$0xf] }
  0xc6   :  { %2168 = vmatpush.bf16.msrb.mxu3 %v5280_v40  ;;  %v1903_v40 = vpop.f32.mrf.mxu2 }
  0xc7   :  { %2130 = vmatpush.bf16.msrb.mxu0 %v4680_v46  ;;  %v1904_v43 = vadd.f32 %v1903_v40, %v1891_v34  ;;  %v6306_v46 = vld [vmem:[#allocation2 + $0x30c] sm:$0xf]  ;;  %v1892_v3 = vpop.f32.mrf.mxu1  ;;  %v6388_v40 = vld [vmem:[#allocation2 + $0x594] sm:$0xf0] }
  0xc8   :  { %2143 = vmatpush.bf16.msrb.mxu1 %v4872_v48  ;;  %v1879_v48 = vpop.f32.mrf.mxu0  ;;  %v4560_v63 = vor.u32 %v6306_v46, %v4557_v47  ;;  %v4467_v46 = vld [vmem:[#allocation2 + $0x250] sm:$0xf]  ;;  %v4876_v47 = vor.u32 %v6388_v40, %v4875_v39  ;;  %v6328_v3 = vld [vmem:[#allocation2 + $0x3b4] sm:$0xf0]  ;;  %v4587_v39 = vld [vmem:[#allocation2 + $0x340] sm:$0xf] }
  0xc9   :  { %2156 = vmatpush.bf16.msrb.mxu2 %v5064_v49  ;;  %v4776_v49 = vor.u32 %v6360_v33, %v4773_v37  ;;  %v7026_v54 = vadd.f32 %v1916_v44, %v1904_v43  ;;  %v4491_v33 = vld [vmem:[#allocation2 + $0x280] sm:$0xf]  ;;  %v4275_v44 = vld [vmem:[#allocation2 + $0xd0] sm:$0xf]  ;;  %v6286_v48 = vld [vmem:[#allocation2 + $0x264] sm:$0xf0] }
  0xca   :  { %2169 = vmatpush.bf16.msrb.mxu3 %v5256_v53  ;;  %v6402_v53 = vld [vmem:[#allocation2 + $0x60c] sm:$0xf]  ;;  %v4683_v37 = vld [vmem:[#allocation2 + $0x400] sm:$0xf]  ;;  %v6316_v40 = vld [vmem:[#allocation2 + $0x354] sm:$0xf0] }
  0xcb   :  { %2131 = vmatpush.bf16.msrb.mxu0 %v4656_v59  ;;  %v5133_v59 = vld [vmem:[#allocation2 + $0x7a0] sm:$0xf0]  ;;  %v4944_v5 = vor.u32 %v6402_v53, %v4941_v57  ;;  %v4684_v43 = vor.u32 %v6340_v38, %v4683_v37  ;;  %v6268_v38 = vld [vmem:[#allocation2 + $0x1d4] sm:$0xf0] }
  0xcc   :  { %2144 = vmatpush.bf16.msrb.mxu1 %v4848_v61  ;;  %v6256_v61 = vld [vmem:[#allocation2 + $0x174] sm:$0xf0] }
  0xcd   :  { %2157 = vmatpush.bf16.msrb.mxu2 %v5040_v62  ;;  %v4539_v62 = vld [vmem:[#allocation2 + $0x2e0] sm:$0xf]  ;;  %v4348_v11 = vor.u32 %v6256_v61, %v4347_v60 }
  0xce   :  { %2170 = vmatpush.bf16.msrb.mxu3 %v5232_v2  ;;  %v6352_v2 = vld [vmem:[#allocation2 + $0x474] sm:$0xf0]  ;;  %v4251_v61 = vld [vmem:[#allocation2 + $0xa0] sm:$0xf] }
  0xcf   :  { %2132 = vmatpush.bf16.msrb.mxu0 %v4632_v10  ;;  %v5136_v10 = vor.u32 %v6450_v58, %v5133_v59  ;;  %v4732_v14 = vor.u32 %v6352_v2, %v4731_v1  ;;  %v4468_v59 = vor.u32 %v6286_v48, %v4467_v46  ;;  %v6280_v1 = vld [vmem:[#allocation2 + $0x234] sm:$0xf0]  ;;  %v4635_v2 = vld [vmem:[#allocation2 + $0x3a0] sm:$0xf]  ;;  %v4371_v48 = vld [vmem:[#allocation2 + $0x190] sm:$0xf] }
  0xd0   :  { %2145 = vmatpush.bf16.msrb.mxu1 %v4824_v12  ;;  %v1905_v12 = vpop.f32.mrf.mxu2 }
  0xd1   :  { %2158 = vmatpush.bf16.msrb.mxu2 %v5016_v13  ;;  %v4540_v13 = vor.u32 %v6304_v0, %v4539_v62  ;;  %v6232_v62 = vld [vmem:[#allocation2 + $0xb4] sm:$0xf0]  ;;  %v4852_v0 = vor.u32 %v6382_v52, %v4851_v51  ;;  %v4227_v12 = vld [vmem:[#allocation2 + $0x70] sm:$0xf]  ;;  %v6310_v52 = vld [vmem:[#allocation2 + $0x324] sm:$0xf0] }
  0xd2   :  { %2171 = vmatpush.bf16.msrb.mxu3 %v5208_v19  ;;  %v1918_v19 = vpop.f32.mrf.mxu3 }
  0xd3   :  { %2133 = vmatpush.bf16.msrb.mxu0 %v4608_v26  ;;  %v6394_v26 = vld [vmem:[#allocation2 + $0x5c4] sm:$0xf0] }
  0xd4   :  { %2146 = vmatpush.bf16.msrb.mxu1 %v4800_v28  ;;  %v4516_v28 = vor.u32 %v6298_v21, %v4515_v18  ;;  %v4900_v34 = vor.u32 %v6394_v26, %v4899_v24  ;;  %v4611_v18 = vld [vmem:[#allocation2 + $0x370] sm:$0xf]  ;;  %v6322_v19 = vld [vmem:[#allocation2 + $0x384] sm:$0xf0] }
  0xd5   :  { %2159 = vmatpush.bf16.msrb.mxu2 %v4992_v29  ;;  %v4708_v29 = vor.u32 %v6346_v23, %v4707_v22  ;;  %v4803_v21 = vld [vmem:[#allocation2 + $0x4f0] sm:$0xf]  ;;  %v6370_v22 = vld [vmem:[#allocation2 + $0x504] sm:$0xf0]  ;;  %v4612_v30 = vor.u32 %v6322_v19, %v4611_v18  ;;  %v6247_v18 = vld [vmem:[#allocation2 + $0x134] sm:$0xf] }
  0xd6   :  { %2172 = vmatpush.bf16.msrb.mxu3 %v5184_v36  ;;  %v6292_v36 = vld [vmem:[#allocation2 + $0x294] sm:$0xf0]  ;;  %v4804_v37 = vor.u32 %v6370_v22, %v4803_v21  ;;  %v4325_v19 = vld [vmem:[#allocation2 + $0x148] sm:$0xf0] }
  0xd7   :  { %2134 = vmatpush.bf16.msrb.mxu0 %v4584_v45  ;;  %v4492_v42 = vor.u32 %v6292_v36, %v4491_v33  ;;  %v6238_v45 = vld [vmem:[#allocation2 + $0xe4] sm:$0xf0]  ;;  %v6220_v33 = vld [vmem:[#allocation2 + $0x54] sm:$0xf0]  ;;  %v4517_v21 = vld [vmem:[#allocation2 + $0x2c8] sm:$0xf0] }
  0xd8   :  { %2147 = vmatpush.bf16.msrb.mxu1 %v4776_v49  ;;  %v4659_v49 = vld [vmem:[#allocation2 + $0x3d0] sm:$0xf] }
  0xd9   :  { %2160 = vmatpush.bf16.msrb.mxu2 %v4968_v50  ;;  %v6334_v50 = vld [vmem:[#allocation2 + $0x3e4] sm:$0xf0] }
  0xda   :  { %2173 = vmatpush.bf16.msrb.mxu3 %v5160_v55  ;;  %v4276_v55 = vor.u32 %v6238_v45, %v4275_v44  ;;  %v4660_v60 = vor.u32 %v6334_v50, %v4659_v49  ;;  %v4179_v44 = vld [vmem:[#allocation2 + $0x10] sm:$0xf]  ;;  %v6214_v45 = vld [vmem:[#allocation2 + $0x24] sm:$0xf0] }
  0xdb   :  { %2135 = vmatpush.bf16.msrb.mxu0 %v4560_v63  ;;  %v1929_v53 = vpop.f32.mrf.mxu0  ;;  %v4443_v63 = vld [vmem:[#allocation2 + $0x220] sm:$0xf]  ;;  %v6262_v49 = vld [vmem:[#allocation2 + $0x1a4] sm:$0xf0]  ;;  %v4563_v50 = vld [vmem:[#allocation2 + $0x310] sm:$0xf] }
  0xdc   :  { %2148 = vmatpush.bf16.msrb.mxu1 %v4752_v4  ;;  %v1930_v57 = vadd.f32 %v1929_v53, %v7026_v54  ;;  %v1942_v58 = vpop.f32.mrf.mxu1  ;;  %v4252_v54 = vor.u32 %v6232_v62, %v4251_v61  ;;  %v4755_v53 = vld [vmem:[#allocation2 + $0x490] sm:$0xf]  ;;  %v4180_v62 = vor.u32 %v6214_v45, %v4179_v44  ;;  %v6478_v45 = vld [vmem:[#allocation2 + $0x864] sm:$0xf0] }
  0xdd   :  { %2161 = vmatpush.bf16.msrb.mxu2 %v4944_v5  ;;  %v4827_v5 = vld [vmem:[#allocation2 + $0x520] sm:$0xf] }
  0xde   :  { %2174 = vmatpush.bf16.msrb.mxu3 %v5136_v10  ;;  %2136 = vmatmul.bf16.vlgmr.msrb.gmra.mxu0 %v6979_v8  ;;  %v7033_v4 = vadd.f32 %v1942_v58, %v1930_v57  ;;  %v4444_v10 = vor.u32 %v6280_v1, %v4443_v63  ;;  %v4828_v16 = vor.u32 %v6376_v6, %v4827_v5  ;;  %v5115_v58 = vld [vmem:[#allocation2 + $0x760] sm:$0xf]  ;;  %v6496_v63 = vld [vmem:[#allocation2 + $0x8f4] sm:$0xf0]  ;;  %v4349_v1 = vld [vmem:[#allocation2 + $0x178] sm:$0xf0] }
  0xdf   :  { %2180 = vmatpush.bf16.msra.mxu0 %v4348_v11  ;;  %2149 = vmatmul.bf16.vlgmr.msrb.gmra.mxu1 %v6986_v15  ;;  %v4636_v11 = vor.u32 %v6328_v3, %v4635_v2  ;;  %v4372_v2 = vor.u32 %v6262_v49, %v4371_v48  ;;  %v4564_v3 = vor.u32 %v6310_v52, %v4563_v50  ;;  %v6301_v5 = vld [vmem:[#allocation2 + $0x2e4] sm:$0xf]  ;;  %v4541_v6 = vld [vmem:[#allocation2 + $0x2f8] sm:$0xf0]  ;;  %v6283_v48 = vld [vmem:[#allocation2 + $0x254] sm:$0xf] }
  0xe0   :  { %2193 = vmatpush.bf16.msra.mxu1 %v4540_v13  ;;  %2162 = vmatmul.bf16.vlgmr.msrb.gmra.mxu2 %v7003_v32  ;;  %v6226_v13 = vld [vmem:[#allocation2 + $0x84] sm:$0xf0]  ;;  %v4469_v49 = vld [vmem:[#allocation2 + $0x268] sm:$0xf0] }
  0xe1   :  { %2206 = vmatpush.bf16.msra.mxu2 %v4732_v14  ;;  %2175 = vmatmul.bf16.vlgmr.msrb.gmra.mxu3 %v7005_v35  ;;  %v4419_v14 = vld [vmem:[#allocation2 + $0x1f0] sm:$0xf] }
  0xe2   :  { %2219 = vmatpush.bf16.msra.mxu3 %v4924_v20 }
  0xe3   :  { %2181 = vmatpush.bf16.msra.mxu0 %v4324_v27  ;;  %v1955_v20 = vpop.f32.mrf.mxu2  ;;  %v1931_v26 = vpop.f32.mrf.mxu0  ;;  %v4228_v27 = vor.u32 %v6226_v13, %v4227_v12  ;;  %v5091_v12 = vld [vmem:[#allocation2 + $0x730] sm:$0xf]  ;;  %v6442_v13 = vld [vmem:[#allocation2 + $0x744] sm:$0xf0] }
  0xe4   :  { %2194 = vmatpush.bf16.msra.mxu1 %v4516_v28  ;;  %v1956_v23 = vadd.f32 %v1955_v20, %v417_v7  ;;  %v1968_v24 = vpop.f32.mrf.mxu3  ;;  %v1944_v28 = vpop.f32.mrf.mxu1  ;;  %v6295_v20 = vld [vmem:[#allocation2 + $0x2b4] sm:$0xf]  ;;  %v5092_v22 = vor.u32 %v6442_v13, %v5091_v12  ;;  %v5067_v26 = vld [vmem:[#allocation2 + $0x700] sm:$0xf]  ;;  %v6466_v13 = vld [vmem:[#allocation2 + $0x804] sm:$0xf0] }
  0xe5   :  { %2207 = vmatpush.bf16.msra.mxu2 %v4708_v29  ;;  %v4420_v29 = vor.u32 %v6274_v17, %v4419_v14  ;;  %v5283_v14 = vld [vmem:[#allocation2 + $0x8b0] sm:$0xf]  ;;  %v6490_v17 = vld [vmem:[#allocation2 + $0x8c4] sm:$0xf0]  ;;  %v5259_v28 = vld [vmem:[#allocation2 + $0x880] sm:$0xf] }
  0xe6   :  { %2220 = vmatpush.bf16.msra.mxu3 %v4900_v34  ;;  %v4395_v34 = vld [vmem:[#allocation2 + $0x1c0] sm:$0xf]  ;;  %v7036_v36 = vadd.f32 %v1968_v24, %v1956_v23  ;;  %v5284_v23 = vor.u32 %v6490_v17, %v5283_v14  ;;  %v4328_v24 = vor.u32 %v6247_v18, %v4325_v19  ;;  %v6223_v14 = vld [vmem:[#allocation2 + $0x74] sm:$0xf] }
  0xe7   :  { %2182 = vmatpush.bf16.msra.mxu0 %v4300_v41  ;;  %v4779_v41 = vld [vmem:[#allocation2 + $0x4c0] sm:$0xf]  ;;  %v4396_v46 = vor.u32 %v6268_v38, %v4395_v34  ;;  %v6289_v34 = vld [vmem:[#allocation2 + $0x284] sm:$0xf]  ;;  %v6271_v19 = vld [vmem:[#allocation2 + $0x1f4] sm:$0xf] }
  0xe8   :  { %2195 = vmatpush.bf16.msra.mxu1 %v4492_v42  ;;  %v6364_v42 = vld [vmem:[#allocation2 + $0x4d4] sm:$0xf0] }
  0xe9   :  { %2208 = vmatpush.bf16.msra.mxu2 %v4684_v43  ;;  %v4204_v43 = vor.u32 %v6220_v33, %v4203_v31  ;;  %v4780_v51 = vor.u32 %v6364_v42, %v4779_v41  ;;  %v6241_v31 = vld [vmem:[#allocation2 + $0x104] sm:$0xf]  ;;  %v4301_v33 = vld [vmem:[#allocation2 + $0x118] sm:$0xf0]  ;;  %v5043_v41 = vld [vmem:[#allocation2 + $0x6d0] sm:$0xf] }
  0xea   :  { %2221 = vmatpush.bf16.msra.mxu3 %v4876_v47  ;;  %v4588_v47 = vor.u32 %v6316_v40, %v4587_v39  ;;  %v4304_v40 = vor.u32 %v6241_v31, %v4301_v33  ;;  %v6430_v42 = vld [vmem:[#allocation2 + $0x6e4] sm:$0xf0]  ;;  %v6460_v33 = vld [vmem:[#allocation2 + $0x7d4] sm:$0xf0] }
  0xeb   :  { %2183 = vmatpush.bf16.msra.mxu0 %v4276_v55  ;;  %v6358_v55 = vld [vmem:[#allocation2 + $0x4a4] sm:$0xf0]  ;;  %v1957_v57 = vpop.f32.mrf.mxu2  ;;  %v5044_v50 = vor.u32 %v6430_v42, %v5043_v41  ;;  %v4947_v41 = vld [vmem:[#allocation2 + $0x610] sm:$0xf] }
  0xec   :  { %2196 = vmatpush.bf16.msra.mxu1 %v4468_v59  ;;  %v6448_v59 = vld [vmem:[#allocation2 + $0x774] sm:$0xf0]  ;;  %v1970_v61 = vpop.f32.mrf.mxu3  ;;  %v4756_v7 = vor.u32 %v6358_v55, %v4755_v53  ;;  %v5019_v55 = vld [vmem:[#allocation2 + $0x6a0] sm:$0xf]  ;;  %v6406_v42 = vld [vmem:[#allocation2 + $0x624] sm:$0xf0] }
  0xed   :  { %2209 = vmatpush.bf16.msra.mxu2 %v4660_v60  ;;  %v5307_v60 = vld [vmem:[#allocation2 + $0x8e0] sm:$0xf]  ;;  %v6424_v57 = vld [vmem:[#allocation2 + $0x6b4] sm:$0xf0]  ;;  %v4472_v61 = vor.u32 %v6283_v48, %v4469_v49 }
  0xee   :  { %2222 = vmatpush.bf16.msra.mxu3 %v4852_v0  ;;  %v6253_v0 = vld [vmem:[#allocation2 + $0x164] sm:$0xf] }
  0xef   :  { %2184 = vmatpush.bf16.msra.mxu0 %v4252_v54  ;;  %v5116_v54 = vor.u32 %v6448_v59, %v5115_v58  ;;  %v5211_v58 = vld [vmem:[#allocation2 + $0x820] sm:$0xf] }
  0xf0   :  { %2197 = vmatpush.bf16.msra.mxu1 %v4444_v10  ;;  %v5308_v10 = vor.u32 %v6496_v63, %v5307_v60  ;;  %v6229_v63 = vld [vmem:[#allocation2 + $0xa4] sm:$0xf] }
  0xf1   :  { %2210 = vmatpush.bf16.msra.mxu2 %v4636_v11  ;;  %v4352_v11 = vor.u32 %v6253_v0, %v4349_v1  ;;  %v4253_v0 = vld [vmem:[#allocation2 + $0xb8] sm:$0xf0]  ;;  %v6277_v1 = vld [vmem:[#allocation2 + $0x224] sm:$0xf] }
  0xf2   :  { %2223 = vmatpush.bf16.msra.mxu3 %v4828_v16  ;;  %v4544_v16 = vor.u32 %v6301_v5, %v4541_v6  ;;  %v5020_v5 = vor.u32 %v6424_v57, %v5019_v55  ;;  %v6349_v55 = vld [vmem:[#allocation2 + $0x464] sm:$0xf]  ;;  %v4733_v57 = vld [vmem:[#allocation2 + $0x478] sm:$0xf0] }
  0xf3   :  { %2185 = vmatpush.bf16.msra.mxu0 %v4228_v27  ;;  %v6436_v27 = vld [vmem:[#allocation2 + $0x714] sm:$0xf0] }
  0xf4   :  { %2198 = vmatpush.bf16.msra.mxu1 %v4420_v29  ;;  %v4520_v29 = vor.u32 %v6295_v20, %v4517_v21  ;;  %v5068_v38 = vor.u32 %v6436_v27, %v5067_v26  ;;  %v4421_v20 = vld [vmem:[#allocation2 + $0x208] sm:$0xf0]  ;;  %v4971_v27 = vld [vmem:[#allocation2 + $0x640] sm:$0xf] }
  0xf5   :  { %2211 = vmatpush.bf16.msra.mxu2 %v4612_v30  ;;  %v6484_v30 = vld [vmem:[#allocation2 + $0x894] sm:$0xf0]  ;;  %v4424_v31 = vor.u32 %v6271_v19, %v4421_v20 }
  0xf6   :  { %2224 = vmatpush.bf16.msra.mxu3 %v4804_v37  ;;  %v4493_v37 = vld [vmem:[#allocation2 + $0x298] sm:$0xf0]  ;;  %v5260_v39 = vor.u32 %v6484_v30, %v5259_v28  ;;  %v6412_v28 = vld [vmem:[#allocation2 + $0x654] sm:$0xf0] }
  0xf7   :  { %2186 = vmatpush.bf16.msra.mxu0 %v4204_v43  ;;  %v5235_v43 = vld [vmem:[#allocation2 + $0x850] sm:$0xf]  ;;  %v4496_v44 = vor.u32 %v6289_v34, %v4493_v37  ;;  %v6217_v34 = vld [vmem:[#allocation2 + $0x44] sm:$0xf]  ;;  %v4205_v37 = vld [vmem:[#allocation2 + $0x58] sm:$0xf0] }
  0xf8   :  { %2199 = vmatpush.bf16.msra.mxu1 %v4396_v46  ;;  %v6235_v46 = vld [vmem:[#allocation2 + $0xd4] sm:$0xf]  ;;  %v5236_v52 = vor.u32 %v6478_v45, %v5235_v43  ;;  %v5139_v45 = vld [vmem:[#allocation2 + $0x790] sm:$0xf] }
  0xf9   :  { %2212 = vmatpush.bf16.msra.mxu2 %v4588_v47  ;;  %v4277_v47 = vld [vmem:[#allocation2 + $0xe8] sm:$0xf0] }
  0xfa   :  { %2225 = vmatpush.bf16.msra.mxu3 %v4780_v51  ;;  %v4280_v53 = vor.u32 %v6235_v46, %v4277_v47  ;;  %v6454_v46 = vld [vmem:[#allocation2 + $0x7a4] sm:$0xf0]  ;;  %v6211_v47 = vld [vmem:[#allocation2 + $0x14] sm:$0xf] }
  0xfb   :  { %2187 = vmatpush.bf16.msra.mxu0 %v4180_v62  ;;  %v1981_v51 = vpop.f32.mrf.mxu0  ;;  %v6472_v62 = vld [vmem:[#allocation2 + $0x834] sm:$0xf0] }
  0xfc   :  { %2200 = vmatpush.bf16.msra.mxu1 %v4372_v2  ;;  %v1982_v59 = vadd.f32 %v1981_v51, %v7036_v36  ;;  %v1994_v60 = vpop.f32.mrf.mxu1  ;;  %v4445_v2 = vld [vmem:[#allocation2 + $0x238] sm:$0xf0]  ;;  %v5212_v6 = vor.u32 %v6472_v62, %v5211_v58  ;;  %v6259_v51 = vld [vmem:[#allocation2 + $0x194] sm:$0xf]  ;;  %v6397_v58 = vld [vmem:[#allocation2 + $0x5e4] sm:$0xf] }
  0xfd   :  { %2213 = vmatpush.bf16.msra.mxu2 %v4564_v3  ;;  %v4448_v36 = vor.u32 %v6277_v1, %v4445_v2  ;;  %v5117_v62 = vld [vmem:[#allocation2 + $0x778] sm:$0xf0]  ;;  %v6493_v1 = vld [vmem:[#allocation2 + $0x8e4] sm:$0xf] }
  0xfe   :  { %2226 = vmatpush.bf16.msra.mxu3 %v4756_v7  ;;  %2188 = vmatmul.bf16.vlgmr.msra.gmra.mxu0 %v6981_v9  ;;  %v1995_v3 = vadd.f32 %v1994_v60, %v1982_v59  ;;  %v4256_v7 = vor.u32 %v6229_v63, %v4253_v0  ;;  %v4948_v59 = vor.u32 %v6406_v42, %v4947_v41  ;;  %v4925_v60 = vld [vmem:[#allocation2 + $0x5f8] sm:$0xf0]  ;;  %v4853_v42 = vld [vmem:[#allocation2 + $0x568] sm:$0xf0] }
  0xff   :  { %2232 = vmatpush.bf16.msrb.mxu0 %v5116_v54  ;;  %2201 = vmatmul.bf16.vlgmr.msra.gmra.mxu1 %v6994_v25  ;;  %v4995_v54 = vld [vmem:[#allocation2 + $0x670] sm:$0xf]  ;;  %v5140_v63 = vor.u32 %v6454_v46, %v5139_v45  ;;  %v5309_v2 = vld [vmem:[#allocation2 + $0x8f8] sm:$0xf0]  ;;  %v6475_v45 = vld [vmem:[#allocation2 + $0x854] sm:$0xf] }
 0x100   :  { %2245 = vmatpush.bf16.msrb.mxu1 %v5308_v10  ;;  %2214 = vmatmul.bf16.vlgmr.msra.gmra.mxu2 %v6979_v8  ;;  %v6418_v10 = vld [vmem:[#allocation2 + $0x684] sm:$0xf0] }
 0x101   :  { %2258 = vmatpush.bf16.msrb.mxu2 %v4352_v11  ;;  %2227 = vmatmul.bf16.vlgmr.msra.gmra.mxu3 %v6986_v15  ;;  %v5187_v11 = vld [vmem:[#allocation2 + $0x7f0] sm:$0xf]  ;;  %v4996_v21 = vor.u32 %v6418_v10, %v4995_v54  ;;  %v6343_v54 = vld [vmem:[#allocation2 + $0x434] sm:$0xf]  ;;  %v4709_v10 = vld [vmem:[#allocation2 + $0x448] sm:$0xf0] }
 0x102   :  { %2271 = vmatpush.bf16.msrb.mxu3 %v4544_v16  ;;  %v4229_v16 = vld [vmem:[#allocation2 + $0x88] sm:$0xf0] }
 0x103   :  { %2233 = vmatpush.bf16.msrb.mxu0 %v5092_v22  ;;  %v2007_v12 = vpop.f32.mrf.mxu2  ;;  %v4232_v26 = vor.u32 %v6223_v14, %v4229_v16  ;;  %v5093_v14 = vld [vmem:[#allocation2 + $0x748] sm:$0xf0]  ;;  %v6487_v16 = vld [vmem:[#allocation2 + $0x8b4] sm:$0xf] }
 0x104   :  { %2246 = vmatpush.bf16.msrb.mxu1 %v5284_v23  ;;  %v2008_v17 = vadd.f32 %v2007_v12, %v1995_v3  ;;  %v2020_v18 = vpop.f32.mrf.mxu3  ;;  %v1983_v23 = vpop.f32.mrf.mxu0  ;;  %v5312_v12 = vor.u32 %v6493_v1, %v5309_v2  ;;  %v4613_v1 = vld [vmem:[#allocation2 + $0x388] sm:$0xf0]  ;;  %v6367_v2 = vld [vmem:[#allocation2 + $0x4f4] sm:$0xf] }
 0x105   :  { %2259 = vmatpush.bf16.msrb.mxu2 %v4328_v24  ;;  %v5188_v24 = vor.u32 %v6466_v13, %v5187_v11  ;;  %v1996_v30 = vpop.f32.mrf.mxu1  ;;  %v6391_v11 = vld [vmem:[#allocation2 + $0x5b4] sm:$0xf]  ;;  %v4685_v23 = vld [vmem:[#allocation2 + $0x418] sm:$0xf0] }
 0x106   :  { %2272 = vmatpush.bf16.msrb.mxu3 %v4520_v29  ;;  %v7043_v22 = vadd.f32 %v2020_v18, %v2008_v17  ;;  %v5163_v29 = vld [vmem:[#allocation2 + $0x7c0] sm:$0xf]  ;;  %v6439_v13 = vld [vmem:[#allocation2 + $0x734] sm:$0xf]  ;;  %v5285_v17 = vld [vmem:[#allocation2 + $0x8c8] sm:$0xf0]  ;;  %v4712_v18 = vor.u32 %v6343_v54, %v4709_v10 }
 0x107   :  { %2234 = vmatpush.bf16.msrb.mxu0 %v5068_v38  ;;  %v6265_v38 = vld [vmem:[#allocation2 + $0x1c4] sm:$0xf]  ;;  %v5164_v43 = vor.u32 %v6460_v33, %v5163_v29  ;;  %v5096_v20 = vor.u32 %v6439_v13, %v5093_v14  ;;  %v5069_v29 = vld [vmem:[#allocation2 + $0x718] sm:$0xf0]  ;;  %v6463_v10 = vld [vmem:[#allocation2 + $0x7f4] sm:$0xf] }
 0x108   :  { %2247 = vmatpush.bf16.msrb.mxu1 %v5260_v39  ;;  %v4397_v39 = vld [vmem:[#allocation2 + $0x1d8] sm:$0xf0]  ;;  %v6481_v30 = vld [vmem:[#allocation2 + $0x884] sm:$0xf] }
 0x109   :  { %2260 = vmatpush.bf16.msrb.mxu2 %v4304_v40  ;;  %v4972_v40 = vor.u32 %v6412_v28, %v4971_v27  ;;  %v4400_v49 = vor.u32 %v6265_v38, %v4397_v39  ;;  %v4877_v27 = vld [vmem:[#allocation2 + $0x598] sm:$0xf0]  ;;  %v6433_v28 = vld [vmem:[#allocation2 + $0x704] sm:$0xf]  ;;  %v6331_v38 = vld [vmem:[#allocation2 + $0x3d4] sm:$0xf] }
 0x10a   :  { %2273 = vmatpush.bf16.msrb.mxu3 %v4496_v44  ;;  %v4208_v44 = vor.u32 %v6217_v34, %v4205_v37  ;;  %v5072_v37 = vor.u32 %v6433_v28, %v5069_v29  ;;  %v4661_v39 = vld [vmem:[#allocation2 + $0x3e8] sm:$0xf0]  ;;  %v5165_v28 = vld [vmem:[#allocation2 + $0x7d8] sm:$0xf0] }
 0x10b   :  { %2235 = vmatpush.bf16.msrb.mxu0 %v5044_v50  ;;  %v2009_v48 = vpop.f32.mrf.mxu2  ;;  %v4181_v50 = vld [vmem:[#allocation2 + $0x28] sm:$0xf0] }
 0x10c   :  { %2248 = vmatpush.bf16.msrb.mxu1 %v5236_v52  ;;  %v4373_v52 = vld [vmem:[#allocation2 + $0x1a8] sm:$0xf0]  ;;  %v4184_v0 = vor.u32 %v6211_v47, %v4181_v50  ;;  %v4664_v47 = vor.u32 %v6331_v38, %v4661_v39  ;;  %v6325_v50 = vld [vmem:[#allocation2 + $0x3a4] sm:$0xf]  ;;  %v6403_v39 = vld [vmem:[#allocation2 + $0x614] sm:$0xf] }
 0x10d   :  { %2261 = vmatpush.bf16.msrb.mxu2 %v4280_v53  ;;  %v2022_v53 = vpop.f32.mrf.mxu3  ;;  %v4376_v3 = vor.u32 %v6259_v51, %v4373_v52  ;;  %v4637_v51 = vld [vmem:[#allocation2 + $0x3b8] sm:$0xf0]  ;;  %v6373_v52 = vld [vmem:[#allocation2 + $0x524] sm:$0xf]  ;;  %v4757_v38 = vld [vmem:[#allocation2 + $0x4a8] sm:$0xf0] }
 0x10e   :  { %2274 = vmatpush.bf16.msrb.mxu3 %v4472_v61  ;;  %v6445_v61 = vld [vmem:[#allocation2 + $0x764] sm:$0xf] }
 0x10f   :  { %2236 = vmatpush.bf16.msrb.mxu0 %v5020_v5  ;;  %v4736_v5 = vor.u32 %v6349_v55, %v4733_v57  ;;  %v4829_v55 = vld [vmem:[#allocation2 + $0x538] sm:$0xf0]  ;;  %v6421_v57 = vld [vmem:[#allocation2 + $0x6a4] sm:$0xf] }
 0x110   :  { %2249 = vmatpush.bf16.msrb.mxu1 %v5212_v6  ;;  %v4928_v6 = vor.u32 %v6397_v58, %v4925_v60  ;;  %v5021_v58 = vld [vmem:[#allocation2 + $0x6b8] sm:$0xf0] }
 0x111   :  { %2262 = vmatpush.bf16.msrb.mxu2 %v4256_v7  ;;  %v5120_v7 = vor.u32 %v6445_v61, %v5117_v62  ;;  %v5213_v60 = vld [vmem:[#allocation2 + $0x838] sm:$0xf0]  ;;  %v4640_v61 = vor.u32 %v6325_v50, %v4637_v51  ;;  %v4832_v62 = vor.u32 %v6373_v52, %v4829_v55  ;;  %v6559_v51 = vld [vmem:[#allocation6 + $0x1ec] sm:$0xf0]  ;;  %v5683_v52 = vld [vmem:[#allocation6 + $0x2e0] sm:$0xf] }
 0x112   :  { %2275 = vmatpush.bf16.msrb.mxu3 %v4448_v36  ;;  %v4901_v36 = vld [vmem:[#allocation2 + $0x5c8] sm:$0xf0] }
 0x113   :  { %2237 = vmatpush.bf16.msrb.mxu0 %v4996_v21  ;;  %v4904_v19 = vor.u32 %v6391_v11, %v4901_v36  ;;  %v6337_v21 = vld [vmem:[#allocation2 + $0x404] sm:$0xf]  ;;  %v5189_v11 = vld [vmem:[#allocation2 + $0x808] sm:$0xf0] }
 0x114   :  { %2250 = vmatpush.bf16.msrb.mxu1 %v5188_v24  ;;  %v6385_v24 = vld [vmem:[#allocation2 + $0x584] sm:$0xf]  ;;  %v4688_v33 = vor.u32 %v6337_v21, %v4685_v23  ;;  %v5192_v21 = vor.u32 %v6463_v10, %v5189_v11  ;;  %v4781_v23 = vld [vmem:[#allocation2 + $0x4d8] sm:$0xf0]  ;;  %v6519_v11 = vld [vmem:[#allocation6 + $0xac] sm:$0xf0] }
 0x115   :  { %2263 = vmatpush.bf16.msrb.mxu2 %v4232_v26  ;;  %v5288_v26 = vor.u32 %v6487_v16, %v5285_v17  ;;  %v4880_v34 = vor.u32 %v6385_v24, %v4877_v27  ;;  %v6409_v24 = vld [vmem:[#allocation2 + $0x644] sm:$0xf] }
 0x116   :  { %2276 = vmatpush.bf16.msrb.mxu3 %v4424_v31  ;;  %v5261_v31 = vld [vmem:[#allocation2 + $0x898] sm:$0xf0]  ;;  %v6457_v27 = vld [vmem:[#allocation2 + $0x7c4] sm:$0xf] }
 0x117   :  { %2238 = vmatpush.bf16.msrb.mxu0 %v4972_v40  ;;  %v6379_v40 = vld [vmem:[#allocation2 + $0x554] sm:$0xf]  ;;  %v5264_v41 = vor.u32 %v6481_v30, %v5261_v31  ;;  %v4565_v31 = vld [vmem:[#allocation2 + $0x328] sm:$0xf0]  ;;  %v5395_v10 = vld [vmem:[#allocation6 + $0xa0] sm:$0xf] }
 0x118   :  { %2251 = vmatpush.bf16.msrb.mxu1 %v5164_v43  ;;  %v6427_v43 = vld [vmem:[#allocation2 + $0x6d4] sm:$0xf] }
 0x119   :  { %2264 = vmatpush.bf16.msrb.mxu2 %v4208_v44  ;;  %v5045_v44 = vld [vmem:[#allocation2 + $0x6e8] sm:$0xf0]  ;;  %v6307_v30 = vld [vmem:[#allocation2 + $0x314] sm:$0xf] }
 0x11a   :  { %2277 = vmatpush.bf16.msrb.mxu3 %v4400_v49  ;;  %v5048_v49 = vor.u32 %v6427_v43, %v5045_v44  ;;  %v6451_v43 = vld [vmem:[#allocation2 + $0x794] sm:$0xf]  ;;  %v5141_v44 = vld [vmem:[#allocation2 + $0x7a8] sm:$0xf0]  ;;  %v4568_v50 = vor.u32 %v6307_v30, %v4565_v31 }
 0x11b   :  { %2239 = vmatpush.bf16.msrb.mxu0 %v4948_v59  ;;  %v7049_v46 = vpop.f32.mrf.mxu0  ;;  %v6469_v59 = vld [vmem:[#allocation2 + $0x824] sm:$0xf]  ;;  %v6615_v30 = vld [vmem:[#allocation6 + $0x3ac] sm:$0xf0] }
 0x11c   :  { %2252 = vmatpush.bf16.msrb.mxu1 %v5140_v63  ;;  %v7051_v48 = vpop.f32.mrf.mxu1  ;;  %v5024_v63 = vor.u32 %v6421_v57, %v5021_v58  ;;  %v5144_v58 = vor.u32 %v6451_v43, %v5141_v44  ;;  %v6547_v31 = vld [vmem:[#allocation6 + $0x18c] sm:$0xf0]  ;;  %v5491_v43 = vld [vmem:[#allocation6 + $0x160] sm:$0xf] }
 0x11d   :  { %2265 = vmatpush.bf16.msrb.mxu2 %v4184_v0  ;;  %v6319_v0 = vld [vmem:[#allocation2 + $0x374] sm:$0xf]  ;;  %v5763_v44 = vld [vmem:[#allocation6 + $0x380] sm:$0xf] }
 0x11e   :  { %2278 = vmatpush.bf16.msrb.mxu3 %v4376_v3  ;;  %2240 = vmatmul.bf16.vlgmr.msrb.gmra.mxu0 %v7003_v32  ;;  %v5216_v3 = vor.u32 %v6469_v59, %v5213_v60  ;;  %v4616_v13 = vor.u32 %v6319_v0, %v4613_v1  ;;  %v5411_v60 = vld [vmem:[#allocation6 + $0xc0] sm:$0xf] }
 0x11f   :  { %2284 = vmatpush.bf16.msra.mxu0 %v4736_v5  ;;  %2253 = vmatmul.bf16.vlgmr.msrb.gmra.mxu1 %v7005_v35  ;;  %v4805_v5 = vld [vmem:[#allocation2 + $0x508] sm:$0xf0]  ;;  %v5539_v0 = vld [vmem:[#allocation6 + $0x1c0] sm:$0xf] }
 0x120   :  { %2297 = vmatpush.bf16.msra.mxu1 %v4928_v6  ;;  %2266 = vmatmul.bf16.vlgmr.msrb.gmra.mxu2 %v6981_v9  ;;  %v5237_v9 = vld [vmem:[#allocation2 + $0x868] sm:$0xf0]  ;;  %v6415_v6 = vld [vmem:[#allocation2 + $0x674] sm:$0xf]  ;;  %v4808_v16 = vor.u32 %v6367_v2, %v4805_v5  ;;  %v5811_v1 = vld [vmem:[#allocation6 + $0x3e0] sm:$0xf] }
 0x121   :  { %2310 = vmatpush.bf16.msra.mxu2 %v5120_v7  ;;  %2279 = vmatmul.bf16.vlgmr.msrb.gmra.mxu3 %v6994_v25  ;;  %v4856_v25 = vor.u32 %v6379_v40, %v4853_v42  ;;  %v5240_v53 = vor.u32 %v6475_v45, %v5237_v9  ;;  %v4997_v7 = vld [vmem:[#allocation2 + $0x688] sm:$0xf0]  ;;  %v418_v40 = vperm.slane %v7023_v56, 2  ;;  %v5427_v9 = vld [vmem:[#allocation6 + $0xe0] sm:$0xf] }
 0x122   :  { %2323 = vmatpush.bf16.msra.mxu3 %v5312_v12  ;;  %v5000_v17 = vor.u32 %v6415_v6, %v4997_v7  ;;  %v4949_v42 = vld [vmem:[#allocation2 + $0x628] sm:$0xf0]  ;;  %v6623_v2 = vld [vmem:[#allocation6 + $0x3ec] sm:$0xf0]  ;;  %v5667_v5 = vld [vmem:[#allocation6 + $0x2c0] sm:$0xf] }
 0x123   :  { %2285 = vmatpush.bf16.msra.mxu0 %v4712_v18  ;;  %v7053_v54 = vpop.f32.mrf.mxu2  ;;  %v2035_v12 = vpop.f32.mrf.mxu0  ;;  %v6313_v18 = vld [vmem:[#allocation2 + $0x344] sm:$0xf]  ;;  %v4952_v57 = vor.u32 %v6403_v39, %v4949_v42  ;;  %v2034_v56 = vadd.f32 %v7049_v46, %v418_v40  ;;  %v6587_v6 = vld [vmem:[#allocation6 + $0x2cc] sm:$0xf0] }
 0x124   :  { %2298 = vmatpush.bf16.msra.mxu1 %v4904_v19  ;;  %v7055_v36 = vpop.f32.mrf.mxu3  ;;  %v2048_v14 = vpop.f32.mrf.mxu1  ;;  %v4589_v19 = vld [vmem:[#allocation2 + $0x358] sm:$0xf0]  ;;  %v5812_v12 = vor.u32 %v6623_v2, %v5811_v1 }
 0x125   :  { %2311 = vmatpush.bf16.msra.mxu2 %v5096_v20  ;;  %v6361_v20 = vld [vmem:[#allocation2 + $0x4c4] sm:$0xf]  ;;  %v4592_v29 = vor.u32 %v6313_v18, %v4589_v19  ;;  %v2047_v7 = vadd.f32 %v7051_v48, %v2034_v56  ;;  %v5668_v14 = vor.u32 %v6587_v6, %v5667_v5  ;;  %v6619_v18 = vld [vmem:[#allocation6 + $0x3cc] sm:$0xf0] }
 0x126   :  { %2324 = vmatpush.bf16.msra.mxu3 %v5288_v26  ;;  %v4973_v26 = vld [vmem:[#allocation2 + $0x658] sm:$0xf0]  ;;  %v6551_v19 = vld [vmem:[#allocation6 + $0x1ac] sm:$0xf0]  ;;  %v5747_v56 = vld [vmem:[#allocation6 + $0x360] sm:$0xf] }
 0x127   :  { %2286 = vmatpush.bf16.msra.mxu0 %v4688_v33  ;;  %v6355_v33 = vld [vmem:[#allocation2 + $0x494] sm:$0xf] }
 0x128   :  { %2299 = vmatpush.bf16.msra.mxu1 %v4880_v34  ;;  %v4784_v34 = vor.u32 %v6361_v20, %v4781_v23  ;;  %v4760_v55 = vor.u32 %v6355_v33, %v4757_v38  ;;  %v5651_v20 = vld [vmem:[#allocation6 + $0x2a0] sm:$0xf]  ;;  %v6583_v48 = vld [vmem:[#allocation6 + $0x2ac] sm:$0xf0]  ;;  %v5396_v23 = vor.u32 %v6519_v11, %v5395_v10 }
 0x129   :  { %2312 = vmatpush.bf16.msra.mxu2 %v5072_v37  ;;  %v4976_v37 = vor.u32 %v6409_v24, %v4973_v26  ;;  %v5379_v24 = vld [vmem:[#allocation6 + $0x80] sm:$0xf]  ;;  %v6515_v26 = vld [vmem:[#allocation6 + $0x8c] sm:$0xf0] }
 0x12a   :  { %2325 = vmatpush.bf16.msra.mxu3 %v5264_v41  ;;  %v5168_v41 = vor.u32 %v6457_v27, %v5165_v28  ;;  %v5652_v28 = vor.u32 %v6583_v48, %v5651_v20  ;;  %v5635_v33 = vld [vmem:[#allocation6 + $0x280] sm:$0xf]  ;;  %v6511_v38 = vld [vmem:[#allocation6 + $0x6c] sm:$0xf0] }
 0x12b   :  { %2287 = vmatpush.bf16.msra.mxu0 %v4664_v47  ;;  %v2061_v45 = vpop.f32.mrf.mxu2  ;;  %v6527_v47 = vld [vmem:[#allocation6 + $0xec] sm:$0xf0]  ;;  %v5459_v11 = vld [vmem:[#allocation6 + $0x120] sm:$0xf] }
 0x12c   :  { %2300 = vmatpush.bf16.msra.mxu1 %v4856_v25  ;;  %v5555_v25 = vld [vmem:[#allocation6 + $0x1e0] sm:$0xf]  ;;  %v5428_v59 = vor.u32 %v6527_v47, %v5427_v9  ;;  %v6611_v45 = vld [vmem:[#allocation6 + $0x38c] sm:$0xf0] }
 0x12d   :  { %2313 = vmatpush.bf16.msra.mxu2 %v5048_v49  ;;  %v2074_v49 = vpop.f32.mrf.mxu3  ;;  %v6543_v9 = vld [vmem:[#allocation6 + $0x16c] sm:$0xf0]  ;;  %v5619_v47 = vld [vmem:[#allocation6 + $0x260] sm:$0xf] }
 0x12e   :  { %2326 = vmatpush.bf16.msra.mxu3 %v5240_v53  ;;  %v6591_v53 = vld [vmem:[#allocation6 + $0x2ec] sm:$0xf0]  ;;  %v5443_v48 = vld [vmem:[#allocation6 + $0x100] sm:$0xf] }
 0x12f   :  { %2288 = vmatpush.bf16.msra.mxu0 %v4640_v61  ;;  %v6523_v61 = vld [vmem:[#allocation6 + $0xcc] sm:$0xf0] }
 0x130   :  { %2301 = vmatpush.bf16.msra.mxu1 %v4832_v62  ;;  %v5556_v62 = vor.u32 %v6559_v51, %v5555_v25  ;;  %v5412_v46 = vor.u32 %v6523_v61, %v5411_v60  ;;  %v6575_v25 = vld [vmem:[#allocation6 + $0x26c] sm:$0xf0]  ;;  %v5603_v60 = vld [vmem:[#allocation6 + $0x240] sm:$0xf] }
 0x131   :  { %2314 = vmatpush.bf16.msra.mxu2 %v5024_v63  ;;  %v5684_v63 = vor.u32 %v6591_v53, %v5683_v52  ;;  %v6507_v51 = vld [vmem:[#allocation6 + $0x4c] sm:$0xf0]  ;;  %v5764_v52 = vor.u32 %v6611_v45, %v5763_v44  ;;  %v5492_v53 = vor.u32 %v6543_v9, %v5491_v43  ;;  %v5699_v43 = vld [vmem:[#allocation6 + $0x300] sm:$0xf] }
 0x132   :  { %2327 = vmatpush.bf16.msra.mxu3 %v5216_v3  ;;  %v6555_v3 = vld [vmem:[#allocation6 + $0x1cc] sm:$0xf0] }
 0x133   :  { %2289 = vmatpush.bf16.msra.mxu0 %v4616_v13  ;;  %v5540_v13 = vor.u32 %v6555_v3, %v5539_v0  ;;  %v6571_v61 = vld [vmem:[#allocation6 + $0x24c] sm:$0xf0]  ;;  %v5331_v3 = vld [vmem:[#allocation6 + $0x20] sm:$0xf] }
 0x134   :  { %2302 = vmatpush.bf16.msra.mxu1 %v4808_v16  ;;  %v5523_v16 = vld [vmem:[#allocation6 + $0x1a0] sm:$0xf]  ;;  %v6503_v5 = vld [vmem:[#allocation6 + $0x2c] sm:$0xf0]  ;;  %v5604_v10 = vor.u32 %v6571_v61, %v5603_v60  ;;  %v5397_v60 = vld [vmem:[#allocation6 + $0xb0] sm:$0xf0] }
 0x135   :  { %2315 = vmatpush.bf16.msra.mxu2 %v5000_v17  ;;  %v5795_v17 = vld [vmem:[#allocation6 + $0x3c0] sm:$0xf]  ;;  %v6499_v20 = vld [vmem:[#allocation6 + $0xc] sm:$0xf0]  ;;  %v6553_v61 = vld [vmem:[#allocation6 + $0x1c4] sm:$0xf] }
 0x136   :  { %2328 = vmatpush.bf16.msra.mxu3 %v5192_v21  ;;  %v2060_v21 = vadd.f32 %v7053_v54, %v2047_v7  ;;  %v5796_v27 = vor.u32 %v6619_v18, %v5795_v17  ;;  %v5380_v54 = vor.u32 %v6515_v26, %v5379_v24  ;;  %v6567_v17 = vld [vmem:[#allocation6 + $0x22c] sm:$0xf0]  ;;  %v5332_v18 = vor.u32 %v6503_v5, %v5331_v3 }
 0x137   :  { %2290 = vmatpush.bf16.msra.mxu0 %v4592_v29  ;;  %v5779_v29 = vld [vmem:[#allocation6 + $0x3a0] sm:$0xf]  ;;  %v6531_v26 = vld [vmem:[#allocation6 + $0x10c] sm:$0xf0] }
 0x138   :  { %2303 = vmatpush.bf16.msra.mxu1 %v4784_v34  ;;  %v5780_v40 = vor.u32 %v6615_v30, %v5779_v29  ;;  %v6525_v29 = vld [vmem:[#allocation6 + $0xe4] sm:$0xf]  ;;  %v5429_v30 = vld [vmem:[#allocation6 + $0xf0] sm:$0xf0]  ;;  %v6595_v44 = vld [vmem:[#allocation6 + $0x30c] sm:$0xf0] }
 0x139   :  { %2316 = vmatpush.bf16.msra.mxu2 %v4976_v37  ;;  %v5363_v37 = vld [vmem:[#allocation6 + $0x60] sm:$0xf]  ;;  %v6647_v3 = vld [vmem:[#allocation6 + $0x4ac] sm:$0xf0] }
 0x13a   :  { %2329 = vmatpush.bf16.msra.mxu3 %v5168_v41 }
 0x13b   :  { %2291 = vmatpush.bf16.msra.mxu0 %v4568_v50  ;;  %v2085_v34 = vpop.f32.mrf.mxu0  ;;  %v5347_v50 = vld [vmem:[#allocation6 + $0x40] sm:$0xf] }
 0x13c   :  { %2304 = vmatpush.bf16.msra.mxu1 %v4760_v55  ;;  %v2098_v39 = vpop.f32.mrf.mxu1  ;;  %v5620_v55 = vor.u32 %v6575_v25, %v5619_v47  ;;  %v5348_v2 = vor.u32 %v6507_v51, %v5347_v50  ;;  %v5413_v47 = vld [vmem:[#allocation6 + $0xd0] sm:$0xf0]  ;;  %v6557_v25 = vld [vmem:[#allocation6 + $0x1e4] sm:$0xf]  ;;  %v5923_v50 = vld [vmem:[#allocation6 + $0x4c0] sm:$0xf] }
 0x13d   :  { %2317 = vmatpush.bf16.msra.mxu2 %v4952_v57  ;;  %v5475_v57 = vld [vmem:[#allocation6 + $0x140] sm:$0xf]  ;;  %v6651_v51 = vld [vmem:[#allocation6 + $0x4cc] sm:$0xf0] }
 0x13e   :  { %2330 = vmatpush.bf16.msra.mxu3 %v5144_v58  ;;  %2292 = vmatmul.bf16.vlgmr.msra.gmra.mxu0 %v6979_v8  ;;  %v5524_v8 = vor.u32 %v6551_v19, %v5523_v16  ;;  %v6607_v58 = vld [vmem:[#allocation6 + $0x36c] sm:$0xf0]  ;;  %v5587_v16 = vld [vmem:[#allocation6 + $0x220] sm:$0xf] }
 0x13f   :  { %3510 = vmatpush.bf16.msrb.mxu0 %v5428_v59  ;;  %2305 = vmatmul.bf16.vlgmr.msra.gmra.mxu1 %v6986_v15  ;;  %v5507_v15 = vld [vmem:[#allocation6 + $0x180] sm:$0xf]  ;;  %v6539_v59 = vld [vmem:[#allocation6 + $0x14c] sm:$0xf0]  ;;  %v5748_v6 = vor.u32 %v6607_v58, %v5747_v56  ;;  %v5588_v24 = vor.u32 %v6567_v17, %v5587_v16  ;;  %v6517_v56 = vld [vmem:[#allocation6 + $0xa4] sm:$0xf] }
 0x140   :  { %3523 = vmatpush.bf16.msrb.mxu1 %v5556_v62  ;;  %2318 = vmatmul.bf16.vlgmr.msra.gmra.mxu2 %v7003_v32  ;;  %v6579_v32 = vld [vmem:[#allocation6 + $0x28c] sm:$0xf0]  ;;  %v5508_v41 = vor.u32 %v6547_v31, %v5507_v15  ;;  %v5315_v19 = vld [vmem:[#allocation6] sm:$0xf]  ;;  %v5400_v5 = vor.u32 %v6517_v56, %v5397_v60  ;;  %v6653_v56 = vld [vmem:[#allocation6 + $0x4e4] sm:$0xf] }
 0x141   :  { %3536 = vmatpush.bf16.msrb.mxu2 %v5684_v63  ;;  %2331 = vmatmul.bf16.vlgmr.msra.gmra.mxu3 %v7005_v35  ;;  %v2073_v35 = vadd.f32 %v7055_v36, %v2060_v21  ;;  %v5636_v42 = vor.u32 %v6579_v32, %v5635_v33  ;;  %v5364_v36 = vor.u32 %v6511_v38, %v5363_v37  ;;  %v6563_v15 = vld [vmem:[#allocation6 + $0x20c] sm:$0xf0]  ;;  %v5939_v33 = vld [vmem:[#allocation6 + $0x4e0] sm:$0xf]  ;;  %v7072_v38 = vld [vmem:[#allocation4] sm:$0x3f] }
 0x142   :  { %3549 = vmatpush.bf16.msrb.mxu3 %v5812_v12  ;;  %v5731_v12 = vld [vmem:[#allocation6 + $0x340] sm:$0xf]  ;;  %v6655_v32 = vld [vmem:[#allocation6 + $0x4ec] sm:$0xf0] }
 0x143   :  { %3511 = vmatpush.bf16.msrb.mxu0 %v5412_v46  ;;  %v2086_v49 = vadd.f32 %v2085_v34, %v2073_v35  ;;  %v7066_v62 = vpop.f32.mrf.mxu2  ;;  %v2087_v1 = vpop.f32.mrf.mxu0  ;;  %v5476_v46 = vor.u32 %v6539_v59, %v5475_v57  ;;  %v5316_v35 = vor.u32 %v6499_v20, %v5315_v19  ;;  %v5940_v45 = vor.u32 %v6655_v32, %v5939_v33  ;;  %v5493_v33 = vld [vmem:[#allocation6 + $0x170] sm:$0xf0] }
 0x144   :  { %3524 = vmatpush.bf16.msrb.mxu1 %v5540_v13  ;;  %v7068_v0 = vpop.f32.mrf.mxu3  ;;  %v2100_v7 = vpop.f32.mrf.mxu1  ;;  %v6603_v13 = vld [vmem:[#allocation6 + $0x34c] sm:$0xf0]  ;;  %v5924_v1 = vor.u32 %v6651_v51, %v5923_v50  ;;  %v6497_v51 = vld [vmem:[#allocation6 + $0x4] sm:$0xf] }
 0x145   :  { %3537 = vmatpush.bf16.msrb.mxu2 %v5668_v14  ;;  %v2099_v63 = vadd.f32 %v2098_v39, %v2086_v49  ;;  %v6535_v14 = vld [vmem:[#allocation6 + $0x12c] sm:$0xf0]  ;;  %v5732_v21 = vor.u32 %v6603_v13, %v5731_v12  ;;  %v419_v39 = vperm.slane %v7072_v38, 3  ;;  %v5557_v49 = vld [vmem:[#allocation6 + $0x1f0] sm:$0xf0] }
 0x146   :  { %3550 = vmatpush.bf16.msrb.mxu3 %v5796_v27  ;;  %v5715_v27 = vld [vmem:[#allocation6 + $0x320] sm:$0xf]  ;;  %v5560_v58 = vor.u32 %v6557_v25, %v5557_v49  ;;  %v6631_v49 = vld [vmem:[#allocation6 + $0x42c] sm:$0xf0] }
 0x147   :  { %3512 = vmatpush.bf16.msrb.mxu0 %v5396_v23  ;;  %6734 = vtanh.f32 %v2099_v63  ;;  %v5460_v23 = vor.u32 %v6535_v14, %v5459_v11  ;;  %v2112_v59 = vadd.f32 %v7066_v62, %v419_v39  ;;  %v5541_v63 = vld [vmem:[#allocation6 + $0x1d0] sm:$0xf0]  ;;  %v5891_v13 = vld [vmem:[#allocation6 + $0x480] sm:$0xf]  ;;  %v6643_v14 = vld [vmem:[#allocation6 + $0x48c] sm:$0xf0] }
 0x148   :  { %3525 = vmatpush.bf16.msrb.mxu1 %v5524_v8  ;;  %6736 = vtanh.f32 %v7033_v4  ;;  %v6599_v8 = vld [vmem:[#allocation6 + $0x32c] sm:$0xf0]  ;;  %v5544_v7 = vor.u32 %v6553_v61, %v5541_v63  ;;  %v5525_v11 = vld [vmem:[#allocation6 + $0x1b0] sm:$0xf0]  ;;  %v5843_v25 = vld [vmem:[#allocation6 + $0x420] sm:$0xf] }
 0x149   :  { %3538 = vmatpush.bf16.msrb.mxu2 %v5652_v28  ;;  %6738 = vtanh.f32 %v7043_v22  ;;  %v5571_v28 = vld [vmem:[#allocation6 + $0x200] sm:$0xf]  ;;  %v5716_v34 = vor.u32 %v6599_v8, %v5715_v27  ;;  %v2125_v62 = vadd.f32 %v7068_v0, %v2112_v59  ;;  %v5892_v0 = vor.u32 %v6643_v14, %v5891_v13  ;;  %v6639_v27 = vld [vmem:[#allocation6 + $0x46c] sm:$0xf0]  ;;  %v5461_v59 = vld [vmem:[#allocation6 + $0x130] sm:$0xf0] }
 0x14a   :  { %3551 = vmatpush.bf16.msrb.mxu3 %v5780_v40  ;;  %v5572_v37 = vor.u32 %v6563_v15, %v5571_v28  ;;  %v6505_v15 = vld [vmem:[#allocation6 + $0x44] sm:$0xf]  ;;  %v5844_v61 = vor.u32 %v6631_v49, %v5843_v25  ;;  %v5941_v63 = vld [vmem:[#allocation6 + $0x4f0] sm:$0xf0] }
 0x14b   :  { %3513 = vmatpush.bf16.msrb.mxu0 %v5380_v54  ;;  %v2113_v4 = vpop.f32.mrf.mxu2  ;;  %v5444_v54 = vor.u32 %v6531_v26, %v5443_v48  ;;  %v5875_v26 = vld [vmem:[#allocation6 + $0x460] sm:$0xf]  ;;  %v5944_v13 = vor.u32 %v6653_v56, %v5941_v63  ;;  %v5445_v14 = vld [vmem:[#allocation6 + $0x110] sm:$0xf0]  ;;  %v6637_v49 = vld [vmem:[#allocation6 + $0x464] sm:$0xf] }
 0x14c   :  { %3526 = vmatpush.bf16.msrb.mxu1 %v5508_v41  ;;  %v2126_v31 = vpop.f32.mrf.mxu3  ;;  %v5432_v41 = vor.u32 %v6525_v29, %v5429_v30  ;;  %v5349_v30 = vld [vmem:[#allocation6 + $0x50] sm:$0xf0]  ;;  %v5876_v32 = vor.u32 %v6639_v27, %v5875_v26 }
 0x14d   :  { %3539 = vmatpush.bf16.msrb.mxu2 %v5636_v42  ;;  %v6735_v22 = vpop.eup %6734  ;;  %v6521_v42 = vld [vmem:[#allocation6 + $0xc4] sm:$0xf]  ;;  %v5352_v39 = vor.u32 %v6505_v15, %v5349_v30  ;;  %v6051_v15 = vld [vmem:[#allocation6 + $0x5c0] sm:$0xf]  ;;  %v5877_v56 = vld [vmem:[#allocation6 + $0x470] sm:$0xf0] }
 0x14e   :  { %3552 = vmatpush.bf16.msrb.mxu3 %v5764_v52  ;;  %v6737_v40 = vpop.eup %6736  ;;  %v5416_v57 = vor.u32 %v6521_v42, %v5413_v47  ;;  %v6541_v31 = vld [vmem:[#allocation6 + $0x164] sm:$0xf]  ;;  %v6021_v63 = vld [vmem:[#allocation6 + $0x590] sm:$0xf0] }
 0x14f   :  { %3514 = vmatpush.bf16.msrb.mxu0 %v5364_v36  ;;  %v6739_v9 = vpop.eup %6738  ;;  %v7075_v36 = vpack.c.bf16 %v6735_v22, %v6735_v22  ;;  %v7077_v52 = vpack.c.bf16 %v6737_v40, %v6737_v40  ;;  %v5859_v22 = vld [vmem:[#allocation6 + $0x440] sm:$0xf]  ;;  %v6501_v40 = vld [vmem:[#allocation6 + $0x24] sm:$0xf] }
 0x150   :  { %3527 = vmatpush.bf16.msrb.mxu1 %v5492_v53  ;;  %v5700_v53 = vor.u32 %v6595_v44, %v5699_v43  ;;  %v5333_v43 = vld [vmem:[#allocation6 + $0x30] sm:$0xf0]  ;;  %v6537_v44 = vld [vmem:[#allocation6 + $0x144] sm:$0xf] }
 0x151   :  { %3540 = vmatpush.bf16.msrb.mxu2 %v5620_v55  ;;  %v7079_v55 = vpack.c.bf16 %v6739_v9, %v6739_v9  ;;  %v5336_v50 = vor.u32 %v6501_v40, %v5333_v43  ;;  %v6679_v40 = vld [vmem:[#allocation6 + $0x5ac] sm:$0xf0] }
 0x152   :  { %3553 = vmatpush.bf16.msrb.mxu3 %v5748_v6  ;;  %v6513_v6 = vld [vmem:[#allocation6 + $0x84] sm:$0xf] }
 0x153   :  { %3515 = vmatpush.bf16.msrb.mxu0 %v5348_v2  ;;  %v5907_v2 = vld [vmem:[#allocation6 + $0x4a0] sm:$0xf] }
 0x154   :  { %3528 = vmatpush.bf16.msrb.mxu1 %v5476_v46  ;;  %v5381_v46 = vld [vmem:[#allocation6 + $0x90] sm:$0xf0]  ;;  %v5908_v12 = vor.u32 %v6647_v3, %v5907_v2  ;;  %v5827_v2 = vld [vmem:[#allocation6 + $0x400] sm:$0xf]  ;;  %v6627_v3 = vld [vmem:[#allocation6 + $0x40c] sm:$0xf0] }
 0x155   :  { %3541 = vmatpush.bf16.msrb.mxu2 %v5604_v10  ;;  %v6549_v10 = vld [vmem:[#allocation6 + $0x1a4] sm:$0xf]  ;;  %v5384_v16 = vor.u32 %v6513_v6, %v5381_v46  ;;  %v5685_v6 = vld [vmem:[#allocation6 + $0x2f0] sm:$0xf0] }
 0x156   :  { %3554 = vmatpush.bf16.msrb.mxu3 %v5732_v21  ;;  %v5528_v19 = vor.u32 %v6549_v10, %v5525_v11  ;;  %v5365_v21 = vld [vmem:[#allocation6 + $0x70] sm:$0xf0]  ;;  %v6649_v46 = vld [vmem:[#allocation6 + $0x4c4] sm:$0xf] }
 0x157   :  { %3516 = vmatpush.bf16.msrb.mxu0 %v5332_v18  ;;  %v6509_v18 = vld [vmem:[#allocation6 + $0x64] sm:$0xf] }
 0x158   :  { %3529 = vmatpush.bf16.msrb.mxu1 %v5460_v23  ;;  %v6545_v23 = vld [vmem:[#allocation6 + $0x184] sm:$0xf]  ;;  %v5368_v28 = vor.u32 %v6509_v18, %v5365_v21  ;;  %v6687_v18 = vld [vmem:[#allocation6 + $0x5ec] sm:$0xf0] }
 0x159   :  { %3542 = vmatpush.bf16.msrb.mxu2 %v5588_v24  ;;  %v5509_v24 = vld [vmem:[#allocation6 + $0x190] sm:$0xf0]  ;;  %v6529_v11 = vld [vmem:[#allocation6 + $0x104] sm:$0xf] }
 0x15a   :  { %3555 = vmatpush.bf16.msrb.mxu3 %v5716_v34  ;;  %v5512_v29 = vor.u32 %v6545_v23, %v5509_v24  ;;  %v6685_v21 = vld [vmem:[#allocation6 + $0x5e4] sm:$0xf]  ;;  %v6069_v23 = vld [vmem:[#allocation6 + $0x5f0] sm:$0xf0]  ;;  %v5448_v26 = vor.u32 %v6529_v11, %v5445_v14 }
 0x15b   :  { %3517 = vmatpush.bf16.msrb.mxu0 %v5316_v35  ;;  %v2137_v17 = vpop.f32.mrf.mxu0  ;;  %v6585_v24 = vld [vmem:[#allocation6 + $0x2c4] sm:$0xf]  ;;  %v6005_v14 = vld [vmem:[#allocation6 + $0x570] sm:$0xf0] }
 0x15c   :  { %3530 = vmatpush.bf16.msrb.mxu1 %v5444_v54  ;;  %v2138_v20 = vadd.f32 %v2137_v17, %v2125_v62  ;;  %v2150_v48 = vpop.f32.mrf.mxu1  ;;  %v6635_v54 = vld [vmem:[#allocation6 + $0x44c] sm:$0xf0]  ;;  %v6067_v17 = vld [vmem:[#allocation6 + $0x5e0] sm:$0xf] }
 0x15d   :  { %3543 = vmatpush.bf16.msrb.mxu2 %v5572_v37  ;;  %v5860_v47 = vor.u32 %v6635_v54, %v5859_v22  ;;  %v6641_v54 = vld [vmem:[#allocation6 + $0x484] sm:$0xf] }
 0x15e   :  { %3518 = vmatmul.bf16.vlgmr.msrb.gmra.mxu0 %v7077_v52  ;;  %3556 = vmatpush.bf16.msrb.mxu3 %v5700_v53  ;;  %v2151_v8 = vadd.f32 %v2150_v48, %v2138_v20  ;;  %v5317_v53 = vld [vmem:[#allocation6 + $0x10] sm:$0xf0]  ;;  %v6068_v48 = vor.u32 %v6687_v18, %v6067_v17 }
 0x15f   :  { %3562 = vmatpush.bf16.msra.mxu0 %v5940_v45  ;;  %3531 = vmatmul.bf16.vlgmr.msrb.gmra.mxu1 %v7079_v55  ;;  %v5477_v45 = vld [vmem:[#allocation6 + $0x150] sm:$0xf0]  ;;  %v5320_v62 = vor.u32 %v6497_v51, %v5317_v53  ;;  %v6019_v53 = vld [vmem:[#allocation6 + $0x580] sm:$0xf] }
 0x160   :  { %3544 = vmatmul.bf16.vlgmr.msrb.gmra.mxu2 %v7075_v36  ;;  %3575 = vmatpush.bf16.msra.mxu1 %v6068_v48  ;;  %v5605_v17 = vld [vmem:[#allocation6 + $0x250] sm:$0xf0] }
 0x161   :  { %3588 = vmatpush.bf16.msra.mxu2 %v5432_v41  ;;  %v5496_v41 = vor.u32 %v6541_v31, %v5493_v33  ;;  %v6681_v33 = vld [vmem:[#allocation6 + $0x5c4] sm:$0xf] }
 0x162   :  { %3601 = vmatpush.bf16.msra.mxu3 %v5560_v58  ;;  %v6533_v58 = vld [vmem:[#allocation6 + $0x124] sm:$0xf] }
 0x163   :  { %3563 = vmatpush.bf16.msra.mxu0 %v5924_v1  ;;  %v2163_v4 = vpop.f32.mrf.mxu2  ;;  %v2139_v42 = vpop.f32.mrf.mxu0  ;;  %v5464_v10 = vor.u32 %v6533_v58, %v5461_v59 }
 0x164   :  { %v2164_v35 = vadd.f32 %v2163_v4, %v2151_v8  ;;  %v2176_v34 = vpop.f32.mrf.mxu3  ;;  %v2152_v9 = vpop.f32.mrf.mxu1  ;;  %v6645_v8 = vld [vmem:[#allocation6 + $0x4a4] sm:$0xf]  ;;  %v5909_v4 = vld [vmem:[#allocation6 + $0x4b0] sm:$0xf0] }
 0x165   :  { %3589 = vmatpush.bf16.msra.mxu2 %v5416_v57  ;;  %v5480_v57 = vor.u32 %v6537_v44, %v5477_v45  ;;  %v5912_v22 = vor.u32 %v6645_v8, %v5909_v4  ;;  %v6677_v44 = vld [vmem:[#allocation6 + $0x5a4] sm:$0xf]  ;;  %v6037_v45 = vld [vmem:[#allocation6 + $0x5b0] sm:$0xf0] }
 0x166   :  { %3602 = vmatpush.bf16.msra.mxu3 %v5544_v7  ;;  %v2177_v37 = vadd.f32 %v2176_v34, %v2164_v35  ;;  %v6581_v35 = vld [vmem:[#allocation6 + $0x2a4] sm:$0xf]  ;;  %v5653_v34 = vld [vmem:[#allocation6 + $0x2b0] sm:$0xf0]  ;;  %v6040_v51 = vor.u32 %v6677_v44, %v6037_v45 }
 0x167   :  { %3564 = vmatpush.bf16.msra.mxu0 %v5908_v12  ;;  %v5656_v42 = vor.u32 %v6581_v35, %v5653_v34  ;;  %v6577_v9 = vld [vmem:[#allocation6 + $0x284] sm:$0xf]  ;;  %v5829_v35 = vld [vmem:[#allocation6 + $0x410] sm:$0xf0] }
 0x168   :  { %6740 = vtanh.f32 %v2177_v37  ;;  %v6565_v4 = vld [vmem:[#allocation6 + $0x224] sm:$0xf]  ;;  %v5573_v45 = vld [vmem:[#allocation6 + $0x210] sm:$0xf0] }
 0x169   :  { %3590 = vmatpush.bf16.msra.mxu2 %v5400_v5  ;;  %v6589_v5 = vld [vmem:[#allocation6 + $0x2e4] sm:$0xf] }
 0x16a   :  { %3603 = vmatpush.bf16.msra.mxu3 %v5528_v19  ;;  %v5925_v19 = vld [vmem:[#allocation6 + $0x4d0] sm:$0xf0]  ;;  %v5688_v20 = vor.u32 %v6589_v5, %v5685_v6  ;;  %v6633_v5 = vld [vmem:[#allocation6 + $0x444] sm:$0xf] }
 0x16b   :  { %3565 = vmatpush.bf16.msra.mxu0 %v5892_v0  ;;  %v2165_v60 = vpop.f32.mrf.mxu2  ;;  %v5669_v0 = vld [vmem:[#allocation6 + $0x2d0] sm:$0xf0]  ;;  %v5928_v27 = vor.u32 %v6649_v46, %v5925_v19  ;;  %v6561_v44 = vld [vmem:[#allocation6 + $0x204] sm:$0xf] }
 0x16c   :  { %v2178_v1 = vpop.f32.mrf.mxu3  ;;  %v5672_v30 = vor.u32 %v6585_v24, %v5669_v0  ;;  %v5861_v46 = vld [vmem:[#allocation6 + $0x450] sm:$0xf0]  ;;  %v5987_v24 = vld [vmem:[#allocation6 + $0x540] sm:$0xf]  ;;  %v6667_v0 = vld [vmem:[#allocation6 + $0x54c] sm:$0xf0] }
 0x16d   :  { %3591 = vmatpush.bf16.msra.mxu2 %v5384_v16  ;;  %v5828_v16 = vor.u32 %v6627_v3, %v5827_v2  ;;  %v6573_v1 = vld [vmem:[#allocation6 + $0x264] sm:$0xf]  ;;  %v5621_v2 = vld [vmem:[#allocation6 + $0x270] sm:$0xf0]  ;;  %v5880_v3 = vor.u32 %v6637_v49, %v5877_v56  ;;  %v5864_v19 = vor.u32 %v6633_v5, %v5861_v46  ;;  %v5675_v49 = vld [vmem:[#allocation6 + $0x2c8] sm:$0xf] }
 0x16e   :  { %3604 = vmatpush.bf16.msra.mxu3 %v5512_v29  ;;  %v6741_v7 = vpop.eup %6740  ;;  %v6683_v29 = vld [vmem:[#allocation6 + $0x5cc] sm:$0xf0]  ;;  %v5955_v56 = vld [vmem:[#allocation6 + $0x500] sm:$0xf]  ;;  %v5813_v5 = vld [vmem:[#allocation6 + $0x3f0] sm:$0xf0] }
 0x16f   :  { %3566 = vmatpush.bf16.msra.mxu0 %v5876_v32  ;;  %v7086_v12 = vpack.c.bf16 %v6741_v7, %v6741_v7  ;;  %v6052_v31 = vor.u32 %v6683_v29, %v6051_v15  ;;  %v6053_v32 = vld [vmem:[#allocation6 + $0x5d0] sm:$0xf0]  ;;  %v6003_v7 = vld [vmem:[#allocation6 + $0x560] sm:$0xf]  ;;  %v6665_v15 = vld [vmem:[#allocation6 + $0x544] sm:$0xf] }
 0x170   :  { %v6056_v37 = vor.u32 %v6681_v33, %v6053_v32  ;;  %v5989_v29 = vld [vmem:[#allocation6 + $0x550] sm:$0xf0]  ;;  %v6625_v33 = vld [vmem:[#allocation6 + $0x404] sm:$0xf] }
 0x171   :  { %3592 = vmatpush.bf16.msra.mxu2 %v5368_v28  ;;  %3557 = vmatmul.bf16.vlgmr.msrb.gmra.mxu3 %v7086_v12  ;;  %v6072_v28 = vor.u32 %v6685_v21, %v6069_v23  ;;  %v5992_v34 = vor.u32 %v6665_v15, %v5989_v29  ;;  %v6616_v15 = vld [vmem:[#allocation6 + $0x3b4] sm:$0xf0] }
 0x172   :  { %3605 = vmatpush.bf16.msra.mxu3 %v5496_v41  ;;  %v5893_v41 = vld [vmem:[#allocation6 + $0x490] sm:$0xf0]  ;;  %3576 = vmatpush.bf16.msra.mxu1 %v6052_v31  ;;  %v420_v31 = vperm.slane %v7072_v38, 4 }
 0x173   :  { %3567 = vmatpush.bf16.msra.mxu0 %v5860_v47  ;;  %v5637_v47 = vld [vmem:[#allocation6 + $0x290] sm:$0xf0]  ;;  %v5896_v25 = vor.u32 %v6641_v54, %v5893_v41  ;;  %v6663_v54 = vld [vmem:[#allocation6 + $0x52c] sm:$0xf0]  ;;  %v6661_v41 = vld [vmem:[#allocation6 + $0x524] sm:$0xf] }
 0x174   :  { %v5640_v59 = vor.u32 %v6577_v9, %v5637_v47 }
 0x175   :  { %3593 = vmatpush.bf16.msra.mxu2 %v5352_v39  ;;  %v6035_v39 = vld [vmem:[#allocation6 + $0x5a0] sm:$0xf] }
 0x176   :  { %3606 = vmatpush.bf16.msra.mxu3 %v5480_v57  ;;  %v6036_v43 = vor.u32 %v6679_v40, %v6035_v39  ;;  %v6675_v57 = vld [vmem:[#allocation6 + $0x58c] sm:$0xf0] }
 0x177   :  { %3568 = vmatpush.bf16.msra.mxu0 %v5844_v61  ;;  %v6020_v60 = vor.u32 %v6675_v57, %v6019_v53  ;;  %v6673_v61 = vld [vmem:[#allocation6 + $0x584] sm:$0xf] }
 0x178   :  { %3577 = vmatpush.bf16.msra.mxu1 %v6036_v43  ;;  %v6024_v6 = vor.u32 %v6673_v61, %v6021_v63  ;;  %v6592_v43 = vld [vmem:[#allocation6 + $0x2f4] sm:$0xf0]  ;;  %v5576_v61 = vor.u32 %v6561_v44, %v5573_v45  ;;  %v6657_v63 = vld [vmem:[#allocation6 + $0x504] sm:$0xf]  ;;  %v5749_v45 = vld [vmem:[#allocation6 + $0x370] sm:$0xf0] }
 0x179   :  { %3594 = vmatpush.bf16.msra.mxu2 %v5336_v50  ;;  %v6605_v44 = vld [vmem:[#allocation6 + $0x364] sm:$0xf] }
 0x17a   :  { %3607 = vmatpush.bf16.msra.mxu3 %v5464_v10  ;;  %v5624_v10 = vor.u32 %v6573_v1, %v5621_v2  ;;  %v5957_v1 = vld [vmem:[#allocation6 + $0x510] sm:$0xf0]  ;;  %v6621_v2 = vld [vmem:[#allocation6 + $0x3e4] sm:$0xf] }
 0x17b   :  { %3569 = vmatpush.bf16.msra.mxu0 %v5828_v16  ;;  %v7090_v50 = vpop.f32.mrf.mxu0  ;;  %v6569_v16 = vld [vmem:[#allocation6 + $0x244] sm:$0xf]  ;;  %v5960_v46 = vor.u32 %v6657_v63, %v5957_v1  ;;  %v6568_v63 = vld [vmem:[#allocation6 + $0x234] sm:$0xf0]  ;;  %v5435_v1 = vld [vmem:[#allocation6 + $0xe8] sm:$0xf] }
 0x17c   :  { %v7092_v58 = vpop.f32.mrf.mxu1  ;;  %3578 = vmatpush.bf16.msra.mxu1 %v6020_v60  ;;  %v5608_v8 = vor.u32 %v6569_v16, %v5605_v17  ;;  %v2190_v9 = vadd.f32 %v7090_v50, %v420_v31  ;;  %v5819_v50 = vld [vmem:[#allocation6 + $0x3e8] sm:$0xf]  ;;  %v5797_v16 = vld [vmem:[#allocation6 + $0x3d0] sm:$0xf0]  ;;  %v6584_v17 = vld [vmem:[#allocation6 + $0x2b4] sm:$0xf0] }
 0x17d   :  { %3595 = vmatpush.bf16.msra.mxu2 %v5320_v62  ;;  %v6671_v62 = vld [vmem:[#allocation6 + $0x56c] sm:$0xf0] }
 0x17e   :  { %3608 = vmatpush.bf16.msra.mxu3 %v5448_v26  ;;  %v6004_v11 = vor.u32 %v6671_v62, %v6003_v7  ;;  %v5845_v26 = vld [vmem:[#allocation6 + $0x430] sm:$0xf0]  ;;  %v2203_v7 = vadd.f32 %v7092_v58, %v2190_v9  ;;  %v5816_v62 = vor.u32 %v6621_v2, %v5813_v5  ;;  %v6572_v9 = vld [vmem:[#allocation6 + $0x254] sm:$0xf0] }
 0x17f   :  { %3614 = vmatpush.bf16.msrb.mxu0 %v5688_v20  ;;  %v6629_v20 = vld [vmem:[#allocation6 + $0x424] sm:$0xf]  ;;  %v6528_v2 = vld [vmem:[#allocation6 + $0xf4] sm:$0xf0] }
 0x180   :  { %3596 = vmatmul.bf16.vlgmr.msra.gmra.mxu2 %v7077_v52  ;;  %3579 = vmatpush.bf16.msra.mxu1 %v6004_v11  ;;  %v5848_v32 = vor.u32 %v6629_v20, %v5845_v26  ;;  %v5659_v11 = vld [vmem:[#allocation6 + $0x2a8] sm:$0xf]  ;;  %v6620_v20 = vld [vmem:[#allocation6 + $0x3d4] sm:$0xf0]  ;;  %v6613_v26 = vld [vmem:[#allocation6 + $0x3a4] sm:$0xf] }
 0x181   :  { %3640 = vmatpush.bf16.msrb.mxu2 %v5944_v13  ;;  %v6669_v13 = vld [vmem:[#allocation6 + $0x564] sm:$0xf]  ;;  %3609 = vmatmul.bf16.vlgmr.msra.gmra.mxu3 %v7079_v55  ;;  %v5660_v58 = vor.u32 %v6584_v17, %v5659_v11  ;;  %v5436_v11 = vor.u32 %v6528_v2, %v5435_v1  ;;  %v6510_v1 = vld [vmem:[#allocation6 + $0x6c] sm:$0xf]  ;;  %v5373_v2 = vld [vmem:[#allocation6 + $0x78] sm:$0xf0] }
 0x182   :  { %3653 = vmatpush.bf16.msrb.mxu3 %v6072_v28  ;;  %v6008_v23 = vor.u32 %v6669_v13, %v6005_v14  ;;  %v5988_v28 = vor.u32 %v6667_v0, %v5987_v24  ;;  %v6617_v14 = vld [vmem:[#allocation6 + $0x3c4] sm:$0xf]  ;;  %v5643_v24 = vld [vmem:[#allocation6 + $0x288] sm:$0xf] }
 0x183   :  { %3615 = vmatpush.bf16.msrb.mxu0 %v5672_v30  ;;  %v7095_v18 = vpop.f32.mrf.mxu2  ;;  %v2191_v48 = vpop.f32.mrf.mxu0  ;;  %v5589_v30 = vld [vmem:[#allocation6 + $0x230] sm:$0xf0] }
 0x184   :  { %v7097_v21 = vpop.f32.mrf.mxu3  ;;  %v5592_v39 = vor.u32 %v6565_v4, %v5589_v30  ;;  %3580 = vmatpush.bf16.msra.mxu1 %v5988_v28  ;;  %v2216_v48 = vadd.f32 %v7095_v18, %v2203_v7  ;;  %v5787_v28 = vld [vmem:[#allocation6 + $0x3a8] sm:$0xf]  ;;  %v6604_v7 = vld [vmem:[#allocation6 + $0x354] sm:$0xf0] }
 0x185   :  { %3641 = vmatpush.bf16.msrb.mxu2 %v5928_v27  ;;  %v2204_v27 = vpop.f32.mrf.mxu1  ;;  %v5627_v18 = vld [vmem:[#allocation6 + $0x268] sm:$0xf]  ;;  %v5788_v31 = vor.u32 %v6616_v15, %v5787_v28  ;;  %v6593_v15 = vld [vmem:[#allocation6 + $0x304] sm:$0xf] }
 0x186   :  { %3654 = vmatpush.bf16.msrb.mxu3 %v6056_v37  ;;  %v5691_v37 = vld [vmem:[#allocation6 + $0x2e8] sm:$0xf]  ;;  %v5781_v27 = vld [vmem:[#allocation6 + $0x3b0] sm:$0xf0]  ;;  %v2229_v29 = vadd.f32 %v7097_v21, %v2216_v48  ;;  %v6526_v48 = vld [vmem:[#allocation6 + $0xec] sm:$0xf] }
 0x187   :  { %3616 = vmatpush.bf16.msrb.mxu0 %v5656_v42  ;;  %v5973_v42 = vld [vmem:[#allocation6 + $0x530] sm:$0xf0]  ;;  %v5692_v60 = vor.u32 %v6592_v43, %v5691_v37  ;;  %v5784_v4 = vor.u32 %v6613_v26, %v5781_v27  ;;  %v6600_v26 = vld [vmem:[#allocation6 + $0x334] sm:$0xf0] }
 0x188   :  { %v5976_v57 = vor.u32 %v6661_v41, %v5973_v42  ;;  %v5611_v42 = vld [vmem:[#allocation6 + $0x248] sm:$0xf] }
 0x189   :  { %3642 = vmatpush.bf16.msrb.mxu2 %v5912_v22  ;;  %v5971_v22 = vld [vmem:[#allocation6 + $0x520] sm:$0xf] }
 0x18a   :  { %3655 = vmatpush.bf16.msrb.mxu3 %v6040_v51  ;;  %v5972_v40 = vor.u32 %v6663_v54, %v5971_v22  ;;  %v6588_v51 = vld [vmem:[#allocation6 + $0x2d4] sm:$0xf0]  ;;  %v5771_v22 = vld [vmem:[#allocation6 + $0x388] sm:$0xf] }
 0x18b   :  { %3617 = vmatpush.bf16.msrb.mxu0 %v5640_v59  ;;  %v2217_v47 = vpop.f32.mrf.mxu2  ;;  %v6659_v59 = vld [vmem:[#allocation6 + $0x50c] sm:$0xf0]  ;;  %v6612_v54 = vld [vmem:[#allocation6 + $0x394] sm:$0xf0] }
 0x18c   :  { %v2230_v53 = vpop.f32.mrf.mxu3  ;;  %3581 = vmatpush.bf16.msra.mxu1 %v5972_v40  ;;  %v5772_v43 = vor.u32 %v6612_v54, %v5771_v22  ;;  %v5755_v47 = vld [vmem:[#allocation6 + $0x368] sm:$0xf]  ;;  %v6596_v54 = vld [vmem:[#allocation6 + $0x314] sm:$0xf0] }
 0x18d   :  { %3643 = vmatpush.bf16.msrb.mxu2 %v5896_v25  ;;  %v5832_v25 = vor.u32 %v6625_v33, %v5829_v35  ;;  %v6609_v33 = vld [vmem:[#allocation6 + $0x384] sm:$0xf]  ;;  %v5707_v22 = vld [vmem:[#allocation6 + $0x308] sm:$0xf] }
 0x18e   :  { %3656 = vmatpush.bf16.msrb.mxu3 %v6024_v6  ;;  %v6624_v6 = vld [vmem:[#allocation6 + $0x3f4] sm:$0xf0] }
 0x18f   :  { %3618 = vmatpush.bf16.msrb.mxu0 %v5624_v10  ;;  %v5676_v10 = vor.u32 %v6588_v51, %v5675_v49  ;;  %v5820_v13 = vor.u32 %v6624_v6, %v5819_v50  ;;  %v5752_v49 = vor.u32 %v6605_v44, %v5749_v45  ;;  %v5612_v51 = vor.u32 %v6572_v9, %v5611_v42  ;;  %v5739_v6 = vld [vmem:[#allocation6 + $0x348] sm:$0xf]  ;;  %v6518_v42 = vld [vmem:[#allocation6 + $0xac] sm:$0xf] }
 0x190   :  { %v421_v44 = vperm.slane %v7072_v38, 5 }
 0x191   :  { %3644 = vmatpush.bf16.msrb.mxu2 %v5880_v3  ;;  %v5956_v3 = vor.u32 %v6659_v59, %v5955_v56  ;;  %v6601_v59 = vld [vmem:[#allocation6 + $0x344] sm:$0xf] }
 0x192   :  { %3657 = vmatpush.bf16.msrb.mxu3 %v6008_v23  ;;  %v5800_v23 = vor.u32 %v6617_v14, %v5797_v16  ;;  %v6597_v14 = vld [vmem:[#allocation6 + $0x324] sm:$0xf]  ;;  %v5717_v16 = vld [vmem:[#allocation6 + $0x330] sm:$0xf0] }
 0x193   :  { %3619 = vmatpush.bf16.msrb.mxu0 %v5608_v8  ;;  %3582 = vmatpush.bf16.msra.mxu1 %v5956_v3  ;;  %v6580_v8 = vld [vmem:[#allocation6 + $0x294] sm:$0xf0] }
 0x194   :  { %v5644_v30 = vor.u32 %v6580_v8, %v5643_v24  ;;  %v5720_v24 = vor.u32 %v6597_v14, %v5717_v16  ;;  %v5323_v14 = vld [vmem:[#allocation6 + $0x8] sm:$0xf]  ;;  %v6500_v16 = vld [vmem:[#allocation6 + $0x14] sm:$0xf0] }
 0x195   :  { %3645 = vmatpush.bf16.msrb.mxu2 %v5864_v19  ;;  %v5803_v19 = vld [vmem:[#allocation6 + $0x3c8] sm:$0xf] }
 0x196   :  { %3658 = vmatpush.bf16.msrb.mxu3 %v5992_v34  ;;  %v5804_v0 = vor.u32 %v6620_v20, %v5803_v19  ;;  %v6576_v34 = vld [vmem:[#allocation6 + $0x274] sm:$0xf0]  ;;  %v5419_v19 = vld [vmem:[#allocation6 + $0xc8] sm:$0xf] }
 0x197   :  { %3620 = vmatpush.bf16.msrb.mxu0 %v5592_v39  ;;  %3627 = vmatpush.bf16.msrb.mxu1 %v5816_v62  ;;  %v5628_v21 = vor.u32 %v6576_v34, %v5627_v18  ;;  %v5579_v62 = vld [vmem:[#allocation6 + $0x208] sm:$0xf]  ;;  %v6524_v20 = vld [vmem:[#allocation6 + $0xd4] sm:$0xf0] }
 0x198   :  { %v5420_v8 = vor.u32 %v6524_v20, %v5419_v19  ;;  %v5403_v18 = vld [vmem:[#allocation6 + $0xa8] sm:$0xf]  ;;  %v6502_v19 = vld [vmem:[#allocation6 + $0x2c] sm:$0xf] }
 0x199   :  { %3646 = vmatpush.bf16.msrb.mxu2 %v5848_v32  ;;  %v5765_v32 = vld [vmem:[#allocation6 + $0x390] sm:$0xf0] }
 0x19a   :  { %3659 = vmatpush.bf16.msrb.mxu3 %v5976_v57  ;;  %v5768_v40 = vor.u32 %v6609_v33, %v5765_v32  ;;  %v5595_v57 = vld [vmem:[#allocation6 + $0x228] sm:$0xf]  ;;  %v6522_v33 = vld [vmem:[#allocation6 + $0xcc] sm:$0xf] }
 0x19b   :  { %3621 = vmatpush.bf16.msrb.mxu0 %v5576_v61  ;;  %3628 = vmatpush.bf16.msrb.mxu1 %v5800_v23  ;;  %v2241_v35 = vpop.f32.mrf.mxu0  ;;  %v5740_v23 = vor.u32 %v6604_v7, %v5739_v6  ;;  %v5339_v7 = vld [vmem:[#allocation6 + $0x28] sm:$0xf] }
 0x19c   :  { %v2242_v37 = vadd.f32 %v2241_v35, %v2229_v29  ;;  %v2254_v39 = vpop.f32.mrf.mxu1  ;;  %v5701_v29 = vld [vmem:[#allocation6 + $0x310] sm:$0xf0]  ;;  %v5421_v35 = vld [vmem:[#allocation6 + $0xd8] sm:$0xf0] }
 0x19d   :  { %3647 = vmatpush.bf16.msrb.mxu2 %v5832_v25  ;;  %v6608_v25 = vld [vmem:[#allocation6 + $0x374] sm:$0xf0]  ;;  %v5704_v34 = vor.u32 %v6593_v15, %v5701_v29 }
 0x19e   :  { %3660 = vmatpush.bf16.msrb.mxu3 %v5960_v46  ;;  %v2255_v41 = vadd.f32 %v2254_v39, %v2242_v37  ;;  %v5756_v56 = vor.u32 %v6608_v25, %v5755_v47  ;;  %v5424_v39 = vor.u32 %v6522_v33, %v5421_v35  ;;  %v5371_v47 = vld [vmem:[#allocation6 + $0x68] sm:$0xf]  ;;  %v6512_v25 = vld [vmem:[#allocation6 + $0x74] sm:$0xf0]  ;;  %v6654_v33 = vld [vmem:[#allocation6 + $0x4ec] sm:$0xf] }
 0x19f   :  { %3629 = vmatpush.bf16.msrb.mxu1 %v5784_v4 }
 0x1a0   :  { %6742 = vtanh.f32 %v2255_v41  ;;  %v6516_v41 = vld [vmem:[#allocation6 + $0x94] sm:$0xf0] }
 0x1a1   :  { %3692 = vmatpush.bf16.msra.mxu2 %v5692_v60  ;;  %v5733_v60 = vld [vmem:[#allocation6 + $0x350] sm:$0xf0] }
 0x1a2   :  { %3705 = vmatpush.bf16.msra.mxu3 %v5820_v13  ;;  %v5736_v50 = vor.u32 %v6601_v59, %v5733_v60  ;;  %v6564_v13 = vld [vmem:[#allocation6 + $0x214] sm:$0xf0]  ;;  %v5355_v60 = vld [vmem:[#allocation6 + $0x48] sm:$0xf] }
 0x1a3   :  { %3630 = vmatpush.bf16.msrb.mxu1 %v5768_v40  ;;  %v7104_v53 = vpop.f32.mrf.mxu2  ;;  %v2243_v3 = vpop.f32.mrf.mxu0  ;;  %v5580_v27 = vor.u32 %v6564_v13, %v5579_v62  ;;  %v5387_v40 = vld [vmem:[#allocation6 + $0x88] sm:$0xf]  ;;  %v6504_v62 = vld [vmem:[#allocation6 + $0x34] sm:$0xf0] }
 0x1a4   :  { %v7106_v61 = vpop.f32.mrf.mxu3  ;;  %v2256_v5 = vpop.f32.mrf.mxu1  ;;  %v5388_v45 = vor.u32 %v6516_v41, %v5387_v40  ;;  %v6560_v40 = vld [vmem:[#allocation6 + $0x1f4] sm:$0xf0]  ;;  %v6558_v41 = vld [vmem:[#allocation6 + $0x1ec] sm:$0xf] }
 0x1a5   :  { %3693 = vmatpush.bf16.msra.mxu2 %v5676_v10  ;;  %v5596_v10 = vor.u32 %v6568_v63, %v5595_v57  ;;  %v2268_v57 = vadd.f32 %v7104_v53, %v421_v44  ;;  %v6508_v63 = vld [vmem:[#allocation6 + $0x54] sm:$0xf0]  ;;  %v5376_v53 = vor.u32 %v6510_v1, %v5373_v2  ;;  %v6650_v44 = vld [vmem:[#allocation6 + $0x4cc] sm:$0xf]  ;;  %v5899_v1 = vld [vmem:[#allocation6 + $0x488] sm:$0xf] }
 0x1a6   :  { %3706 = vmatpush.bf16.msra.mxu3 %v5804_v0  ;;  %v6743_v46 = vpop.eup %6742  ;;  %v5723_v0 = vld [vmem:[#allocation6 + $0x328] sm:$0xf]  ;;  %v6644_v2 = vld [vmem:[#allocation6 + $0x494] sm:$0xf0] }
 0x1a7   :  { %3631 = vmatpush.bf16.msrb.mxu1 %v5752_v49  ;;  %v7108_v17 = vpack.c.bf16 %v6743_v46, %v6743_v46  ;;  %v5724_v32 = vor.u32 %v6600_v26, %v5723_v0  ;;  %v6514_v49 = vld [vmem:[#allocation6 + $0x8c] sm:$0xf]  ;;  %v2281_v38 = vadd.f32 %v7106_v61, %v2268_v57  ;;  %v5547_v57 = vld [vmem:[#allocation6 + $0x1c8] sm:$0xf] }
 0x1a8   :  { %v6506_v46 = vld [vmem:[#allocation6 + $0x4c] sm:$0xf] }
 0x1a9   :  { %3694 = vmatpush.bf16.msra.mxu2 %v5660_v58  ;;  %v5437_v58 = vld [vmem:[#allocation6 + $0xf8] sm:$0xf0]  ;;  %3570 = vmatmul.bf16.vlgmr.msra.gmra.mxu0 %v7108_v17 }
 0x1aa   :  { %3707 = vmatpush.bf16.msra.mxu3 %v5788_v31  ;;  %3648 = vmatmul.bf16.vlgmr.msrb.gmra.mxu2 %v7108_v17  ;;  %v5440_v4 = vor.u32 %v6526_v48, %v5437_v58  ;;  %v6520_v31 = vld [vmem:[#allocation6 + $0xb4] sm:$0xf0]  ;;  %v5947_v58 = vld [vmem:[#allocation6 + $0x4e8] sm:$0xf] }
 0x1ab   :  { %3632 = vmatpush.bf16.msrb.mxu1 %v5736_v50  ;;  %3666 = vmatpush.bf16.msra.mxu0 %v5436_v11  ;;  %v2269_v28 = vpop.f32.mrf.mxu2  ;;  %v5404_v37 = vor.u32 %v6520_v31, %v5403_v18  ;;  %v5356_v50 = vor.u32 %v6508_v63, %v5355_v60  ;;  %v5340_v11 = vor.u32 %v6504_v62, %v5339_v7  ;;  %v5931_v18 = vld [vmem:[#allocation6 + $0x4c8] sm:$0xf]  ;;  %v6652_v31 = vld [vmem:[#allocation6 + $0x4d4] sm:$0xf0]  ;;  %v5549_v63 = vld [vmem:[#allocation6 + $0x1d8] sm:$0xf0] }
 0x1ac   :  { %v6552_v7 = vld [vmem:[#allocation6 + $0x1b4] sm:$0xf0]  ;;  %v6550_v62 = vld [vmem:[#allocation6 + $0x1ac] sm:$0xf] }
 0x1ad   :  { %3695 = vmatpush.bf16.msra.mxu2 %v5644_v30  ;;  %v2282_v30 = vpop.f32.mrf.mxu3 }
 0x1ae   :  { %3708 = vmatpush.bf16.msra.mxu3 %v5772_v43  ;;  %v5405_v43 = vld [vmem:[#allocation6 + $0xb8] sm:$0xf0] }
 0x1af   :  { %3633 = vmatpush.bf16.msrb.mxu1 %v5720_v24  ;;  %3667 = vmatpush.bf16.msra.mxu0 %v5420_v8  ;;  %v5408_v9 = vor.u32 %v6518_v42, %v5405_v43  ;;  %v6656_v24 = vld [vmem:[#allocation6 + $0x4f4] sm:$0xf0]  ;;  %v5324_v8 = vor.u32 %v6500_v16, %v5323_v14  ;;  %v5325_v30 = vld [vmem:[#allocation6 + $0x18] sm:$0xf0]  ;;  %v5915_v42 = vld [vmem:[#allocation6 + $0x4a8] sm:$0xf] }
 0x1b0   :  { %v5948_v29 = vor.u32 %v6656_v24, %v5947_v58  ;;  %v6648_v43 = vld [vmem:[#allocation6 + $0x4b4] sm:$0xf0]  ;;  %v6642_v14 = vld [vmem:[#allocation6 + $0x48c] sm:$0xf]  ;;  %v5901_v16 = vld [vmem:[#allocation6 + $0x498] sm:$0xf0] }
 0x1b1   :  { %3696 = vmatpush.bf16.msra.mxu2 %v5628_v21  ;;  %v5708_v21 = vor.u32 %v6596_v54, %v5707_v22  ;;  %v6548_v58 = vld [vmem:[#allocation6 + $0x194] sm:$0xf0]  ;;  %v6546_v24 = vld [vmem:[#allocation6 + $0x18c] sm:$0xf] }
 0x1b2   :  { %3709 = vmatpush.bf16.msra.mxu3 %v5756_v56  ;;  %v5372_v56 = vor.u32 %v6512_v25, %v5371_v47 }
 0x1b3   :  { %3634 = vmatpush.bf16.msrb.mxu1 %v5704_v34  ;;  %3668 = vmatpush.bf16.msra.mxu0 %v5404_v37  ;;  %v5932_v34 = vor.u32 %v6652_v31, %v5931_v18 }
 0x1b5   :  { %3697 = vmatpush.bf16.msra.mxu2 %v5612_v51  ;;  %v5389_v51 = vld [vmem:[#allocation6 + $0x98] sm:$0xf0] }
 0x1b6   :  { %3710 = vmatpush.bf16.msra.mxu3 %v5740_v23  ;;  %v5392_v59 = vor.u32 %v6514_v49, %v5389_v51  ;;  %v5341_v23 = vld [vmem:[#allocation6 + $0x38] sm:$0xf0]  ;;  %v5916_v51 = vor.u32 %v6648_v43, %v5915_v42  ;;  %v5483_v43 = vld [vmem:[#allocation6 + $0x148] sm:$0xf] }
 0x1b7   :  { %3669 = vmatpush.bf16.msra.mxu0 %v5388_v45  ;;  %v5344_v15 = vor.u32 %v6502_v19, %v5341_v23  ;;  %v5933_v45 = vld [vmem:[#allocation6 + $0x4d8] sm:$0xf0]  ;;  %v5515_v23 = vld [vmem:[#allocation6 + $0x188] sm:$0xf] }
 0x1b8   :  { %v5936_v60 = vor.u32 %v6650_v44, %v5933_v45  ;;  %v5516_v18 = vor.u32 %v6548_v58, %v5515_v23  ;;  %v5451_v23 = vld [vmem:[#allocation6 + $0x108] sm:$0xf]  ;;  %v6532_v58 = vld [vmem:[#allocation6 + $0x114] sm:$0xf0] }
 0x1b9   :  { %3698 = vmatpush.bf16.msra.mxu2 %v5596_v10  ;;  %3622 = vmatmul.bf16.vlgmr.msrb.gmra.mxu0 %v7075_v36  ;;  %v5357_v10 = vld [vmem:[#allocation6 + $0x58] sm:$0xf0] }
 0x1ba   :  { %3711 = vmatpush.bf16.msra.mxu3 %v5724_v32  ;;  %v5360_v61 = vor.u32 %v6506_v46, %v5357_v10  ;;  %v5949_v32 = vld [vmem:[#allocation6 + $0x4f8] sm:$0xf0]  ;;  %v7123_v46 = vld [vmem:[#allocation7] sm:$0xf] }
 0x1bb   :  { %v2293_v3 = vpop.f32.mrf.mxu0  ;;  %3670 = vmatpush.bf16.msra.mxu0 %v5372_v56  ;;  %v5952_v37 = vor.u32 %v6654_v33, %v5949_v32  ;;  %v6556_v56 = vld [vmem:[#allocation6 + $0x1d4] sm:$0xf0]  ;;  %v5499_v32 = vld [vmem:[#allocation6 + $0x168] sm:$0xf] }
 0x1bc   :  { %v2306_v5 = vpop.f32.mrf.mxu1  ;;  %v2294_v6 = vadd.f32 %v2293_v3, %v2281_v38  ;;  %v6646_v38 = vld [vmem:[#allocation6 + $0x4ac] sm:$0xf]  ;;  %v5917_v3 = vld [vmem:[#allocation6 + $0x4b8] sm:$0xf0] }
 0x1bd   :  { %3699 = vmatpush.bf16.msra.mxu2 %v5580_v27  ;;  %v5920_v10 = vor.u32 %v6646_v38, %v5917_v3  ;;  %v6590_v38 = vld [vmem:[#allocation6 + $0x2ec] sm:$0xf]  ;;  %v5693_v3 = vld [vmem:[#allocation6 + $0x2f8] sm:$0xf0] }
 0x1be   :  { %3712 = vmatpush.bf16.msra.mxu3 %v5708_v21  ;;  %v2307_v13 = vadd.f32 %v2306_v5, %v2294_v6  ;;  %v5565_v21 = vld [vmem:[#allocation6 + $0x1f8] sm:$0xf0]  ;;  %v5548_v5 = vor.u32 %v6556_v56, %v5547_v57  ;;  %v5835_v56 = vld [vmem:[#allocation6 + $0x408] sm:$0xf] }
 0x1bf   :  { %3671 = vmatpush.bf16.msra.mxu0 %v5356_v50  ;;  %v5568_v49 = vor.u32 %v6558_v41, %v5565_v21  ;;  %v5531_v50 = vld [vmem:[#allocation6 + $0x1a8] sm:$0xf]  ;;  %v6634_v41 = vld [vmem:[#allocation6 + $0x44c] sm:$0xf]  ;;  %v5869_v21 = vld [vmem:[#allocation6 + $0x458] sm:$0xf0] }
 0x1c0   :  { %3700 = vmatmul.bf16.vlgmr.msra.gmra.mxu2 %v7075_v36  ;;  %v5532_v19 = vor.u32 %v6552_v7, %v5531_v50  ;;  %v5872_v57 = vor.u32 %v6634_v41, %v5869_v21  ;;  %v5467_v7 = vld [vmem:[#allocation6 + $0x128] sm:$0xf]  ;;  %v5645_v41 = vld [vmem:[#allocation6 + $0x298] sm:$0xf0] }
 0x1c1   :  { %3744 = vmatpush.bf16.msrb.mxu2 %v5440_v4  ;;  %v6498_v4 = vld [vmem:[#allocation6 + $0xc] sm:$0xf] }
 0x1c2   :  { %v5328_v35 = vor.u32 %v6498_v4, %v5325_v30 }
 0x1c3   :  { %v2319_v20 = vpop.f32.mrf.mxu2  ;;  %v2295_v26 = vpop.f32.mrf.mxu0  ;;  %3672 = vmatpush.bf16.msra.mxu0 %v5340_v11  ;;  %v5533_v11 = vld [vmem:[#allocation6 + $0x1b8] sm:$0xf0] }
 0x1c4   :  { %v2332_v48 = vpop.f32.mrf.mxu3  ;;  %v2320_v0 = vadd.f32 %v2319_v20, %v2307_v13  ;;  %v2308_v27 = vpop.f32.mrf.mxu1  ;;  %v5883_v13 = vld [vmem:[#allocation6 + $0x468] sm:$0xf]  ;;  %v5536_v20 = vor.u32 %v6550_v62, %v5533_v11  ;;  %v5517_v26 = vld [vmem:[#allocation6 + $0x198] sm:$0xf0]  ;;  %v6536_v62 = vld [vmem:[#allocation6 + $0x134] sm:$0xf0]  ;;  %v5696_v11 = vor.u32 %v6590_v38, %v5693_v3 }
 0x1c5   :  { %3745 = vmatpush.bf16.msrb.mxu2 %v5424_v39  ;;  %v5563_v39 = vld [vmem:[#allocation6 + $0x1e8] sm:$0xf]  ;;  %v5520_v31 = vor.u32 %v6546_v24, %v5517_v26  ;;  %v6530_v24 = vld [vmem:[#allocation6 + $0x10c] sm:$0xf]  ;;  %v5613_v3 = vld [vmem:[#allocation6 + $0x258] sm:$0xf0] }
 0x1c6   :  { %v2333_v28 = vadd.f32 %v2332_v48, %v2320_v0  ;;  %v5564_v47 = vor.u32 %v6560_v40, %v5563_v39  ;;  %v5904_v0 = vor.u32 %v6642_v14, %v5901_v16  ;;  %v5867_v27 = vld [vmem:[#allocation6 + $0x448] sm:$0xf]  ;;  %v6632_v40 = vld [vmem:[#allocation6 + $0x434] sm:$0xf0]  ;;  %v6626_v14 = vld [vmem:[#allocation6 + $0x40c] sm:$0xf] }
 0x1c7   :  { %3673 = vmatpush.bf16.msra.mxu0 %v5324_v8  ;;  %v6636_v8 = vld [vmem:[#allocation6 + $0x454] sm:$0xf0]  ;;  %v5851_v39 = vld [vmem:[#allocation6 + $0x428] sm:$0xf]  ;;  %v5837_v16 = vld [vmem:[#allocation6 + $0x418] sm:$0xf0] }
 0x1c8   :  { %6744 = vtanh.f32 %v2333_v28  ;;  %v5868_v33 = vor.u32 %v6636_v8, %v5867_v27  ;;  %v5852_v45 = vor.u32 %v6632_v40, %v5851_v39  ;;  %v5840_v26 = vor.u32 %v6626_v14, %v5837_v16  ;;  %v5453_v8 = vld [vmem:[#allocation6 + $0x118] sm:$0xf0]  ;;  %v6578_v40 = vld [vmem:[#allocation6 + $0x28c] sm:$0xf] }
 0x1c9   :  { %3746 = vmatpush.bf16.msrb.mxu2 %v5408_v9  ;;  %v6061_v39 = vld [vmem:[#allocation6 + $0x5d8] sm:$0xf0]  ;;  %v6570_v38 = vld [vmem:[#allocation6 + $0x24c] sm:$0xf] }
 0x1ca   :  { %3674 = vmatmul.bf16.vlgmr.msra.gmra.mxu0 %v7077_v52 }
 0x1cb   :  { %3718 = vmatpush.bf16.msrb.mxu0 %v5948_v29  ;;  %v2321_v22 = vpop.f32.mrf.mxu2  ;;  %v5885_v29 = vld [vmem:[#allocation6 + $0x478] sm:$0xf0] }
 0x1cc   :  { %v2334_v54 = vpop.f32.mrf.mxu3 }
 0x1cd   :  { %3747 = vmatpush.bf16.msrb.mxu2 %v5392_v59  ;;  %v6554_v59 = vld [vmem:[#allocation6 + $0x1cc] sm:$0xf] }
 0x1ce   :  { %v6745_v9 = vpop.eup %6744  ;;  %v5552_v6 = vor.u32 %v6554_v59, %v5549_v63  ;;  %v6628_v59 = vld [vmem:[#allocation6 + $0x414] sm:$0xf0] }
 0x1cf   :  { %3719 = vmatpush.bf16.msrb.mxu0 %v5932_v34  ;;  %v7118_v25 = vpack.c.bf16 %v6745_v9, %v6745_v9  ;;  %v6542_v34 = vld [vmem:[#allocation6 + $0x16c] sm:$0xf]  ;;  %v6540_v9 = vld [vmem:[#allocation6 + $0x154] sm:$0xf0] }
 0x1d0   :  { %v5484_v50 = vor.u32 %v6540_v9, %v5483_v43  ;;  %v6043_v43 = vld [vmem:[#allocation6 + $0x5a8] sm:$0xf]  ;;  %v6678_v9 = vld [vmem:[#allocation6 + $0x5ac] sm:$0xf] }
 0x1d1   :  { %3748 = vmatpush.bf16.msrb.mxu2 %v5376_v53  ;;  %3583 = vmatmul.bf16.vlgmr.msra.gmra.mxu1 %v7118_v25  ;;  %v5900_v53 = vor.u32 %v6644_v2, %v5899_v1  ;;  %v5853_v2 = vld [vmem:[#allocation6 + $0x438] sm:$0xf0] }
 0x1d2   :  { %3661 = vmatmul.bf16.vlgmr.msrb.gmra.mxu3 %v7118_v25  ;;  %3679 = vmatpush.bf16.msra.mxu1 %v5564_v47  ;;  %v6538_v47 = vld [vmem:[#allocation6 + $0x14c] sm:$0xf] }
 0x1d3   :  { %3757 = vmatpush.bf16.msrb.mxu3 %v5568_v49  ;;  %3720 = vmatpush.bf16.msrb.mxu0 %v5916_v51  ;;  %v5485_v49 = vld [vmem:[#allocation6 + $0x158] sm:$0xf0] }
 0x1d5   :  { %3749 = vmatpush.bf16.msrb.mxu2 %v5360_v61  ;;  %v6640_v61 = vld [vmem:[#allocation6 + $0x474] sm:$0xf0] }
 0x1d6   :  { %3680 = vmatpush.bf16.msra.mxu1 %v5548_v5  ;;  %v5884_v48 = vor.u32 %v6640_v61, %v5883_v13  ;;  %v6534_v13 = vld [vmem:[#allocation6 + $0x12c] sm:$0xf]  ;;  %v5469_v61 = vld [vmem:[#allocation6 + $0x138] sm:$0xf0] }
 0x1d7   :  { %3758 = vmatpush.bf16.msrb.mxu3 %v5552_v6  ;;  %3721 = vmatpush.bf16.msrb.mxu0 %v5900_v53  ;;  %v5488_v6 = vor.u32 %v6538_v47, %v5485_v49  ;;  %v5836_v53 = vor.u32 %v6628_v59, %v5835_v56  ;;  %v6045_v47 = vld [vmem:[#allocation6 + $0x5b8] sm:$0xf0]  ;;  %v6574_v49 = vld [vmem:[#allocation6 + $0x26c] sm:$0xf]  ;;  %v6027_v59 = vld [vmem:[#allocation6 + $0x588] sm:$0xf] }
 0x1d8   :  { %v6048_v56 = vor.u32 %v6678_v9, %v6045_v47  ;;  %v6614_v47 = vld [vmem:[#allocation6 + $0x3ac] sm:$0xf] }
 0x1d9   :  { %3750 = vmatpush.bf16.msrb.mxu2 %v5344_v15  ;;  %v6638_v15 = vld [vmem:[#allocation6 + $0x46c] sm:$0xf] }
 0x1da   :  { %3681 = vmatpush.bf16.msra.mxu1 %v5532_v19  ;;  %v5888_v54 = vor.u32 %v6638_v15, %v5885_v29  ;;  %v6586_v19 = vld [vmem:[#allocation6 + $0x2cc] sm:$0xf]  ;;  %v6688_v15 = vld [vmem:[#allocation6 + $0x5f4] sm:$0xf0] }
 0x1db   :  { %v3519_v28 = vpop.f32.mrf.mxu0  ;;  %3759 = vmatpush.bf16.msrb.mxu3 %v5536_v20  ;;  %3722 = vmatpush.bf16.msrb.mxu0 %v5884_v48  ;;  %v5468_v20 = vor.u32 %v6536_v62, %v5467_v7  ;;  %v5472_v48 = vor.u32 %v6534_v13, %v5469_v61  ;;  %v6686_v29 = vld [vmem:[#allocation6 + $0x5ec] sm:$0xf]  ;;  %v5597_v61 = vld [vmem:[#allocation6 + $0x238] sm:$0xf0] }
 0x1dc   :  { %v3532_v30 = vpop.f32.mrf.mxu1  ;;  %v6670_v62 = vld [vmem:[#allocation6 + $0x56c] sm:$0xf] }
 0x1dd   :  { %3751 = vmatpush.bf16.msrb.mxu2 %v5328_v35  ;;  %v6544_v35 = vld [vmem:[#allocation6 + $0x174] sm:$0xf0]  ;;  %v6566_v13 = vld [vmem:[#allocation6 + $0x22c] sm:$0xf] }
 0x1de   :  { %3682 = vmatpush.bf16.msra.mxu1 %v5516_v18  ;;  %v5500_v42 = vor.u32 %v6544_v35, %v5499_v32  ;;  %v6582_v18 = vld [vmem:[#allocation6 + $0x2ac] sm:$0xf] }
 0x1df   :  { %3760 = vmatpush.bf16.msrb.mxu3 %v5520_v31  ;;  %3723 = vmatpush.bf16.msrb.mxu0 %v5868_v33  ;;  %v5661_v31 = vld [vmem:[#allocation6 + $0x2b8] sm:$0xf0]  ;;  %v5456_v33 = vor.u32 %v6530_v24, %v5453_v8  ;;  %v6562_v24 = vld [vmem:[#allocation6 + $0x20c] sm:$0xf]  ;;  %v6664_v8 = vld [vmem:[#allocation6 + $0x534] sm:$0xf0] }
 0x1e0   :  { %3752 = vmatmul.bf16.vlgmr.msrb.gmra.mxu2 %v7077_v52  ;;  %v2542_v52 = vperm.slane %v7123_v46, 0 }
 0x1e1   :  { %3796 = vmatpush.bf16.msra.mxu2 %v5952_v37  ;;  %v5501_v37 = vld [vmem:[#allocation6 + $0x178] sm:$0xf0]  ;;  %3635 = vmatmul.bf16.vlgmr.msrb.gmra.mxu1 %v7086_v12 }
 0x1e2   :  { %v3520_v4 = vadd.f32 %v3519_v28, %v2542_v52  ;;  %v5504_v44 = vor.u32 %v6542_v34, %v5501_v37  ;;  %3713 = vmatmul.bf16.vlgmr.msra.gmra.mxu3 %v7086_v12  ;;  %3683 = vmatpush.bf16.msra.mxu1 %v5500_v42  ;;  %v5677_v52 = vld [vmem:[#allocation6 + $0x2d8] sm:$0xf0]  ;;  %v6075_v28 = vld [vmem:[#allocation6 + $0x5e8] sm:$0xf]  ;;  %v6682_v37 = vld [vmem:[#allocation6 + $0x5cc] sm:$0xf] }
 0x1e3   :  { %v3545_v51 = vpop.f32.mrf.mxu2  ;;  %v3521_v1 = vpop.f32.mrf.mxu0  ;;  %3724 = vmatpush.bf16.msrb.mxu0 %v5852_v45  ;;  %v5680_v27 = vor.u32 %v6586_v19, %v5677_v52  ;;  %v6076_v32 = vor.u32 %v6688_v15, %v6075_v28  ;;  %v6059_v34 = vld [vmem:[#allocation6 + $0x5c8] sm:$0xf]  ;;  %v6064_v42 = vor.u32 %v6682_v37, %v6061_v39  ;;  %v5648_v45 = vor.u32 %v6578_v40, %v5645_v41  ;;  %v6668_v52 = vld [vmem:[#allocation6 + $0x554] sm:$0xf0]  ;;  %v5821_v37 = vld [vmem:[#allocation6 + $0x3f8] sm:$0xf0] }
 0x1e4   :  { %v3533_v22 = vadd.f32 %v3532_v30, %v3520_v4  ;;  %v3534_v5 = vpop.f32.mrf.mxu1  ;;  %3761 = vmatpush.bf16.msrb.mxu3 %v5504_v44  ;;  %v6077_v4 = vld [vmem:[#allocation6 + $0x5f8] sm:$0xf0]  ;;  %v5452_v30 = vor.u32 %v6532_v58, %v5451_v23  ;;  %v6680_v44 = vld [vmem:[#allocation6 + $0x5b4] sm:$0xf0]  ;;  %v6674_v1 = vld [vmem:[#allocation6 + $0x58c] sm:$0xf] }
 0x1e5   :  { %3797 = vmatpush.bf16.msra.mxu2 %v5936_v60  ;;  %v6630_v60 = vld [vmem:[#allocation6 + $0x42c] sm:$0xf]  ;;  %v6080_v35 = vor.u32 %v6686_v29, %v6077_v4  ;;  %v5995_v19 = vld [vmem:[#allocation6 + $0x548] sm:$0xf]  ;;  %v5997_v58 = vld [vmem:[#allocation6 + $0x558] sm:$0xf0] }
 0x1e6   :  { %v7126_v63 = vadd.f32 %v3545_v51, %v3533_v22  ;;  %3684 = vmatpush.bf16.msra.mxu1 %v5484_v50  ;;  %v6684_v22 = vld [vmem:[#allocation6 + $0x5d4] sm:$0xf0]  ;;  %v5629_v51 = vld [vmem:[#allocation6 + $0x278] sm:$0xf0]  ;;  %v6666_v23 = vld [vmem:[#allocation6 + $0x54c] sm:$0xf] }
 0x1e7   :  { %3725 = vmatpush.bf16.msrb.mxu0 %v5836_v53  ;;  %v6060_v21 = vor.u32 %v6684_v22, %v6059_v34  ;;  %v5616_v53 = vor.u32 %v6570_v38, %v5613_v3  ;;  %v6662_v29 = vld [vmem:[#allocation6 + $0x52c] sm:$0xf]  ;;  %v5981_v4 = vld [vmem:[#allocation6 + $0x538] sm:$0xf0] }
 0x1e8   :  { %3762 = vmatpush.bf16.msrb.mxu3 %v5488_v6  ;;  %v6011_v6 = vld [vmem:[#allocation6 + $0x568] sm:$0xf]  ;;  %v5965_v22 = vld [vmem:[#allocation6 + $0x518] sm:$0xf0]  ;;  %v6602_v3 = vld [vmem:[#allocation6 + $0x34c] sm:$0xf] }
 0x1e9   :  { %3798 = vmatpush.bf16.msra.mxu2 %v5920_v10  ;;  %v5856_v10 = vor.u32 %v6630_v60, %v5853_v2  ;;  %v5632_v60 = vor.u32 %v6574_v49, %v5629_v51  ;;  %v6029_v2 = vld [vmem:[#allocation6 + $0x598] sm:$0xf0] }
 0x1ea   :  { %3685 = vmatpush.bf16.msra.mxu1 %v5468_v20  ;;  %3726 = vmatmul.bf16.vlgmr.msrb.gmra.mxu0 %v7108_v17  ;;  %v6032_v50 = vor.u32 %v6674_v1, %v6029_v2  ;;  %v5789_v49 = vld [vmem:[#allocation6 + $0x3b8] sm:$0xf0]  ;;  %v6695_v2 = vld [vmem:[#allocation9 + $0x30] sm:$0xff] }
 0x1eb   :  { %3770 = vmatpush.bf16.msra.mxu0 %v5696_v11  ;;  %v5792_v51 = vor.u32 %v6614_v47, %v5789_v49  ;;  %v5757_v1 = vld [vmem:[#allocation6 + $0x378] sm:$0xf0] }
 0x1ec   :  { %3763 = vmatpush.bf16.msrb.mxu3 %v5472_v48  ;;  %v5600_v48 = vor.u32 %v6566_v13, %v5597_v61  ;;  %v6692_v13 = vld [vmem:[#allocation9 + $0x18] sm:$0xff] }
 0x1ed   :  { %3799 = vmatpush.bf16.msra.mxu2 %v5904_v0  ;;  %v3547_v0 = vpop.f32.mrf.mxu2  ;;  %v6708_v47 = vld [vmem:[#allocation9 + $0x98] sm:$0xff] }
 0x1ee   :  { %3686 = vmatpush.bf16.msra.mxu1 %v5452_v30  ;;  %v5581_v0 = vld [vmem:[#allocation6 + $0x218] sm:$0xf0]  ;;  %v2543_v30 = vperm.slane %v7123_v46, 1 }
 0x1ef   :  { %3771 = vmatpush.bf16.msra.mxu0 %v5680_v27  ;;  %v5979_v27 = vld [vmem:[#allocation6 + $0x528] sm:$0xf]  ;;  %v5584_v28 = vor.u32 %v6562_v24, %v5581_v0  ;;  %v6702_v24 = vld [vmem:[#allocation9 + $0x68] sm:$0xff] }
 0x1f0   :  { %3764 = vmatpush.bf16.msrb.mxu3 %v5456_v33  ;;  %v5963_v33 = vld [vmem:[#allocation6 + $0x508] sm:$0xf] }
 0x1f1   :  { %3800 = vmatpush.bf16.msra.mxu2 %v5888_v54  ;;  %v5664_v54 = vor.u32 %v6582_v18, %v5661_v31  ;;  %3687 = vmatmul.bf16.vlgmr.msra.gmra.mxu1 %v7079_v55  ;;  %v5980_v18 = vor.u32 %v6664_v8, %v5979_v27  ;;  %v5984_v31 = vor.u32 %v6662_v29, %v5981_v4  ;;  %v6701_v0 = vld [vmem:[#allocation9 + $0x60] sm:$0xff]  ;;  %v6699_v8 = vld [vmem:[#allocation9 + $0x50] sm:$0xff] }
 0x1f2   :  { %3731 = vmatpush.bf16.msrb.mxu1 %v6076_v32  ;;  %v6660_v32 = vld [vmem:[#allocation6 + $0x514] sm:$0xf0]  ;;  %v6697_v29 = vld [vmem:[#allocation9 + $0x40] sm:$0xff] }
 0x1f3   :  { %3772 = vmatpush.bf16.msra.mxu0 %v5664_v54  ;;  %3765 = vmatmul.bf16.vlgmr.msrb.gmra.mxu3 %v7079_v55  ;;  %v6672_v55 = vld [vmem:[#allocation6 + $0x574] sm:$0xf0]  ;;  %v6622_v54 = vld [vmem:[#allocation6 + $0x3ec] sm:$0xf]  ;;  %v5964_v39 = vor.u32 %v6660_v32, %v5963_v33 }
 0x1f4   :  { %3809 = vmatpush.bf16.msra.mxu3 %v6080_v35  ;;  %v3558_v7 = vpop.f32.mrf.mxu3  ;;  %v6012_v14 = vor.u32 %v6672_v55, %v6011_v6  ;;  %v6658_v35 = vld [vmem:[#allocation6 + $0x50c] sm:$0xf]  ;;  %v5725_v55 = vld [vmem:[#allocation6 + $0x338] sm:$0xf0] }
 0x1f5   :  { %3801 = vmatpush.bf16.msra.mxu2 %v5872_v57  ;;  %v6044_v57 = vor.u32 %v6680_v44, %v6043_v43  ;;  %v7135_v11 = vadd.f32 %v3558_v7, %v7126_v63  ;;  %v6000_v63 = vor.u32 %v6666_v23, %v5997_v58  ;;  %v5968_v41 = vor.u32 %v6658_v35, %v5965_v22  ;;  %v6618_v43 = vld [vmem:[#allocation6 + $0x3cc] sm:$0xf]  ;;  %v5805_v44 = vld [vmem:[#allocation6 + $0x3d8] sm:$0xf0]  ;;  %v6689_v58 = vld [vmem:[#allocation9] sm:$0xff] }
 0x1f6   :  { %3732 = vmatpush.bf16.msrb.mxu1 %v6060_v21  ;;  %v5824_v21 = vor.u32 %v6622_v54, %v5821_v37  ;;  %v5808_v9 = vor.u32 %v6618_v43, %v5805_v44  ;;  %v6598_v6 = vld [vmem:[#allocation6 + $0x32c] sm:$0xf]  ;;  %v6709_v43 = vld [vmem:[#allocation9 + $0xa0] sm:$0xff] }
 0x1f7   :  { %3773 = vmatpush.bf16.msra.mxu0 %v5648_v45  ;;  %v5728_v7 = vor.u32 %v6598_v6, %v5725_v55  ;;  %v6719_v6 = vld [vmem:[#allocation9 + $0xf0] sm:$0xff] }
 0x1f8   :  { %3810 = vmatpush.bf16.msra.mxu3 %v6064_v42 }
 0x1f9   :  { %3802 = vmatpush.bf16.msra.mxu2 %v5856_v10  ;;  %v6013_v10 = vld [vmem:[#allocation6 + $0x578] sm:$0xf0] }
 0x1fa   :  { %3733 = vmatpush.bf16.msrb.mxu1 %v6044_v57  ;;  %v6016_v16 = vor.u32 %v6670_v62, %v6013_v10  ;;  %v6610_v57 = vld [vmem:[#allocation6 + $0x38c] sm:$0xf]  ;;  %v5709_v10 = vld [vmem:[#allocation6 + $0x318] sm:$0xf0] }
 0x1fb   :  { %3774 = vmatpush.bf16.msra.mxu0 %v5632_v60  ;;  %v6606_v60 = vld [vmem:[#allocation6 + $0x36c] sm:$0xf] }
 0x1fc   :  { %3811 = vmatpush.bf16.msra.mxu3 %v6048_v56  ;;  %v3560_v15 = vpop.f32.mrf.mxu3  ;;  %v5773_v56 = vld [vmem:[#allocation6 + $0x398] sm:$0xf0]  ;;  %v5760_v38 = vor.u32 %v6606_v60, %v5757_v1  ;;  %v6594_v62 = vld [vmem:[#allocation6 + $0x30c] sm:$0xf] }
 0x1fd   :  { %3803 = vmatpush.bf16.msra.mxu2 %v5840_v26  ;;  %v5996_v26 = vor.u32 %v6668_v52, %v5995_v19  ;;  %v5712_v61 = vor.u32 %v6594_v62, %v5709_v10  ;;  %v6690_v52 = vld [vmem:[#allocation9 + $0x8] sm:$0xff] }
 0x1fe   :  { %v6698_v15 = vld [vmem:[#allocation9 + $0x48] sm:$0xff] }
 0x1ff   :  { %3775 = vmatpush.bf16.msra.mxu0 %v5616_v53  ;;  %v6693_v53 = vld [vmem:[#allocation9 + $0x20] sm:$0xff]  ;;  %v6706_v1 = vld [vmem:[#allocation9 + $0x88] sm:$0xff] }
 0x200   :  { %3804 = vmatmul.bf16.vlgmr.msra.gmra.mxu2 %v7108_v17  ;;  %v6676_v17 = vld [vmem:[#allocation6 + $0x594] sm:$0xf0]  ;;  %3812 = vmatpush.bf16.msra.mxu3 %v6032_v50  ;;  %v6694_v50 = vld [vmem:[#allocation9 + $0x28] sm:$0xff] }
 0x201   :  { %v6028_v5 = vor.u32 %v6676_v17, %v6027_v59  ;;  %v6696_v59 = vld [vmem:[#allocation9 + $0x38] sm:$0xff]  ;;  %v5776_v17 = vor.u32 %v6610_v57, %v5773_v56 }
 0x203   :  { %3734 = vmatpush.bf16.msrb.mxu1 %v6028_v5  ;;  %v3597_v20 = vpop.f32.mrf.mxu2  ;;  %3776 = vmatpush.bf16.msra.mxu0 %v5600_v48  ;;  %v5741_v5 = vld [vmem:[#allocation6 + $0x358] sm:$0xf0] }
 0x204   :  { %3813 = vmatpush.bf16.msra.mxu3 %v6016_v16  ;;  %v3598_v40 = vadd.f32 %v3597_v20, %v2543_v30  ;;  %v3610_v42 = vpop.f32.mrf.mxu3  ;;  %v6704_v16 = vld [vmem:[#allocation9 + $0x78] sm:$0xff]  ;;  %v6703_v20 = vld [vmem:[#allocation9 + $0x70] sm:$0xff] }
 0x206   :  { %v7139_v45 = vadd.f32 %v3610_v42, %v3598_v40  ;;  %v6711_v40 = vld [vmem:[#allocation9 + $0xb0] sm:$0xff] }
 0x207   :  { %3735 = vmatpush.bf16.msrb.mxu1 %v6012_v14  ;;  %3777 = vmatpush.bf16.msra.mxu0 %v5584_v28  ;;  %v6691_v14 = vld [vmem:[#allocation9 + $0x10] sm:$0xff] }
 0x208   :  { %3814 = vmatpush.bf16.msra.mxu3 %v6000_v63  ;;  %v6700_v63 = vld [vmem:[#allocation9 + $0x58] sm:$0xff] }
 0x20a   :  { %3778 = vmatmul.bf16.vlgmr.msra.gmra.mxu0 %v7075_v36 }
 0x20b   :  { %3736 = vmatpush.bf16.msrb.mxu1 %v5996_v26  ;;  %v3599_v34 = vpop.f32.mrf.mxu2  ;;  %4090 = vmatpush.bf16.msrb.mxu0 %v6696_v59  ;;  %v6707_v59 = vld [vmem:[#allocation9 + $0x90] sm:$0xff] }
 0x20c   :  { %3815 = vmatpush.bf16.msra.mxu3 %v5984_v31  ;;  %v3612_v36 = vpop.f32.mrf.mxu3  ;;  %v6712_v34 = vld [vmem:[#allocation9 + $0xb8] sm:$0xff] }
 0x20d   :  { %4116 = vmatpush.bf16.msrb.mxu2 %v6712_v34 }
 0x20f   :  { %3737 = vmatpush.bf16.msrb.mxu1 %v5980_v18  ;;  %4091 = vmatpush.bf16.msrb.mxu0 %v6695_v2 }
 0x210   :  { %3816 = vmatpush.bf16.msra.mxu3 %v5968_v41  ;;  %v6710_v41 = vld [vmem:[#allocation9 + $0xa8] sm:$0xff] }
 0x211   :  { %4117 = vmatpush.bf16.msrb.mxu2 %v6711_v40 }
 0x213   :  { %3738 = vmatpush.bf16.msrb.mxu1 %v5964_v39  ;;  %3817 = vmatmul.bf16.vlgmr.msra.gmra.mxu3 %v7118_v25 }
 0x214   :  { %4092 = vmatpush.bf16.msrb.mxu0 %v6694_v50  ;;  %v6720_v50 = vld [vmem:[#allocation9 + $0xf8] sm:$0xff] }
 0x215   :  { %4118 = vmatpush.bf16.msrb.mxu2 %v6710_v41  ;;  %4129 = vmatpush.bf16.msrb.mxu3 %v6720_v50  ;;  %v6733_v41 = vld [vmem:[#allocation10] ss:$0 sm:$0xff] }
 0x216   :  { %3739 = vmatmul.bf16.vlgmr.msrb.gmra.mxu1 %v7118_v25  ;;  %v5744_v25 = vor.u32 %v6602_v3, %v5741_v5 }
 0x217   :  { %3783 = vmatpush.bf16.msra.mxu1 %v5824_v21 }
 0x218   :  { %4093 = vmatpush.bf16.msrb.mxu0 %v6693_v53  ;;  %v2544_v53 = vperm.slane %v7123_v46, 2 }
 0x219   :  { %4119 = vmatpush.bf16.msrb.mxu2 %v6709_v43  ;;  %4130 = vmatpush.bf16.msrb.mxu3 %v6719_v6 }
 0x21b   :  { %3784 = vmatpush.bf16.msra.mxu1 %v5808_v9 }
 0x21c   :  { %4094 = vmatpush.bf16.msrb.mxu0 %v6692_v13 }
 0x21d   :  { %4120 = vmatpush.bf16.msrb.mxu2 %v6708_v47 }
 0x21f   :  { %3785 = vmatpush.bf16.msra.mxu1 %v5792_v51 }
 0x220   :  { %4095 = vmatpush.bf16.msrb.mxu0 %v6691_v14 }
 0x221   :  { %4121 = vmatpush.bf16.msrb.mxu2 %v6707_v59 }
 0x223   :  { %3786 = vmatpush.bf16.msra.mxu1 %v5776_v17 }
 0x224   :  { %4096 = vmatpush.bf16.msrb.mxu0 %v6690_v52 }
 0x225   :  { %4122 = vmatpush.bf16.msrb.mxu2 %v6706_v1 }
 0x226   :  { %v3571_v19 = vpop.f32.mrf.mxu0 }
 0x227   :  { %3787 = vmatpush.bf16.msra.mxu1 %v5760_v38  ;;  %v3572_v18 = vadd.f32 %v3571_v19, %v7135_v11  ;;  %v6705_v38 = vld [vmem:[#allocation9 + $0x80] sm:$0xff] }
 0x228   :  { %4097 = vmatpush.bf16.msrb.mxu0 %v6689_v58 }
 0x229   :  { %4123 = vmatpush.bf16.msrb.mxu2 %v6705_v38 }
 0x22b   :  { %3788 = vmatpush.bf16.msra.mxu1 %v5744_v25 }
 0x22d   :  { %v3649_v48 = vpop.f32.mrf.mxu2 }
 0x22e   :  { %v3573_v23 = vpop.f32.mrf.mxu0 }
 0x22f   :  { %3789 = vmatpush.bf16.msra.mxu1 %v5728_v7  ;;  %v6718_v7 = vld [vmem:[#allocation9 + $0xe8] sm:$0xff] }
 0x230   :  { %4131 = vmatpush.bf16.msrb.mxu3 %v6718_v7 }
 0x233   :  { %3790 = vmatpush.bf16.msra.mxu1 %v5712_v61  ;;  %v6717_v61 = vld [vmem:[#allocation9 + $0xe0] sm:$0xff] }
 0x234   :  { %4132 = vmatpush.bf16.msrb.mxu3 %v6717_v61 }
 0x235   :  { %v3651_v26 = vpop.f32.mrf.mxu2 }
 0x236   :  { %3791 = vmatmul.bf16.vlgmr.msra.gmra.mxu1 %v7086_v12  ;;  %v3623_v27 = vpop.f32.mrf.mxu0 }
 0x237   :  { %4103 = vmatpush.bf16.msrb.mxu1 %v6704_v16  ;;  %v3624_v42 = vadd.f32 %v3623_v27, %v7139_v45  ;;  %v6716_v16 = vld [vmem:[#allocation9 + $0xd8] sm:$0xff]  ;;  %v6713_v27 = vld [vmem:[#allocation9 + $0xc0] sm:$0xff] }
 0x238   :  { %4133 = vmatpush.bf16.msrb.mxu3 %v6716_v16 }
 0x23b   :  { %4104 = vmatpush.bf16.msrb.mxu1 %v6703_v20 }
 0x23e   :  { %v3625_v12 = vpop.f32.mrf.mxu0 }
 0x23f   :  { %4105 = vmatpush.bf16.msrb.mxu1 %v6702_v24  ;;  %v6714_v24 = vld [vmem:[#allocation9 + $0xc8] sm:$0xff] }
 0x243   :  { %4106 = vmatpush.bf16.msrb.mxu1 %v6701_v0  ;;  %v7144_v28 = vpop.f32.mrf.mxu2 }
 0x247   :  { %4107 = vmatpush.bf16.msrb.mxu1 %v6700_v63  ;;  %v3675_v30 = vpop.f32.mrf.mxu0 }
 0x248   :  { %v3676_v10 = vadd.f32 %v3675_v30, %v2544_v53 }
 0x24b   :  { %4108 = vmatpush.bf16.msrb.mxu1 %v6699_v8  ;;  %v3703_v4 = vpop.f32.mrf.mxu2 }
 0x24e   :  { %v3584_v31 = vpop.f32.mrf.mxu1 }
 0x24f   :  { %4109 = vmatpush.bf16.msrb.mxu1 %v6698_v15  ;;  %v3585_v33 = vadd.f32 %v3584_v31, %v3572_v18  ;;  %v3677_v35 = vpop.f32.mrf.mxu0 }
 0x251   :  { %v3822_v32 = vmax.f32 %v3585_v33, 0.0 }
 0x253   :  { %4110 = vmatpush.bf16.msrb.mxu1 %v6697_v29  ;;  %v3826_v22 = vpack.c.bf16 %v3822_v32, %v3822_v32 }
 0x255   :  { %v3662_v54 = vpop.f32.mrf.mxu3  ;;  %4098 = vmatmul.bf16.vlgmr.msrb.gmra.mxu0 %v3826_v22 }
 0x256   :  { %v3586_v39 = vpop.f32.mrf.mxu1 }
 0x25d   :  { %v3664_v21 = vpop.f32.mrf.mxu3 }
 0x25e   :  { %v3636_v44 = vpop.f32.mrf.mxu1 }
 0x25f   :  { %v3637_v9 = vadd.f32 %v3636_v44, %v3624_v42 }
 0x261   :  { %v3650_v49 = vadd.f32 %v3649_v48, %v3637_v9  ;;  %v6715_v48 = vld [vmem:[#allocation9 + $0xd0] sm:$0xff] }
 0x262   :  { %4134 = vmatpush.bf16.msrb.mxu3 %v6715_v48 }
 0x263   :  { %v7147_v37 = vpop.f32.mrf.mxu2  ;;  %v3663_v51 = vadd.f32 %v3662_v54, %v3650_v49 }
 0x265   :  { %v3714_v36 = vpop.f32.mrf.mxu3  ;;  %v3823_v57 = vmax.f32 %v3663_v51, 0.0 }
 0x266   :  { %v3638_v56 = vpop.f32.mrf.mxu1  ;;  %4135 = vmatpush.bf16.msrb.mxu3 %v6714_v24 }
 0x267   :  { %v3827_v17 = vpack.c.bf16 %v3823_v57, %v3823_v57  ;;  %v3727_v60 = vpop.f32.mrf.mxu0 }
 0x269   :  { %4111 = vmatmul.bf16.vlgmr.msrb.gmra.mxu1 %v3827_v17 }
 0x26a   :  { %4136 = vmatpush.bf16.msrb.mxu3 %v6713_v27 }
 0x26b   :  { %v3755_v11 = vpop.f32.mrf.mxu2 }
 0x26d   :  { %v3716_v2 = vpop.f32.mrf.mxu3 }
 0x26e   :  { %v3688_v45 = vpop.f32.mrf.mxu1 }
 0x26f   :  { %v3729_v3 = vpop.f32.mrf.mxu0  ;;  %v3689_v14 = vadd.f32 %v3688_v45, %v3676_v10 }
 0x271   :  { %v3702_v19 = vadd.f32 %v7144_v28, %v3689_v14  ;;  %v2545_v28 = vperm.slane %v7123_v46, 3 }
 0x273   :  { %v3715_v20 = vadd.f32 %v3714_v36, %v3702_v19  ;;  %v3754_v4 = vadd.f32 %v7147_v37, %v2545_v28 }
 0x275   :  { %v3728_v23 = vadd.f32 %v3727_v60, %v3715_v20 }
 0x276   :  { %v3766_v25 = vpop.f32.mrf.mxu3  ;;  %v3690_v55 = vpop.f32.mrf.mxu1 }
 0x277   :  { %v3767_v30 = vadd.f32 %v3766_v25, %v3754_v4 }
 0x27e   :  { %v3768_v13 = vpop.f32.mrf.mxu3 }
 0x283   :  { %v3805_v5 = vpop.f32.mrf.mxu2 }
 0x287   :  { %v3779_v52 = vpop.f32.mrf.mxu0 }
 0x288   :  { %v3780_v18 = vadd.f32 %v3779_v52, %v3767_v30 }
 0x28b   :  { %v3807_v62 = vpop.f32.mrf.mxu2 }
 0x28f   :  { %v3781_v26 = vpop.f32.mrf.mxu0 }
 0x293   :  { %v3740_v58 = vpop.f32.mrf.mxu1 }
 0x294   :  { %v3741_v0 = vadd.f32 %v3740_v58, %v3728_v23 }
 0x296   :  { %v3824_v63 = vmax.f32 %v3741_v0, 0.0  ;;  %v3818_v12 = vpop.f32.mrf.mxu3 }
 0x298   :  { %v3828_v8 = vpack.c.bf16 %v3824_v63, %v3824_v63 }
 0x29a   :  { %4124 = vmatmul.bf16.vlgmr.msrb.gmra.mxu2 %v3828_v8 }
 0x29b   :  { %v3742_v15 = vpop.f32.mrf.mxu1 }
 0x29e   :  { %v3820_v29 = vpop.f32.mrf.mxu3 }
 0x2b3   :  { %v3792_v31 = vpop.f32.mrf.mxu1 }
 0x2b4   :  { %v3793_v33 = vadd.f32 %v3792_v31, %v3780_v18 }
 0x2b6   :  { %v3806_v32 = vadd.f32 %v3805_v5, %v3793_v33 }
 0x2b8   :  { %v3819_v35 = vadd.f32 %v3818_v12, %v3806_v32 }
 0x2ba   :  { %v3825_v34 = vmax.f32 %v3819_v35, 0.0 }
 0x2bb   :  { %v3794_v22 = vpop.f32.mrf.mxu1 }
 0x2bc   :  { %v3829_v54 = vpack.c.bf16 %v3825_v34, %v3825_v34 }
 0x2be   :  { %4137 = vmatmul.bf16.vlgmr.msrb.gmra.mxu3 %v3829_v54 }
 0x2d2   :  { %v4099_v39 = vpop.f32.mrf.mxu0 }
 0x2d3   :  { %v4100_v21 = vadd.f32 %v6733_v41, %v4099_v39 }
 0x2da   :  { %v4101_v40 = vpop.f32.mrf.mxu0 }
 0x2e6   :  { %v4112_v42 = vpop.f32.mrf.mxu1 }
 0x2e7   :  { %v4113_v11 = vadd.f32 %v4112_v42, %v4100_v21 }
 0x2ee   :  { %v4114_v43 = vpop.f32.mrf.mxu1 }
 0x31d   :  { %v4125_v46 = vpop.f32.mrf.mxu2 }
 0x31e   :  { %v4126_v37 = vadd.f32 %v4125_v46, %v4113_v11 }
 0x325   :  { %v4127_v44 = vpop.f32.mrf.mxu2 }
 0x341   :  { %v4138_v9 = vpop.f32.mrf.mxu3 }
 0x342   :  { %v4139_v47 = vadd.f32 %v4138_v9, %v4126_v37 }
 0x344   :  { %4142 = vmax.xlane.f32.xlu0 %v4139_v47 }
 0x349   :  { %v4140_v49 = vpop.f32.mrf.mxu3 }
 0x3b7   :  { %v4143_v51 = vpop.xlane.xlu0 %4142 }
 0x3b8   :  { %v4144_v36 = vsub.f32 %v4139_v47, %v4143_v51 }
 0x3ba   :  { %v4145_v57 = vmul.f32 1.442695, %v4144_v36 }
 0x3bc   :  { %6746 = vpow2.f32 %v4145_v57 }
 0x3c2   :  { %v6747_v56 = vpop.eup %6746 }
 0x3c3   :  { %4147 = vadd.xlane.f32.xlu0 %v6747_v56 }
 0x436   :  { %v4148_v59 = vpop.xlane.xlu0 %4147 }
 0x437   :  { %6748 = vlog2.f32 %v4148_v59 }
 0x43d   :  { %v6749_v17 = vpop.eup %6748 }
 0x43e   :  { %v4150_v60 = vmul.f32 0.6931472, %v6749_v17 }
 0x440   :  { %v4151_v1 = vsub.f32 %v4144_v36, %v4150_v60 }
 0x442   :  { %4152 = vst [vmem:[%s7164_s7] sm:$0xff] %v4151_v1 }
 0x443   :  { %4157 = vsyncpa [#allocation3], 1 }
 0x444   :  { %4158 = vsyncpa [#allocation5], 1 }
 0x445   :  { %4159 = vsyncpa [#allocation8], 1 }
 0x446   :  { %4160 = vsyncpa [#allocation11], 1 }

</bundles_post_ra>
